<compile_context>
chip_gen: v7x
topology: tpu7x:2x2x1
jax: 0.10.0
libtpu: 0.0.40
codegen_flags: <defaults>
</compile_context>

<pallas_src>
import functools

import numpy as np
import jax
import jax.numpy as jnp
from jax import lax
from jax.experimental import pallas as pl
from jax.experimental.pallas import tpu as pltpu


def st_block_kernel(x_ref, a_ref, vs_ref, bs_ref, w1_ref, w2_ref,
                    chebw_ref, chebb_ref, convm_ref, convb_ref,
                    out_ref, tx_ref, *, K, N, BT):
    """One grid step processes BT batch elements (M = BT*N rows on the MXU).

    x_ref:     (BT*N, T1)            input rows, batch-major
    a_ref:     (N, N)                adjacency, diagonal already zeroed
    vs_ref:    (N, N)                SpatialAtt Vs
    bs_ref:    (N, N)                SpatialAtt bs
    w1_ref:    (T1, 1)               W1 with the scalar W3 folded in
    w2_ref:    (1, T1)               W2 (C = 1)
    chebw_ref: (K, T1, T2)           ChebConv lins[k].weight.T
    chebb_ref: (1, T2)               ChebConv bias
    convm_ref: (T2, T2)              Conv1d(1,1,K,pad=(K-1)//2) banded matrix
    convb_ref: (1,)  [SMEM]          Conv1d bias (scalar)
    out_ref:   (1, N, BT*T2)         output, batch packed along lanes
    tx_ref:    (max(K-1,1), BT*N, T1) [VMEM scratch] Chebyshev basis T_1..T_{K-1}
    """
    T2 = convm_ref.shape[0]
    a = a_ref[...]
    vs = vs_ref[...]
    bs = bs_ref[...]
    xs = x_ref[...]                                             # (BT*N, T1)

    # --- SpatialAtt rank-1 score pieces, hoisted to slab level (2 MXU pushes):
    #     score_b = u_b v_b^T + bs,  u = x @ (W1*W3),  v = W2 @ x^T   (C == 1)
    u_all = jnp.dot(xs, w1_ref[...],
                    preferred_element_type=jnp.float32)         # (BT*N, 1)
    v_all = lax.dot_general(w2_ref[...], xs, (((1,), (1,)), ((), ())),
                            preferred_element_type=jnp.float32)  # (1, BT*N)

    def softmax0(m):
        # torch.nn.Softmax(1) on (B, N, N) == softmax over axis 0 per (N, N).
        e = jnp.exp(m - jnp.max(m, axis=0, keepdims=True))
        return e * pl.reciprocal(jnp.sum(e, axis=0, keepdims=True), approx=True)

    # --- Per-batch attention + Chebyshev basis.  Each T_k goes straight to
    # VMEM scratch so vreg live ranges stay bounded across the unrolled loop.
    for lb in range(BT):
        r0 = lb * N
        x = xs[r0:r0 + N, :]                                    # (N, T1)
        u = u_all[r0:r0 + N, :]                                 # (N, 1)
        v = v_all[:, r0:r0 + N]                                 # (1, N)

        s = softmax0(u * v + bs)
        s = softmax0(jnp.dot(vs, s, preferred_element_type=jnp.float32))

        # sym-normalized Laplacian, lambda_max = 2:  L_hat = -D^-1/2 Abar D^-1/2
        abar = a * s                                            # diag already 0
        deg = jnp.sum(abar, axis=1, keepdims=True)              # (N, 1) row sums
        d = jnp.where(deg > 0, lax.rsqrt(deg), 0.0)
        # PyG aggregates source->target, i.e. applies L_hat^T:
        #   lhatT[i, j] = -d[i] * abar[j, i] * d[j] = -(d * (d * abar)^T)[i, j]
        lhatT = -d * jnp.transpose(d * abar)                    # one (N, N) tile

        if K > 1:
            t_prev2 = x
            t_prev1 = jnp.dot(lhatT, x, preferred_element_type=jnp.float32)
            tx_ref[0, r0:r0 + N, :] = t_prev1
            for k in range(2, K):
                t_new = (2.0 * jnp.dot(lhatT, t_prev1,
                                       preferred_element_type=jnp.float32)
                         - t_prev2)
                tx_ref[k - 1, r0:r0 + N, :] = t_new
                t_prev2, t_prev1 = t_prev1, t_new

    # --- ChebConv output: K accumulating matmuls at full M = BT*N (no lane
    # concatenation of the basis), then bias + ReLU.
    h = jnp.dot(xs, chebw_ref[0], preferred_element_type=jnp.float32)
    for k in range(1, K):
        h = h + jnp.dot(tx_ref[k - 1], chebw_ref[k],
                        preferred_element_type=jnp.float32)
    h = jnp.maximum(h + chebb_ref[...], 0.0)                    # (BT*N, T2)

    # --- timeConv (Conv1d as a banded matmul) + bias + ReLU on the full slab.
    y = jnp.dot(h, convm_ref[...], preferred_element_type=jnp.float32)
    y = jnp.maximum(y + convb_ref[0], 0.0)                      # (BT*N, T2)

    # --- Lane-packed store: batch lb occupies lanes [lb*T2, (lb+1)*T2).
    for lb in range(BT):
        out_ref[0, :, lb * T2:(lb + 1) * T2] = y[lb * N:(lb + 1) * N, :]


def st_block_forward(X, A, params, K, batch_tile=None):
    """X: (B, N, 1, T1) float32, A: (N, N) float32 -> (B, N, 1, T2) float32."""
    B, N, C, T1 = X.shape
    assert C == 1
    T2 = params["cheb_w"].shape[2]

    # Lane-dense output tile: bt*T2 is a multiple of 128 (unmasked vst on the
    # output writeback).  Demo B=16 -> grid=(2,): both v7x TCs get work; on
    # single-TC v5e/v6e the two steps still amortize per-step overhead well.
    if batch_tile is None:
        bt = max(1, 128 // T2)
    else:
        bt = batch_tile
    n_steps = -(-B // bt)                  # cdiv; pad batch up if needed
    Bp = n_steps * bt

    # Batch-invariant prep, hoisted out of the kernel.
    x2 = X.reshape(B * N, T1).astype(jnp.float32)
    if Bp != B:
        x2 = jnp.concatenate(
            [x2, jnp.zeros(((Bp - B) * N, T1), jnp.float32)], axis=0)
    a_nodiag = (A.astype(jnp.float32)
                * (1.0 - jnp.eye(N, dtype=jnp.float32)))         # remove_self_loops
    w1w3 = (params["W1"] * params["W3"][0, 0]).astype(jnp.float32)  # (T1, 1)
    conv_b = params["conv_b"].reshape(1).astype(jnp.float32)        # SMEM scalar

    kernel = functools.partial(st_block_kernel, K=K, N=N, BT=bt)
    out = pl.pallas_call(
        kernel,
        out_shape=jax.ShapeDtypeStruct((n_steps, N, bt * T2), jnp.float32),
        grid=(n_steps,),
        in_specs=[
            pl.BlockSpec((bt * N, T1), lambda b: (b, 0)),        # X slab
            pl.BlockSpec((N, N), lambda b: (0, 0)),              # A (diag zeroed)
            pl.BlockSpec((N, N), lambda b: (0, 0)),              # Vs
            pl.BlockSpec((N, N), lambda b: (0, 0)),              # bs
            pl.BlockSpec((T1, 1), lambda b: (0, 0)),             # W1*W3
            pl.BlockSpec((1, T1), lambda b: (0, 0)),             # W2
            pl.BlockSpec((K, T1, T2), lambda b: (0, 0, 0)),      # cheb weights
            pl.BlockSpec((1, T2), lambda b: (0, 0)),             # cheb bias
            pl.BlockSpec((T2, T2), lambda b: (0, 0)),            # conv banded mat
            pl.BlockSpec(memory_space=pltpu.MemorySpace.SMEM),   # conv bias scalar
        ],
        out_specs=pl.BlockSpec((1, N, bt * T2), lambda b: (b, 0, 0)),
        scratch_shapes=[pltpu.VMEM((max(K - 1, 1), bt * N, T1), jnp.float32)],
        compiler_params=pltpu.CompilerParams(
            dimension_semantics=("parallel",)),
    )(x2, a_nodiag, params["Vs"].astype(jnp.float32),
      params["bs"].astype(jnp.float32), w1w3,
      params["W2"].astype(jnp.float32),
      params["cheb_w"].astype(jnp.float32),
      params["cheb_b"].astype(jnp.float32),
      params["conv_mt"].astype(jnp.float32), conv_b)

    # Unpack lanes: (n_steps, N, bt*T2) -> (Bp, N, 1, T2) -> drop batch padding.
    out = out.reshape(n_steps, N, bt, T2)
    out = jnp.transpose(out, (0, 2, 1, 3)).reshape(Bp, N, 1, T2)
    return out[:B]


def st_block_reference(X, A, p, K):
    """Pure-JAX reference mirroring the PyTorch forward (exact f32 matmuls)."""
    B, N, C, T1 = X.shape
    x_all = X.reshape(B, N, T1).astype(jnp.float32)
    mm = functools.partial(jnp.matmul, precision=jax.lax.Precision.HIGHEST)
    w3 = p["W3"][0, 0]

    def softmax0(m):
        e = jnp.exp(m - jnp.max(m, axis=0, keepdims=True))
        return e / jnp.sum(e, axis=0, keepdims=True)

    def per_batch(x):
        xW1 = mm(x, p["W1"])                       # (N, 1)
        w1xw2 = mm(xW1, p["W2"])                   # (N, T1)
        s_ = mm(w1xw2, x.T) * w3 + p["bs"]
        s_ = softmax0(s_)
        s_ = mm(p["Vs"], s_)
        s = softmax0(s_)
        a_hat = A * s
        abar = a_hat * (1.0 - jnp.eye(N, dtype=jnp.float32))
        deg = abar.sum(axis=1)
        d = jnp.where(deg > 0, deg ** -0.5, 0.0)
        lhat = -(d[:, None] * abar * d[None, :])

        def prop(v):
            return mm(lhat.T, v)

        tx0 = x
        out = mm(tx0, p["cheb_w"][0])
        if K > 1:
            tx1 = prop(x)
            out = out + mm(tx1, p["cheb_w"][1])
            for k in range(2, K):
                tx2 = 2.0 * prop(tx1) - tx0
                out = out + mm(tx2, p["cheb_w"][k])
                tx0, tx1 = tx1, tx2
        out = jax.nn.relu(out + p["cheb_b"])
        y = jax.nn.relu(mm(out, p["conv_mt"]) + p["conv_b"])
        return y

    return jax.vmap(per_batch)(x_all).reshape(B, N, 1, -1)


def make_params(key, N, T1, T2, K):
    ks = jax.random.split(key, 9)

    def xavier(k, shape):
        fan_in, fan_out = shape[-2], shape[-1]
        a = float(np.sqrt(6.0 / (fan_in + fan_out)))
        return jax.random.uniform(k, shape, jnp.float32, -a, a)

    params = {
        "Vs": xavier(ks[0], (N, N)),
        "bs": xavier(ks[1], (N, N)),
        "W1": jax.random.uniform(ks[2], (T1, 1), jnp.float32),
        "W2": xavier(ks[3], (1, T1)),
        "W3": jax.random.uniform(ks[4], (1, 1), jnp.float32),
        "cheb_w": jax.random.normal(ks[5], (K, T1, T2), jnp.float32)
                  * float(np.sqrt(2.0 / (T1 + T2))),
        "cheb_b": jax.random.normal(ks[6], (1, T2), jnp.float32) * 0.05,
        "conv_b": jax.random.normal(ks[8], (1, 1), jnp.float32) * 0.1,
    }

    # Conv1d(1, 1, K, padding=(K-1)//2) weight folded into a (T2, T2) banded
    # matrix so that conv1d(x)[t] = (x @ conv_mt)[:, t] + conv_b   (K odd).
    conv_w = np.asarray(jax.random.normal(ks[7], (K,), jnp.float32)) * 0.3
    pad = (K - 1) // 2
    mt = np.zeros((T2, T2), np.float32)
    for k in range(K):
        off = k - pad
        for t in range(T2):
            src = t + off
            if 0 <= src < T2:
                mt[src, t] = conv_w[k]
    params["conv_mt"] = jnp.asarray(mt)
    return params


if __name__ == "__main__":
    # B=16 with T2=16 gives bt=8 (lane-dense 128-wide output blocks) and a
    # grid of 2 "parallel" steps (both v7x TensorCores busy).
    B, N, T1, T2, K = 16, 16, 16, 16, 3

    key = jax.random.PRNGKey(0)
    k_x, k_a, k_p = jax.random.split(key, 3)

    X = jax.random.normal(k_x, (B, N, 1, T1), jnp.float32)
    # sparse-ish non-negative adjacency (shared across the batch, A.repeat(B,1,1))
    ka1, ka2 = jax.random.split(k_a)
    A = (jax.random.uniform(ka1, (N, N), jnp.float32)
         * (jax.random.uniform(ka2, (N, N)) > 0.4).astype(jnp.float32))

    params = make_params(k_p, N, T1, T2, K)

    out = st_block_forward(X, A, params, K)
    out = jax.block_until_ready(out)

    ref = st_block_reference(X, A, params, K)
    ref = jax.block_until_ready(ref)

    assert out.shape == (B, N, 1, T2), out.shape
    # Kernel matmuls run at TPU-default (bf16-input, f32-accumulate) precision
    # per the perf guidance, while the reference is exact f32; the two softmax
    # stages amplify the bf16 input rounding, so the tolerance is sized for
    # that envelope (structural bugs would exceed it by orders of magnitude).
    # Re-tighten to 1e-2 if precision=HIGH/HIGHEST is restored in the kernel.
    np.testing.assert_allclose(np.asarray(out), np.asarray(ref),
                               rtol=5e-2, atol=5e-2)
    print("KERNEL_OK")
</pallas_src>

<mosaic_0001>
module attributes {stable_mosaic.version = 11 : i64} {
  func.func @st_block_kernel(%arg0: i32, %arg1: memref<128x16xf32, #tpu.memory_space<vmem>>, %arg2: memref<16x16xf32, #tpu.memory_space<vmem>>, %arg3: memref<16x16xf32, #tpu.memory_space<vmem>>, %arg4: memref<16x16xf32, #tpu.memory_space<vmem>>, %arg5: memref<16x1xf32, #tpu.memory_space<vmem>>, %arg6: memref<1x16xf32, #tpu.memory_space<vmem>>, %arg7: memref<3x16x16xf32, #tpu.memory_space<vmem>>, %arg8: memref<1x16xf32, #tpu.memory_space<vmem>>, %arg9: memref<16x16xf32, #tpu.memory_space<vmem>>, %arg10: memref<1xf32, #tpu.memory_space<smem>>, %arg11: memref<1x16x128xf32, #tpu.memory_space<vmem>>, %arg12: memref<2x128x16xf32, #tpu.memory_space<vmem>>) attributes {dimension_semantics = [#tpu.dimension_semantics<parallel>], iteration_bounds = array<i64: 2>, scalar_prefetch = 0 : i64, scratch_operands = 1 : i64, tpu.core_type = #tpu.core_type<tc>, window_params = [{transform_indices = @transform_0, window_bounds = array<i64: 128, 16>}, {pipeline_mode = #tpu.pipeline_mode<synchronous>, transform_indices = @transform_1, window_bounds = array<i64: 16, 16>}, {pipeline_mode = #tpu.pipeline_mode<synchronous>, transform_indices = @transform_2, window_bounds = array<i64: 16, 16>}, {pipeline_mode = #tpu.pipeline_mode<synchronous>, transform_indices = @transform_3, window_bounds = array<i64: 16, 16>}, {pipeline_mode = #tpu.pipeline_mode<synchronous>, transform_indices = @transform_4, window_bounds = array<i64: 16, 1>}, {pipeline_mode = #tpu.pipeline_mode<synchronous>, transform_indices = @transform_5, window_bounds = array<i64: 1, 16>}, {pipeline_mode = #tpu.pipeline_mode<synchronous>, transform_indices = @transform_6, window_bounds = array<i64: 3, 16, 16>}, {pipeline_mode = #tpu.pipeline_mode<synchronous>, transform_indices = @transform_7, window_bounds = array<i64: 1, 16>}, {pipeline_mode = #tpu.pipeline_mode<synchronous>, transform_indices = @transform_8, window_bounds = array<i64: 16, 16>}, {transform_indices = @transform_9, window_bounds = array<i64: 1>}, {transform_indices = @transform_10, window_bounds = array<i64: 1, 16, 128>}]} {
    %c0 = arith.constant 0 : index
    %c0_0 = arith.constant 0 : index
    %0 = vector.load %arg2[%c0, %c0_0] : memref<16x16xf32, #tpu.memory_space<vmem>>, vector<16x16xf32>
    %c0_1 = arith.constant 0 : index
    %c0_2 = arith.constant 0 : index
    %1 = vector.load %arg3[%c0_1, %c0_2] : memref<16x16xf32, #tpu.memory_space<vmem>>, vector<16x16xf32>
    %c0_3 = arith.constant 0 : index
    %c0_4 = arith.constant 0 : index
    %2 = vector.load %arg4[%c0_3, %c0_4] : memref<16x16xf32, #tpu.memory_space<vmem>>, vector<16x16xf32>
    %c0_5 = arith.constant 0 : index
    %c0_6 = arith.constant 0 : index
    %3 = vector.load %arg1[%c0_5, %c0_6] : memref<128x16xf32, #tpu.memory_space<vmem>>, vector<128x16xf32>
    %c0_7 = arith.constant 0 : index
    %c0_8 = arith.constant 0 : index
    %4 = vector.load %arg5[%c0_7, %c0_8] : memref<16x1xf32, #tpu.memory_space<vmem>>, vector<16x1xf32>
    %cst = arith.constant dense<0.000000e+00> : vector<128x1xf32>
    %5 = tpu.matmul %3, %4, %cst {dimension_numbers = #tpu.dot_dimension_numbers<[1], [0], [0], [1], [0, 0, 1, 1], [], []>} : vector<128x16xf32>, vector<16x1xf32>, vector<128x1xf32> -> vector<128x1xf32>
    %c0_9 = arith.constant 0 : index
    %c0_10 = arith.constant 0 : index
    %6 = vector.load %arg6[%c0_9, %c0_10] : memref<1x16xf32, #tpu.memory_space<vmem>>, vector<1x16xf32>
    %cst_11 = arith.constant dense<0.000000e+00> : vector<1x128xf32>
    %7 = tpu.matmul %6, %3, %cst_11 {dimension_numbers = #tpu.dot_dimension_numbers<[1], [1], [0], [0], [0, 0, 1, 0], [], []>} : vector<1x16xf32>, vector<128x16xf32>, vector<1x128xf32> -> vector<1x128xf32>
    %8 = vector.extract_strided_slice %3 {offsets = [0, 0], sizes = [16, 16], strides = [1, 1]} : vector<128x16xf32> to vector<16x16xf32>
    %9 = vector.extract_strided_slice %5 {offsets = [0, 0], sizes = [16, 1], strides = [1, 1]} : vector<128x1xf32> to vector<16x1xf32>
    %10 = vector.extract_strided_slice %7 {offsets = [0, 0], sizes = [1, 16], strides = [1, 1]} : vector<1x128xf32> to vector<1x16xf32>
    %11 = vector.broadcast %9 : vector<16x1xf32> to vector<16x16xf32>
    %12 = vector.broadcast %10 : vector<1x16xf32> to vector<16x16xf32>
    %13 = arith.mulf %11, %12 : vector<16x16xf32>
    %14 = arith.addf %13, %2 : vector<16x16xf32>
    %cst_12 = arith.constant dense<0xFF800000> : vector<16xf32>
    %15 = vector.multi_reduction <maximumf>, %14, %cst_12 [0] : vector<16x16xf32> to vector<16xf32>
    %16 = vector.shape_cast %15 : vector<16xf32> to vector<1x16xf32>
    %17 = vector.broadcast %16 : vector<1x16xf32> to vector<16x16xf32>
    %18 = arith.subf %14, %17 : vector<16x16xf32>
    %19 = math.exp %18 : vector<16x16xf32>
    %cst_13 = arith.constant dense<0.000000e+00> : vector<16xf32>
    %20 = vector.multi_reduction <add>, %19, %cst_13 [0] : vector<16x16xf32> to vector<16xf32>
    %21 = vector.shape_cast %20 : vector<16xf32> to vector<1x16xf32>
    %22 = tpu.reciprocal %21 {approx = true} : vector<1x16xf32> -> vector<1x16xf32>
    %23 = vector.broadcast %22 : vector<1x16xf32> to vector<16x16xf32>
    %24 = arith.mulf %19, %23 : vector<16x16xf32>
    %cst_14 = arith.constant dense<0.000000e+00> : vector<16x16xf32>
    %25 = tpu.matmul %1, %24, %cst_14 {dimension_numbers = #tpu.dot_dimension_numbers<[1], [0], [0], [1], [0, 0, 1, 1], [], []>} : vector<16x16xf32>, vector<16x16xf32>, vector<16x16xf32> -> vector<16x16xf32>
    %cst_15 = arith.constant dense<0xFF800000> : vector<16xf32>
    %26 = vector.multi_reduction <maximumf>, %25, %cst_15 [0] : vector<16x16xf32> to vector<16xf32>
    %27 = vector.shape_cast %26 : vector<16xf32> to vector<1x16xf32>
    %28 = vector.broadcast %27 : vector<1x16xf32> to vector<16x16xf32>
    %29 = arith.subf %25, %28 : vector<16x16xf32>
    %30 = math.exp %29 : vector<16x16xf32>
    %cst_16 = arith.constant dense<0.000000e+00> : vector<16xf32>
    %31 = vector.multi_reduction <add>, %30, %cst_16 [0] : vector<16x16xf32> to vector<16xf32>
    %32 = vector.shape_cast %31 : vector<16xf32> to vector<1x16xf32>
    %33 = tpu.reciprocal %32 {approx = true} : vector<1x16xf32> -> vector<1x16xf32>
    %34 = vector.broadcast %33 : vector<1x16xf32> to vector<16x16xf32>
    %35 = arith.mulf %30, %34 : vector<16x16xf32>
    %36 = arith.mulf %0, %35 : vector<16x16xf32>
    %cst_17 = arith.constant dense<0.000000e+00> : vector<16xf32>
    %37 = vector.multi_reduction <add>, %36, %cst_17 [1] : vector<16x16xf32> to vector<16xf32>
    %38 = vector.shape_cast %37 : vector<16xf32> to vector<16x1xf32>
    %cst_18 = arith.constant 0.000000e+00 : f32
    %39 = vector.broadcast %cst_18 : f32 to vector<16x1xf32>
    %40 = arith.cmpf ogt, %38, %39 : vector<16x1xf32>
    %41 = math.rsqrt %38 : vector<16x1xf32>
    %cst_19 = arith.constant 0.000000e+00 : f32
    %42 = vector.broadcast %cst_19 : f32 to vector<16x1xf32>
    %43 = arith.select %40, %41, %42 : vector<16x1xi1>, vector<16x1xf32>
    %cst_20 = arith.constant 0.000000e+00 : f32
    %44 = vector.broadcast %cst_20 : f32 to vector<16x1xf32>
    %45 = arith.subf %44, %43 : vector<16x1xf32>
    %46 = vector.broadcast %43 : vector<16x1xf32> to vector<16x16xf32>
    %47 = arith.mulf %46, %36 : vector<16x16xf32>
    %48 = tpu.transpose %47, [1, 0] : vector<16x16xf32> -> vector<16x16xf32>
    %49 = vector.broadcast %45 : vector<16x1xf32> to vector<16x16xf32>
    %50 = arith.mulf %49, %48 : vector<16x16xf32>
    %cst_21 = arith.constant dense<0.000000e+00> : vector<16x16xf32>
    %51 = tpu.matmul %50, %8, %cst_21 {dimension_numbers = #tpu.dot_dimension_numbers<[1], [0], [0], [1], [0, 0, 1, 1], [], []>} : vector<16x16xf32>, vector<16x16xf32>, vector<16x16xf32> -> vector<16x16xf32>
    %c0_22 = arith.constant 0 : index
    %c0_23 = arith.constant 0 : index
    %c0_24 = arith.constant 0 : index
    %52 = vector.load %arg12[%c0_22, %c0_23, %c0_24] : memref<2x128x16xf32, #tpu.memory_space<vmem>>, vector<1x16x16xf32>
    %53 = vector.shape_cast %52 : vector<1x16x16xf32> to vector<16x16xf32>
    %54 = vector.shape_cast %51 : vector<16x16xf32> to vector<1x16x16xf32>
    tpu.vector_store %arg12[%c0_22, %c0_23, %c0_24], %54 {strides = array<i32>} : memref<2x128x16xf32, #tpu.memory_space<vmem>>, vector<1x16x16xf32>,
    %cst_25 = arith.constant dense<0.000000e+00> : vector<16x16xf32>
    %55 = tpu.matmul %50, %51, %cst_25 {dimension_numbers = #tpu.dot_dimension_numbers<[1], [0], [0], [1], [0, 0, 1, 1], [], []>} : vector<16x16xf32>, vector<16x16xf32>, vector<16x16xf32> -> vector<16x16xf32>
    %cst_26 = arith.constant 2.000000e+00 : f32
    %56 = vector.broadcast %cst_26 : f32 to vector<16x16xf32>
    %57 = arith.mulf %56, %55 : vector<16x16xf32>
    %58 = arith.subf %57, %8 : vector<16x16xf32>
    %c1 = arith.constant 1 : index
    %c0_27 = arith.constant 0 : index
    %c0_28 = arith.constant 0 : index
    %59 = vector.load %arg12[%c1, %c0_27, %c0_28] : memref<2x128x16xf32, #tpu.memory_space<vmem>>, vector<1x16x16xf32>
    %60 = vector.shape_cast %59 : vector<1x16x16xf32> to vector<16x16xf32>
    %61 = vector.shape_cast %58 : vector<16x16xf32> to vector<1x16x16xf32>
    tpu.vector_store %arg12[%c1, %c0_27, %c0_28], %61 {strides = array<i32>} : memref<2x128x16xf32, #tpu.memory_space<vmem>>, vector<1x16x16xf32>,
    %62 = vector.extract_strided_slice %3 {offsets = [16, 0], sizes = [16, 16], strides = [1, 1]} : vector<128x16xf32> to vector<16x16xf32>
    %63 = vector.extract_strided_slice %5 {offsets = [16, 0], sizes = [16, 1], strides = [1, 1]} : vector<128x1xf32> to vector<16x1xf32>
    %64 = vector.extract_strided_slice %7 {offsets = [0, 16], sizes = [1, 16], strides = [1, 1]} : vector<1x128xf32> to vector<1x16xf32>
    %65 = vector.broadcast %63 : vector<16x1xf32> to vector<16x16xf32>
    %66 = vector.broadcast %64 : vector<1x16xf32> to vector<16x16xf32>
    %67 = arith.mulf %65, %66 : vector<16x16xf32>
    %68 = arith.addf %67, %2 : vector<16x16xf32>
    %cst_29 = arith.constant dense<0xFF800000> : vector<16xf32>
    %69 = vector.multi_reduction <maximumf>, %68, %cst_29 [0] : vector<16x16xf32> to vector<16xf32>
    %70 = vector.shape_cast %69 : vector<16xf32> to vector<1x16xf32>
    %71 = vector.broadcast %70 : vector<1x16xf32> to vector<16x16xf32>
    %72 = arith.subf %68, %71 : vector<16x16xf32>
    %73 = math.exp %72 : vector<16x16xf32>
    %cst_30 = arith.constant dense<0.000000e+00> : vector<16xf32>
    %74 = vector.multi_reduction <add>, %73, %cst_30 [0] : vector<16x16xf32> to vector<16xf32>
    %75 = vector.shape_cast %74 : vector<16xf32> to vector<1x16xf32>
    %76 = tpu.reciprocal %75 {approx = true} : vector<1x16xf32> -> vector<1x16xf32>
    %77 = vector.broadcast %76 : vector<1x16xf32> to vector<16x16xf32>
    %78 = arith.mulf %73, %77 : vector<16x16xf32>
    %cst_31 = arith.constant dense<0.000000e+00> : vector<16x16xf32>
    %79 = tpu.matmul %1, %78, %cst_31 {dimension_numbers = #tpu.dot_dimension_numbers<[1], [0], [0], [1], [0, 0, 1, 1], [], []>} : vector<16x16xf32>, vector<16x16xf32>, vector<16x16xf32> -> vector<16x16xf32>
    %cst_32 = arith.constant dense<0xFF800000> : vector<16xf32>
    %80 = vector.multi_reduction <maximumf>, %79, %cst_32 [0] : vector<16x16xf32> to vector<16xf32>
    %81 = vector.shape_cast %80 : vector<16xf32> to vector<1x16xf32>
    %82 = vector.broadcast %81 : vector<1x16xf32> to vector<16x16xf32>
    %83 = arith.subf %79, %82 : vector<16x16xf32>
    %84 = math.exp %83 : vector<16x16xf32>
    %cst_33 = arith.constant dense<0.000000e+00> : vector<16xf32>
    %85 = vector.multi_reduction <add>, %84, %cst_33 [0] : vector<16x16xf32> to vector<16xf32>
    %86 = vector.shape_cast %85 : vector<16xf32> to vector<1x16xf32>
    %87 = tpu.reciprocal %86 {approx = true} : vector<1x16xf32> -> vector<1x16xf32>
    %88 = vector.broadcast %87 : vector<1x16xf32> to vector<16x16xf32>
    %89 = arith.mulf %84, %88 : vector<16x16xf32>
    %90 = arith.mulf %0, %89 : vector<16x16xf32>
    %cst_34 = arith.constant dense<0.000000e+00> : vector<16xf32>
    %91 = vector.multi_reduction <add>, %90, %cst_34 [1] : vector<16x16xf32> to vector<16xf32>
    %92 = vector.shape_cast %91 : vector<16xf32> to vector<16x1xf32>
    %cst_35 = arith.constant 0.000000e+00 : f32
    %93 = vector.broadcast %cst_35 : f32 to vector<16x1xf32>
    %94 = arith.cmpf ogt, %92, %93 : vector<16x1xf32>
    %95 = math.rsqrt %92 : vector<16x1xf32>
    %cst_36 = arith.constant 0.000000e+00 : f32
    %96 = vector.broadcast %cst_36 : f32 to vector<16x1xf32>
    %97 = arith.select %94, %95, %96 : vector<16x1xi1>, vector<16x1xf32>
    %cst_37 = arith.constant 0.000000e+00 : f32
    %98 = vector.broadcast %cst_37 : f32 to vector<16x1xf32>
    %99 = arith.subf %98, %97 : vector<16x1xf32>
    %100 = vector.broadcast %97 : vector<16x1xf32> to vector<16x16xf32>
    %101 = arith.mulf %100, %90 : vector<16x16xf32>
    %102 = tpu.transpose %101, [1, 0] : vector<16x16xf32> -> vector<16x16xf32>
    %103 = vector.broadcast %99 : vector<16x1xf32> to vector<16x16xf32>
    %104 = arith.mulf %103, %102 : vector<16x16xf32>
    %cst_38 = arith.constant dense<0.000000e+00> : vector<16x16xf32>
    %105 = tpu.matmul %104, %62, %cst_38 {dimension_numbers = #tpu.dot_dimension_numbers<[1], [0], [0], [1], [0, 0, 1, 1], [], []>} : vector<16x16xf32>, vector<16x16xf32>, vector<16x16xf32> -> vector<16x16xf32>
    %c0_39 = arith.constant 0 : index
    %c16 = arith.constant 16 : index
    %c0_40 = arith.constant 0 : index
    %106 = vector.load %arg12[%c0_39, %c16, %c0_40] : memref<2x128x16xf32, #tpu.memory_space<vmem>>, vector<1x16x16xf32>
    %107 = vector.shape_cast %106 : vector<1x16x16xf32> to vector<16x16xf32>
    %108 = vector.shape_cast %105 : vector<16x16xf32> to vector<1x16x16xf32>
    tpu.vector_store %arg12[%c0_39, %c16, %c0_40], %108 {strides = array<i32>} : memref<2x128x16xf32, #tpu.memory_space<vmem>>, vector<1x16x16xf32>,
    %cst_41 = arith.constant dense<0.000000e+00> : vector<16x16xf32>
    %109 = tpu.matmul %104, %105, %cst_41 {dimension_numbers = #tpu.dot_dimension_numbers<[1], [0], [0], [1], [0, 0, 1, 1], [], []>} : vector<16x16xf32>, vector<16x16xf32>, vector<16x16xf32> -> vector<16x16xf32>
    %cst_42 = arith.constant 2.000000e+00 : f32
    %110 = vector.broadcast %cst_42 : f32 to vector<16x16xf32>
    %111 = arith.mulf %110, %109 : vector<16x16xf32>
    %112 = arith.subf %111, %62 : vector<16x16xf32>
    %c1_43 = arith.constant 1 : index
    %c16_44 = arith.constant 16 : index
    %c0_45 = arith.constant 0 : index
    %113 = vector.load %arg12[%c1_43, %c16_44, %c0_45] : memref<2x128x16xf32, #tpu.memory_space<vmem>>, vector<1x16x16xf32>
    %114 = vector.shape_cast %113 : vector<1x16x16xf32> to vector<16x16xf32>
    %115 = vector.shape_cast %112 : vector<16x16xf32> to vector<1x16x16xf32>
    tpu.vector_store %arg12[%c1_43, %c16_44, %c0_45], %115 {strides = array<i32>} : memref<2x128x16xf32, #tpu.memory_space<vmem>>, vector<1x16x16xf32>,
    %116 = vector.extract_strided_slice %3 {offsets = [32, 0], sizes = [16, 16], strides = [1, 1]} : vector<128x16xf32> to vector<16x16xf32>
    %117 = vector.extract_strided_slice %5 {offsets = [32, 0], sizes = [16, 1], strides = [1, 1]} : vector<128x1xf32> to vector<16x1xf32>
    %118 = vector.extract_strided_slice %7 {offsets = [0, 32], sizes = [1, 16], strides = [1, 1]} : vector<1x128xf32> to vector<1x16xf32>
    %119 = vector.broadcast %117 : vector<16x1xf32> to vector<16x16xf32>
    %120 = vector.broadcast %118 : vector<1x16xf32> to vector<16x16xf32>
    %121 = arith.mulf %119, %120 : vector<16x16xf32>
    %122 = arith.addf %121, %2 : vector<16x16xf32>
    %cst_46 = arith.constant dense<0xFF800000> : vector<16xf32>
    %123 = vector.multi_reduction <maximumf>, %122, %cst_46 [0] : vector<16x16xf32> to vector<16xf32>
    %124 = vector.shape_cast %123 : vector<16xf32> to vector<1x16xf32>
    %125 = vector.broadcast %124 : vector<1x16xf32> to vector<16x16xf32>
    %126 = arith.subf %122, %125 : vector<16x16xf32>
    %127 = math.exp %126 : vector<16x16xf32>
    %cst_47 = arith.constant dense<0.000000e+00> : vector<16xf32>
    %128 = vector.multi_reduction <add>, %127, %cst_47 [0] : vector<16x16xf32> to vector<16xf32>
    %129 = vector.shape_cast %128 : vector<16xf32> to vector<1x16xf32>
    %130 = tpu.reciprocal %129 {approx = true} : vector<1x16xf32> -> vector<1x16xf32>
    %131 = vector.broadcast %130 : vector<1x16xf32> to vector<16x16xf32>
    %132 = arith.mulf %127, %131 : vector<16x16xf32>
    %cst_48 = arith.constant dense<0.000000e+00> : vector<16x16xf32>
    %133 = tpu.matmul %1, %132, %cst_48 {dimension_numbers = #tpu.dot_dimension_numbers<[1], [0], [0], [1], [0, 0, 1, 1], [], []>} : vector<16x16xf32>, vector<16x16xf32>, vector<16x16xf32> -> vector<16x16xf32>
    %cst_49 = arith.constant dense<0xFF800000> : vector<16xf32>
    %134 = vector.multi_reduction <maximumf>, %133, %cst_49 [0] : vector<16x16xf32> to vector<16xf32>
    %135 = vector.shape_cast %134 : vector<16xf32> to vector<1x16xf32>
    %136 = vector.broadcast %135 : vector<1x16xf32> to vector<16x16xf32>
    %137 = arith.subf %133, %136 : vector<16x16xf32>
    %138 = math.exp %137 : vector<16x16xf32>
    %cst_50 = arith.constant dense<0.000000e+00> : vector<16xf32>
    %139 = vector.multi_reduction <add>, %138, %cst_50 [0] : vector<16x16xf32> to vector<16xf32>
    %140 = vector.shape_cast %139 : vector<16xf32> to vector<1x16xf32>
    %141 = tpu.reciprocal %140 {approx = true} : vector<1x16xf32> -> vector<1x16xf32>
    %142 = vector.broadcast %141 : vector<1x16xf32> to vector<16x16xf32>
    %143 = arith.mulf %138, %142 : vector<16x16xf32>
    %144 = arith.mulf %0, %143 : vector<16x16xf32>
    %cst_51 = arith.constant dense<0.000000e+00> : vector<16xf32>
    %145 = vector.multi_reduction <add>, %144, %cst_51 [1] : vector<16x16xf32> to vector<16xf32>
    %146 = vector.shape_cast %145 : vector<16xf32> to vector<16x1xf32>
    %cst_52 = arith.constant 0.000000e+00 : f32
    %147 = vector.broadcast %cst_52 : f32 to vector<16x1xf32>
    %148 = arith.cmpf ogt, %146, %147 : vector<16x1xf32>
    %149 = math.rsqrt %146 : vector<16x1xf32>
    %cst_53 = arith.constant 0.000000e+00 : f32
    %150 = vector.broadcast %cst_53 : f32 to vector<16x1xf32>
    %151 = arith.select %148, %149, %150 : vector<16x1xi1>, vector<16x1xf32>
    %cst_54 = arith.constant 0.000000e+00 : f32
    %152 = vector.broadcast %cst_54 : f32 to vector<16x1xf32>
    %153 = arith.subf %152, %151 : vector<16x1xf32>
    %154 = vector.broadcast %151 : vector<16x1xf32> to vector<16x16xf32>
    %155 = arith.mulf %154, %144 : vector<16x16xf32>
    %156 = tpu.transpose %155, [1, 0] : vector<16x16xf32> -> vector<16x16xf32>
    %157 = vector.broadcast %153 : vector<16x1xf32> to vector<16x16xf32>
    %158 = arith.mulf %157, %156 : vector<16x16xf32>
    %cst_55 = arith.constant dense<0.000000e+00> : vector<16x16xf32>
    %159 = tpu.matmul %158, %116, %cst_55 {dimension_numbers = #tpu.dot_dimension_numbers<[1], [0], [0], [1], [0, 0, 1, 1], [], []>} : vector<16x16xf32>, vector<16x16xf32>, vector<16x16xf32> -> vector<16x16xf32>
    %c0_56 = arith.constant 0 : index
    %c32 = arith.constant 32 : index
    %c0_57 = arith.constant 0 : index
    %160 = vector.load %arg12[%c0_56, %c32, %c0_57] : memref<2x128x16xf32, #tpu.memory_space<vmem>>, vector<1x16x16xf32>
    %161 = vector.shape_cast %160 : vector<1x16x16xf32> to vector<16x16xf32>
    %162 = vector.shape_cast %159 : vector<16x16xf32> to vector<1x16x16xf32>
    tpu.vector_store %arg12[%c0_56, %c32, %c0_57], %162 {strides = array<i32>} : memref<2x128x16xf32, #tpu.memory_space<vmem>>, vector<1x16x16xf32>,
    %cst_58 = arith.constant dense<0.000000e+00> : vector<16x16xf32>
    %163 = tpu.matmul %158, %159, %cst_58 {dimension_numbers = #tpu.dot_dimension_numbers<[1], [0], [0], [1], [0, 0, 1, 1], [], []>} : vector<16x16xf32>, vector<16x16xf32>, vector<16x16xf32> -> vector<16x16xf32>
    %cst_59 = arith.constant 2.000000e+00 : f32
    %164 = vector.broadcast %cst_59 : f32 to vector<16x16xf32>
    %165 = arith.mulf %164, %163 : vector<16x16xf32>
    %166 = arith.subf %165, %116 : vector<16x16xf32>
    %c1_60 = arith.constant 1 : index
    %c32_61 = arith.constant 32 : index
    %c0_62 = arith.constant 0 : index
    %167 = vector.load %arg12[%c1_60, %c32_61, %c0_62] : memref<2x128x16xf32, #tpu.memory_space<vmem>>, vector<1x16x16xf32>
    %168 = vector.shape_cast %167 : vector<1x16x16xf32> to vector<16x16xf32>
    %169 = vector.shape_cast %166 : vector<16x16xf32> to vector<1x16x16xf32>
    tpu.vector_store %arg12[%c1_60, %c32_61, %c0_62], %169 {strides = array<i32>} : memref<2x128x16xf32, #tpu.memory_space<vmem>>, vector<1x16x16xf32>,
    %170 = vector.extract_strided_slice %3 {offsets = [48, 0], sizes = [16, 16], strides = [1, 1]} : vector<128x16xf32> to vector<16x16xf32>
    %171 = vector.extract_strided_slice %5 {offsets = [48, 0], sizes = [16, 1], strides = [1, 1]} : vector<128x1xf32> to vector<16x1xf32>
    %172 = vector.extract_strided_slice %7 {offsets = [0, 48], sizes = [1, 16], strides = [1, 1]} : vector<1x128xf32> to vector<1x16xf32>
    %173 = vector.broadcast %171 : vector<16x1xf32> to vector<16x16xf32>
    %174 = vector.broadcast %172 : vector<1x16xf32> to vector<16x16xf32>
    %175 = arith.mulf %173, %174 : vector<16x16xf32>
    %176 = arith.addf %175, %2 : vector<16x16xf32>
    %cst_63 = arith.constant dense<0xFF800000> : vector<16xf32>
    %177 = vector.multi_reduction <maximumf>, %176, %cst_63 [0] : vector<16x16xf32> to vector<16xf32>
    %178 = vector.shape_cast %177 : vector<16xf32> to vector<1x16xf32>
    %179 = vector.broadcast %178 : vector<1x16xf32> to vector<16x16xf32>
    %180 = arith.subf %176, %179 : vector<16x16xf32>
    %181 = math.exp %180 : vector<16x16xf32>
    %cst_64 = arith.constant dense<0.000000e+00> : vector<16xf32>
    %182 = vector.multi_reduction <add>, %181, %cst_64 [0] : vector<16x16xf32> to vector<16xf32>
    %183 = vector.shape_cast %182 : vector<16xf32> to vector<1x16xf32>
    %184 = tpu.reciprocal %183 {approx = true} : vector<1x16xf32> -> vector<1x16xf32>
    %185 = vector.broadcast %184 : vector<1x16xf32> to vector<16x16xf32>
    %186 = arith.mulf %181, %185 : vector<16x16xf32>
    %cst_65 = arith.constant dense<0.000000e+00> : vector<16x16xf32>
    %187 = tpu.matmul %1, %186, %cst_65 {dimension_numbers = #tpu.dot_dimension_numbers<[1], [0], [0], [1], [0, 0, 1, 1], [], []>} : vector<16x16xf32>, vector<16x16xf32>, vector<16x16xf32> -> vector<16x16xf32>
    %cst_66 = arith.constant dense<0xFF800000> : vector<16xf32>
    %188 = vector.multi_reduction <maximumf>, %187, %cst_66 [0] : vector<16x16xf32> to vector<16xf32>
    %189 = vector.shape_cast %188 : vector<16xf32> to vector<1x16xf32>
    %190 = vector.broadcast %189 : vector<1x16xf32> to vector<16x16xf32>
    %191 = arith.subf %187, %190 : vector<16x16xf32>
    %192 = math.exp %191 : vector<16x16xf32>
    %cst_67 = arith.constant dense<0.000000e+00> : vector<16xf32>
    %193 = vector.multi_reduction <add>, %192, %cst_67 [0] : vector<16x16xf32> to vector<16xf32>
    %194 = vector.shape_cast %193 : vector<16xf32> to vector<1x16xf32>
    %195 = tpu.reciprocal %194 {approx = true} : vector<1x16xf32> -> vector<1x16xf32>
    %196 = vector.broadcast %195 : vector<1x16xf32> to vector<16x16xf32>
    %197 = arith.mulf %192, %196 : vector<16x16xf32>
    %198 = arith.mulf %0, %197 : vector<16x16xf32>
    %cst_68 = arith.constant dense<0.000000e+00> : vector<16xf32>
    %199 = vector.multi_reduction <add>, %198, %cst_68 [1] : vector<16x16xf32> to vector<16xf32>
    %200 = vector.shape_cast %199 : vector<16xf32> to vector<16x1xf32>
    %cst_69 = arith.constant 0.000000e+00 : f32
    %201 = vector.broadcast %cst_69 : f32 to vector<16x1xf32>
    %202 = arith.cmpf ogt, %200, %201 : vector<16x1xf32>
    %203 = math.rsqrt %200 : vector<16x1xf32>
    %cst_70 = arith.constant 0.000000e+00 : f32
    %204 = vector.broadcast %cst_70 : f32 to vector<16x1xf32>
    %205 = arith.select %202, %203, %204 : vector<16x1xi1>, vector<16x1xf32>
    %cst_71 = arith.constant 0.000000e+00 : f32
    %206 = vector.broadcast %cst_71 : f32 to vector<16x1xf32>
    %207 = arith.subf %206, %205 : vector<16x1xf32>
    %208 = vector.broadcast %205 : vector<16x1xf32> to vector<16x16xf32>
    %209 = arith.mulf %208, %198 : vector<16x16xf32>
    %210 = tpu.transpose %209, [1, 0] : vector<16x16xf32> -> vector<16x16xf32>
    %211 = vector.broadcast %207 : vector<16x1xf32> to vector<16x16xf32>
    %212 = arith.mulf %211, %210 : vector<16x16xf32>
    %cst_72 = arith.constant dense<0.000000e+00> : vector<16x16xf32>
    %213 = tpu.matmul %212, %170, %cst_72 {dimension_numbers = #tpu.dot_dimension_numbers<[1], [0], [0], [1], [0, 0, 1, 1], [], []>} : vector<16x16xf32>, vector<16x16xf32>, vector<16x16xf32> -> vector<16x16xf32>
    %c0_73 = arith.constant 0 : index
    %c48 = arith.constant 48 : index
    %c0_74 = arith.constant 0 : index
    %214 = vector.load %arg12[%c0_73, %c48, %c0_74] : memref<2x128x16xf32, #tpu.memory_space<vmem>>, vector<1x16x16xf32>
    %215 = vector.shape_cast %214 : vector<1x16x16xf32> to vector<16x16xf32>
    %216 = vector.shape_cast %213 : vector<16x16xf32> to vector<1x16x16xf32>
    tpu.vector_store %arg12[%c0_73, %c48, %c0_74], %216 {strides = array<i32>} : memref<2x128x16xf32, #tpu.memory_space<vmem>>, vector<1x16x16xf32>,
    %cst_75 = arith.constant dense<0.000000e+00> : vector<16x16xf32>
    %217 = tpu.matmul %212, %213, %cst_75 {dimension_numbers = #tpu.dot_dimension_numbers<[1], [0], [0], [1], [0, 0, 1, 1], [], []>} : vector<16x16xf32>, vector<16x16xf32>, vector<16x16xf32> -> vector<16x16xf32>
    %cst_76 = arith.constant 2.000000e+00 : f32
    %218 = vector.broadcast %cst_76 : f32 to vector<16x16xf32>
    %219 = arith.mulf %218, %217 : vector<16x16xf32>
    %220 = arith.subf %219, %170 : vector<16x16xf32>
    %c1_77 = arith.constant 1 : index
    %c48_78 = arith.constant 48 : index
    %c0_79 = arith.constant 0 : index
    %221 = vector.load %arg12[%c1_77, %c48_78, %c0_79] : memref<2x128x16xf32, #tpu.memory_space<vmem>>, vector<1x16x16xf32>
    %222 = vector.shape_cast %221 : vector<1x16x16xf32> to vector<16x16xf32>
    %223 = vector.shape_cast %220 : vector<16x16xf32> to vector<1x16x16xf32>
    tpu.vector_store %arg12[%c1_77, %c48_78, %c0_79], %223 {strides = array<i32>} : memref<2x128x16xf32, #tpu.memory_space<vmem>>, vector<1x16x16xf32>,
    %224 = vector.extract_strided_slice %3 {offsets = [64, 0], sizes = [16, 16], strides = [1, 1]} : vector<128x16xf32> to vector<16x16xf32>
    %225 = vector.extract_strided_slice %5 {offsets = [64, 0], sizes = [16, 1], strides = [1, 1]} : vector<128x1xf32> to vector<16x1xf32>
    %226 = vector.extract_strided_slice %7 {offsets = [0, 64], sizes = [1, 16], strides = [1, 1]} : vector<1x128xf32> to vector<1x16xf32>
    %227 = vector.broadcast %225 : vector<16x1xf32> to vector<16x16xf32>
    %228 = vector.broadcast %226 : vector<1x16xf32> to vector<16x16xf32>
    %229 = arith.mulf %227, %228 : vector<16x16xf32>
    %230 = arith.addf %229, %2 : vector<16x16xf32>
    %cst_80 = arith.constant dense<0xFF800000> : vector<16xf32>
    %231 = vector.multi_reduction <maximumf>, %230, %cst_80 [0] : vector<16x16xf32> to vector<16xf32>
    %232 = vector.shape_cast %231 : vector<16xf32> to vector<1x16xf32>
    %233 = vector.broadcast %232 : vector<1x16xf32> to vector<16x16xf32>
    %234 = arith.subf %230, %233 : vector<16x16xf32>
    %235 = math.exp %234 : vector<16x16xf32>
    %cst_81 = arith.constant dense<0.000000e+00> : vector<16xf32>
    %236 = vector.multi_reduction <add>, %235, %cst_81 [0] : vector<16x16xf32> to vector<16xf32>
    %237 = vector.shape_cast %236 : vector<16xf32> to vector<1x16xf32>
    %238 = tpu.reciprocal %237 {approx = true} : vector<1x16xf32> -> vector<1x16xf32>
    %239 = vector.broadcast %238 : vector<1x16xf32> to vector<16x16xf32>
    %240 = arith.mulf %235, %239 : vector<16x16xf32>
    %cst_82 = arith.constant dense<0.000000e+00> : vector<16x16xf32>
    %241 = tpu.matmul %1, %240, %cst_82 {dimension_numbers = #tpu.dot_dimension_numbers<[1], [0], [0], [1], [0, 0, 1, 1], [], []>} : vector<16x16xf32>, vector<16x16xf32>, vector<16x16xf32> -> vector<16x16xf32>
    %cst_83 = arith.constant dense<0xFF800000> : vector<16xf32>
    %242 = vector.multi_reduction <maximumf>, %241, %cst_83 [0] : vector<16x16xf32> to vector<16xf32>
    %243 = vector.shape_cast %242 : vector<16xf32> to vector<1x16xf32>
    %244 = vector.broadcast %243 : vector<1x16xf32> to vector<16x16xf32>
    %245 = arith.subf %241, %244 : vector<16x16xf32>
    %246 = math.exp %245 : vector<16x16xf32>
    %cst_84 = arith.constant dense<0.000000e+00> : vector<16xf32>
    %247 = vector.multi_reduction <add>, %246, %cst_84 [0] : vector<16x16xf32> to vector<16xf32>
    %248 = vector.shape_cast %247 : vector<16xf32> to vector<1x16xf32>
    %249 = tpu.reciprocal %248 {approx = true} : vector<1x16xf32> -> vector<1x16xf32>
    %250 = vector.broadcast %249 : vector<1x16xf32> to vector<16x16xf32>
    %251 = arith.mulf %246, %250 : vector<16x16xf32>
    %252 = arith.mulf %0, %251 : vector<16x16xf32>
    %cst_85 = arith.constant dense<0.000000e+00> : vector<16xf32>
    %253 = vector.multi_reduction <add>, %252, %cst_85 [1] : vector<16x16xf32> to vector<16xf32>
    %254 = vector.shape_cast %253 : vector<16xf32> to vector<16x1xf32>
    %cst_86 = arith.constant 0.000000e+00 : f32
    %255 = vector.broadcast %cst_86 : f32 to vector<16x1xf32>
    %256 = arith.cmpf ogt, %254, %255 : vector<16x1xf32>
    %257 = math.rsqrt %254 : vector<16x1xf32>
    %cst_87 = arith.constant 0.000000e+00 : f32
    %258 = vector.broadcast %cst_87 : f32 to vector<16x1xf32>
    %259 = arith.select %256, %257, %258 : vector<16x1xi1>, vector<16x1xf32>
    %cst_88 = arith.constant 0.000000e+00 : f32
    %260 = vector.broadcast %cst_88 : f32 to vector<16x1xf32>
    %261 = arith.subf %260, %259 : vector<16x1xf32>
    %262 = vector.broadcast %259 : vector<16x1xf32> to vector<16x16xf32>
    %263 = arith.mulf %262, %252 : vector<16x16xf32>
    %264 = tpu.transpose %263, [1, 0] : vector<16x16xf32> -> vector<16x16xf32>
    %265 = vector.broadcast %261 : vector<16x1xf32> to vector<16x16xf32>
    %266 = arith.mulf %265, %264 : vector<16x16xf32>
    %cst_89 = arith.constant dense<0.000000e+00> : vector<16x16xf32>
    %267 = tpu.matmul %266, %224, %cst_89 {dimension_numbers = #tpu.dot_dimension_numbers<[1], [0], [0], [1], [0, 0, 1, 1], [], []>} : vector<16x16xf32>, vector<16x16xf32>, vector<16x16xf32> -> vector<16x16xf32>
    %c0_90 = arith.constant 0 : index
    %c64 = arith.constant 64 : index
    %c0_91 = arith.constant 0 : index
    %268 = vector.load %arg12[%c0_90, %c64, %c0_91] : memref<2x128x16xf32, #tpu.memory_space<vmem>>, vector<1x16x16xf32>
    %269 = vector.shape_cast %268 : vector<1x16x16xf32> to vector<16x16xf32>
    %270 = vector.shape_cast %267 : vector<16x16xf32> to vector<1x16x16xf32>
    tpu.vector_store %arg12[%c0_90, %c64, %c0_91], %270 {strides = array<i32>} : memref<2x128x16xf32, #tpu.memory_space<vmem>>, vector<1x16x16xf32>,
    %cst_92 = arith.constant dense<0.000000e+00> : vector<16x16xf32>
    %271 = tpu.matmul %266, %267, %cst_92 {dimension_numbers = #tpu.dot_dimension_numbers<[1], [0], [0], [1], [0, 0, 1, 1], [], []>} : vector<16x16xf32>, vector<16x16xf32>, vector<16x16xf32> -> vector<16x16xf32>
    %cst_93 = arith.constant 2.000000e+00 : f32
    %272 = vector.broadcast %cst_93 : f32 to vector<16x16xf32>
    %273 = arith.mulf %272, %271 : vector<16x16xf32>
    %274 = arith.subf %273, %224 : vector<16x16xf32>
    %c1_94 = arith.constant 1 : index
    %c64_95 = arith.constant 64 : index
    %c0_96 = arith.constant 0 : index
    %275 = vector.load %arg12[%c1_94, %c64_95, %c0_96] : memref<2x128x16xf32, #tpu.memory_space<vmem>>, vector<1x16x16xf32>
    %276 = vector.shape_cast %275 : vector<1x16x16xf32> to vector<16x16xf32>
    %277 = vector.shape_cast %274 : vector<16x16xf32> to vector<1x16x16xf32>
    tpu.vector_store %arg12[%c1_94, %c64_95, %c0_96], %277 {strides = array<i32>} : memref<2x128x16xf32, #tpu.memory_space<vmem>>, vector<1x16x16xf32>,
    %278 = vector.extract_strided_slice %3 {offsets = [80, 0], sizes = [16, 16], strides = [1, 1]} : vector<128x16xf32> to vector<16x16xf32>
    %279 = vector.extract_strided_slice %5 {offsets = [80, 0], sizes = [16, 1], strides = [1, 1]} : vector<128x1xf32> to vector<16x1xf32>
    %280 = vector.extract_strided_slice %7 {offsets = [0, 80], sizes = [1, 16], strides = [1, 1]} : vector<1x128xf32> to vector<1x16xf32>
    %281 = vector.broadcast %279 : vector<16x1xf32> to vector<16x16xf32>
    %282 = vector.broadcast %280 : vector<1x16xf32> to vector<16x16xf32>
    %283 = arith.mulf %281, %282 : vector<16x16xf32>
    %284 = arith.addf %283, %2 : vector<16x16xf32>
    %cst_97 = arith.constant dense<0xFF800000> : vector<16xf32>
    %285 = vector.multi_reduction <maximumf>, %284, %cst_97 [0] : vector<16x16xf32> to vector<16xf32>
    %286 = vector.shape_cast %285 : vector<16xf32> to vector<1x16xf32>
    %287 = vector.broadcast %286 : vector<1x16xf32> to vector<16x16xf32>
    %288 = arith.subf %284, %287 : vector<16x16xf32>
    %289 = math.exp %288 : vector<16x16xf32>
    %cst_98 = arith.constant dense<0.000000e+00> : vector<16xf32>
    %290 = vector.multi_reduction <add>, %289, %cst_98 [0] : vector<16x16xf32> to vector<16xf32>
    %291 = vector.shape_cast %290 : vector<16xf32> to vector<1x16xf32>
    %292 = tpu.reciprocal %291 {approx = true} : vector<1x16xf32> -> vector<1x16xf32>
    %293 = vector.broadcast %292 : vector<1x16xf32> to vector<16x16xf32>
    %294 = arith.mulf %289, %293 : vector<16x16xf32>
    %cst_99 = arith.constant dense<0.000000e+00> : vector<16x16xf32>
    %295 = tpu.matmul %1, %294, %cst_99 {dimension_numbers = #tpu.dot_dimension_numbers<[1], [0], [0], [1], [0, 0, 1, 1], [], []>} : vector<16x16xf32>, vector<16x16xf32>, vector<16x16xf32> -> vector<16x16xf32>
    %cst_100 = arith.constant dense<0xFF800000> : vector<16xf32>
    %296 = vector.multi_reduction <maximumf>, %295, %cst_100 [0] : vector<16x16xf32> to vector<16xf32>
    %297 = vector.shape_cast %296 : vector<16xf32> to vector<1x16xf32>
    %298 = vector.broadcast %297 : vector<1x16xf32> to vector<16x16xf32>
    %299 = arith.subf %295, %298 : vector<16x16xf32>
    %300 = math.exp %299 : vector<16x16xf32>
    %cst_101 = arith.constant dense<0.000000e+00> : vector<16xf32>
    %301 = vector.multi_reduction <add>, %300, %cst_101 [0] : vector<16x16xf32> to vector<16xf32>
    %302 = vector.shape_cast %301 : vector<16xf32> to vector<1x16xf32>
    %303 = tpu.reciprocal %302 {approx = true} : vector<1x16xf32> -> vector<1x16xf32>
    %304 = vector.broadcast %303 : vector<1x16xf32> to vector<16x16xf32>
    %305 = arith.mulf %300, %304 : vector<16x16xf32>
    %306 = arith.mulf %0, %305 : vector<16x16xf32>
    %cst_102 = arith.constant dense<0.000000e+00> : vector<16xf32>
    %307 = vector.multi_reduction <add>, %306, %cst_102 [1] : vector<16x16xf32> to vector<16xf32>
    %308 = vector.shape_cast %307 : vector<16xf32> to vector<16x1xf32>
    %cst_103 = arith.constant 0.000000e+00 : f32
    %309 = vector.broadcast %cst_103 : f32 to vector<16x1xf32>
    %310 = arith.cmpf ogt, %308, %309 : vector<16x1xf32>
    %311 = math.rsqrt %308 : vector<16x1xf32>
    %cst_104 = arith.constant 0.000000e+00 : f32
    %312 = vector.broadcast %cst_104 : f32 to vector<16x1xf32>
    %313 = arith.select %310, %311, %312 : vector<16x1xi1>, vector<16x1xf32>
    %cst_105 = arith.constant 0.000000e+00 : f32
    %314 = vector.broadcast %cst_105 : f32 to vector<16x1xf32>
    %315 = arith.subf %314, %313 : vector<16x1xf32>
    %316 = vector.broadcast %313 : vector<16x1xf32> to vector<16x16xf32>
    %317 = arith.mulf %316, %306 : vector<16x16xf32>
    %318 = tpu.transpose %317, [1, 0] : vector<16x16xf32> -> vector<16x16xf32>
    %319 = vector.broadcast %315 : vector<16x1xf32> to vector<16x16xf32>
    %320 = arith.mulf %319, %318 : vector<16x16xf32>
    %cst_106 = arith.constant dense<0.000000e+00> : vector<16x16xf32>
    %321 = tpu.matmul %320, %278, %cst_106 {dimension_numbers = #tpu.dot_dimension_numbers<[1], [0], [0], [1], [0, 0, 1, 1], [], []>} : vector<16x16xf32>, vector<16x16xf32>, vector<16x16xf32> -> vector<16x16xf32>
    %c0_107 = arith.constant 0 : index
    %c80 = arith.constant 80 : index
    %c0_108 = arith.constant 0 : index
    %322 = vector.load %arg12[%c0_107, %c80, %c0_108] : memref<2x128x16xf32, #tpu.memory_space<vmem>>, vector<1x16x16xf32>
    %323 = vector.shape_cast %322 : vector<1x16x16xf32> to vector<16x16xf32>
    %324 = vector.shape_cast %321 : vector<16x16xf32> to vector<1x16x16xf32>
    tpu.vector_store %arg12[%c0_107, %c80, %c0_108], %324 {strides = array<i32>} : memref<2x128x16xf32, #tpu.memory_space<vmem>>, vector<1x16x16xf32>,
    %cst_109 = arith.constant dense<0.000000e+00> : vector<16x16xf32>
    %325 = tpu.matmul %320, %321, %cst_109 {dimension_numbers = #tpu.dot_dimension_numbers<[1], [0], [0], [1], [0, 0, 1, 1], [], []>} : vector<16x16xf32>, vector<16x16xf32>, vector<16x16xf32> -> vector<16x16xf32>
    %cst_110 = arith.constant 2.000000e+00 : f32
    %326 = vector.broadcast %cst_110 : f32 to vector<16x16xf32>
    %327 = arith.mulf %326, %325 : vector<16x16xf32>
    %328 = arith.subf %327, %278 : vector<16x16xf32>
    %c1_111 = arith.constant 1 : index
    %c80_112 = arith.constant 80 : index
    %c0_113 = arith.constant 0 : index
    %329 = vector.load %arg12[%c1_111, %c80_112, %c0_113] : memref<2x128x16xf32, #tpu.memory_space<vmem>>, vector<1x16x16xf32>
    %330 = vector.shape_cast %329 : vector<1x16x16xf32> to vector<16x16xf32>
    %331 = vector.shape_cast %328 : vector<16x16xf32> to vector<1x16x16xf32>
    tpu.vector_store %arg12[%c1_111, %c80_112, %c0_113], %331 {strides = array<i32>} : memref<2x128x16xf32, #tpu.memory_space<vmem>>, vector<1x16x16xf32>,
    %332 = vector.extract_strided_slice %3 {offsets = [96, 0], sizes = [16, 16], strides = [1, 1]} : vector<128x16xf32> to vector<16x16xf32>
    %333 = vector.extract_strided_slice %5 {offsets = [96, 0], sizes = [16, 1], strides = [1, 1]} : vector<128x1xf32> to vector<16x1xf32>
    %334 = vector.extract_strided_slice %7 {offsets = [0, 96], sizes = [1, 16], strides = [1, 1]} : vector<1x128xf32> to vector<1x16xf32>
    %335 = vector.broadcast %333 : vector<16x1xf32> to vector<16x16xf32>
    %336 = vector.broadcast %334 : vector<1x16xf32> to vector<16x16xf32>
    %337 = arith.mulf %335, %336 : vector<16x16xf32>
    %338 = arith.addf %337, %2 : vector<16x16xf32>
    %cst_114 = arith.constant dense<0xFF800000> : vector<16xf32>
    %339 = vector.multi_reduction <maximumf>, %338, %cst_114 [0] : vector<16x16xf32> to vector<16xf32>
    %340 = vector.shape_cast %339 : vector<16xf32> to vector<1x16xf32>
    %341 = vector.broadcast %340 : vector<1x16xf32> to vector<16x16xf32>
    %342 = arith.subf %338, %341 : vector<16x16xf32>
    %343 = math.exp %342 : vector<16x16xf32>
    %cst_115 = arith.constant dense<0.000000e+00> : vector<16xf32>
    %344 = vector.multi_reduction <add>, %343, %cst_115 [0] : vector<16x16xf32> to vector<16xf32>
    %345 = vector.shape_cast %344 : vector<16xf32> to vector<1x16xf32>
    %346 = tpu.reciprocal %345 {approx = true} : vector<1x16xf32> -> vector<1x16xf32>
    %347 = vector.broadcast %346 : vector<1x16xf32> to vector<16x16xf32>
    %348 = arith.mulf %343, %347 : vector<16x16xf32>
    %cst_116 = arith.constant dense<0.000000e+00> : vector<16x16xf32>
    %349 = tpu.matmul %1, %348, %cst_116 {dimension_numbers = #tpu.dot_dimension_numbers<[1], [0], [0], [1], [0, 0, 1, 1], [], []>} : vector<16x16xf32>, vector<16x16xf32>, vector<16x16xf32> -> vector<16x16xf32>
    %cst_117 = arith.constant dense<0xFF800000> : vector<16xf32>
    %350 = vector.multi_reduction <maximumf>, %349, %cst_117 [0] : vector<16x16xf32> to vector<16xf32>
    %351 = vector.shape_cast %350 : vector<16xf32> to vector<1x16xf32>
    %352 = vector.broadcast %351 : vector<1x16xf32> to vector<16x16xf32>
    %353 = arith.subf %349, %352 : vector<16x16xf32>
    %354 = math.exp %353 : vector<16x16xf32>
    %cst_118 = arith.constant dense<0.000000e+00> : vector<16xf32>
    %355 = vector.multi_reduction <add>, %354, %cst_118 [0] : vector<16x16xf32> to vector<16xf32>
    %356 = vector.shape_cast %355 : vector<16xf32> to vector<1x16xf32>
    %357 = tpu.reciprocal %356 {approx = true} : vector<1x16xf32> -> vector<1x16xf32>
    %358 = vector.broadcast %357 : vector<1x16xf32> to vector<16x16xf32>
    %359 = arith.mulf %354, %358 : vector<16x16xf32>
    %360 = arith.mulf %0, %359 : vector<16x16xf32>
    %cst_119 = arith.constant dense<0.000000e+00> : vector<16xf32>
    %361 = vector.multi_reduction <add>, %360, %cst_119 [1] : vector<16x16xf32> to vector<16xf32>
    %362 = vector.shape_cast %361 : vector<16xf32> to vector<16x1xf32>
    %cst_120 = arith.constant 0.000000e+00 : f32
    %363 = vector.broadcast %cst_120 : f32 to vector<16x1xf32>
    %364 = arith.cmpf ogt, %362, %363 : vector<16x1xf32>
    %365 = math.rsqrt %362 : vector<16x1xf32>
    %cst_121 = arith.constant 0.000000e+00 : f32
    %366 = vector.broadcast %cst_121 : f32 to vector<16x1xf32>
    %367 = arith.select %364, %365, %366 : vector<16x1xi1>, vector<16x1xf32>
    %cst_122 = arith.constant 0.000000e+00 : f32
    %368 = vector.broadcast %cst_122 : f32 to vector<16x1xf32>
    %369 = arith.subf %368, %367 : vector<16x1xf32>
    %370 = vector.broadcast %367 : vector<16x1xf32> to vector<16x16xf32>
    %371 = arith.mulf %370, %360 : vector<16x16xf32>
    %372 = tpu.transpose %371, [1, 0] : vector<16x16xf32> -> vector<16x16xf32>
    %373 = vector.broadcast %369 : vector<16x1xf32> to vector<16x16xf32>
    %374 = arith.mulf %373, %372 : vector<16x16xf32>
    %cst_123 = arith.constant dense<0.000000e+00> : vector<16x16xf32>
    %375 = tpu.matmul %374, %332, %cst_123 {dimension_numbers = #tpu.dot_dimension_numbers<[1], [0], [0], [1], [0, 0, 1, 1], [], []>} : vector<16x16xf32>, vector<16x16xf32>, vector<16x16xf32> -> vector<16x16xf32>
    %c0_124 = arith.constant 0 : index
    %c96 = arith.constant 96 : index
    %c0_125 = arith.constant 0 : index
    %376 = vector.load %arg12[%c0_124, %c96, %c0_125] : memref<2x128x16xf32, #tpu.memory_space<vmem>>, vector<1x16x16xf32>
    %377 = vector.shape_cast %376 : vector<1x16x16xf32> to vector<16x16xf32>
    %378 = vector.shape_cast %375 : vector<16x16xf32> to vector<1x16x16xf32>
    tpu.vector_store %arg12[%c0_124, %c96, %c0_125], %378 {strides = array<i32>} : memref<2x128x16xf32, #tpu.memory_space<vmem>>, vector<1x16x16xf32>,
    %cst_126 = arith.constant dense<0.000000e+00> : vector<16x16xf32>
    %379 = tpu.matmul %374, %375, %cst_126 {dimension_numbers = #tpu.dot_dimension_numbers<[1], [0], [0], [1], [0, 0, 1, 1], [], []>} : vector<16x16xf32>, vector<16x16xf32>, vector<16x16xf32> -> vector<16x16xf32>
    %cst_127 = arith.constant 2.000000e+00 : f32
    %380 = vector.broadcast %cst_127 : f32 to vector<16x16xf32>
    %381 = arith.mulf %380, %379 : vector<16x16xf32>
    %382 = arith.subf %381, %332 : vector<16x16xf32>
    %c1_128 = arith.constant 1 : index
    %c96_129 = arith.constant 96 : index
    %c0_130 = arith.constant 0 : index
    %383 = vector.load %arg12[%c1_128, %c96_129, %c0_130] : memref<2x128x16xf32, #tpu.memory_space<vmem>>, vector<1x16x16xf32>
    %384 = vector.shape_cast %383 : vector<1x16x16xf32> to vector<16x16xf32>
    %385 = vector.shape_cast %382 : vector<16x16xf32> to vector<1x16x16xf32>
    tpu.vector_store %arg12[%c1_128, %c96_129, %c0_130], %385 {strides = array<i32>} : memref<2x128x16xf32, #tpu.memory_space<vmem>>, vector<1x16x16xf32>,
    %386 = vector.extract_strided_slice %3 {offsets = [112, 0], sizes = [16, 16], strides = [1, 1]} : vector<128x16xf32> to vector<16x16xf32>
    %387 = vector.extract_strided_slice %5 {offsets = [112, 0], sizes = [16, 1], strides = [1, 1]} : vector<128x1xf32> to vector<16x1xf32>
    %388 = vector.extract_strided_slice %7 {offsets = [0, 112], sizes = [1, 16], strides = [1, 1]} : vector<1x128xf32> to vector<1x16xf32>
    %389 = vector.broadcast %387 : vector<16x1xf32> to vector<16x16xf32>
    %390 = vector.broadcast %388 : vector<1x16xf32> to vector<16x16xf32>
    %391 = arith.mulf %389, %390 : vector<16x16xf32>
    %392 = arith.addf %391, %2 : vector<16x16xf32>
    %cst_131 = arith.constant dense<0xFF800000> : vector<16xf32>
    %393 = vector.multi_reduction <maximumf>, %392, %cst_131 [0] : vector<16x16xf32> to vector<16xf32>
    %394 = vector.shape_cast %393 : vector<16xf32> to vector<1x16xf32>
    %395 = vector.broadcast %394 : vector<1x16xf32> to vector<16x16xf32>
    %396 = arith.subf %392, %395 : vector<16x16xf32>
    %397 = math.exp %396 : vector<16x16xf32>
    %cst_132 = arith.constant dense<0.000000e+00> : vector<16xf32>
    %398 = vector.multi_reduction <add>, %397, %cst_132 [0] : vector<16x16xf32> to vector<16xf32>
    %399 = vector.shape_cast %398 : vector<16xf32> to vector<1x16xf32>
    %400 = tpu.reciprocal %399 {approx = true} : vector<1x16xf32> -> vector<1x16xf32>
    %401 = vector.broadcast %400 : vector<1x16xf32> to vector<16x16xf32>
    %402 = arith.mulf %397, %401 : vector<16x16xf32>
    %cst_133 = arith.constant dense<0.000000e+00> : vector<16x16xf32>
    %403 = tpu.matmul %1, %402, %cst_133 {dimension_numbers = #tpu.dot_dimension_numbers<[1], [0], [0], [1], [0, 0, 1, 1], [], []>} : vector<16x16xf32>, vector<16x16xf32>, vector<16x16xf32> -> vector<16x16xf32>
    %cst_134 = arith.constant dense<0xFF800000> : vector<16xf32>
    %404 = vector.multi_reduction <maximumf>, %403, %cst_134 [0] : vector<16x16xf32> to vector<16xf32>
    %405 = vector.shape_cast %404 : vector<16xf32> to vector<1x16xf32>
    %406 = vector.broadcast %405 : vector<1x16xf32> to vector<16x16xf32>
    %407 = arith.subf %403, %406 : vector<16x16xf32>
    %408 = math.exp %407 : vector<16x16xf32>
    %cst_135 = arith.constant dense<0.000000e+00> : vector<16xf32>
    %409 = vector.multi_reduction <add>, %408, %cst_135 [0] : vector<16x16xf32> to vector<16xf32>
    %410 = vector.shape_cast %409 : vector<16xf32> to vector<1x16xf32>
    %411 = tpu.reciprocal %410 {approx = true} : vector<1x16xf32> -> vector<1x16xf32>
    %412 = vector.broadcast %411 : vector<1x16xf32> to vector<16x16xf32>
    %413 = arith.mulf %408, %412 : vector<16x16xf32>
    %414 = arith.mulf %0, %413 : vector<16x16xf32>
    %cst_136 = arith.constant dense<0.000000e+00> : vector<16xf32>
    %415 = vector.multi_reduction <add>, %414, %cst_136 [1] : vector<16x16xf32> to vector<16xf32>
    %416 = vector.shape_cast %415 : vector<16xf32> to vector<16x1xf32>
    %cst_137 = arith.constant 0.000000e+00 : f32
    %417 = vector.broadcast %cst_137 : f32 to vector<16x1xf32>
    %418 = arith.cmpf ogt, %416, %417 : vector<16x1xf32>
    %419 = math.rsqrt %416 : vector<16x1xf32>
    %cst_138 = arith.constant 0.000000e+00 : f32
    %420 = vector.broadcast %cst_138 : f32 to vector<16x1xf32>
    %421 = arith.select %418, %419, %420 : vector<16x1xi1>, vector<16x1xf32>
    %cst_139 = arith.constant 0.000000e+00 : f32
    %422 = vector.broadcast %cst_139 : f32 to vector<16x1xf32>
    %423 = arith.subf %422, %421 : vector<16x1xf32>
    %424 = vector.broadcast %421 : vector<16x1xf32> to vector<16x16xf32>
    %425 = arith.mulf %424, %414 : vector<16x16xf32>
    %426 = tpu.transpose %425, [1, 0] : vector<16x16xf32> -> vector<16x16xf32>
    %427 = vector.broadcast %423 : vector<16x1xf32> to vector<16x16xf32>
    %428 = arith.mulf %427, %426 : vector<16x16xf32>
    %cst_140 = arith.constant dense<0.000000e+00> : vector<16x16xf32>
    %429 = tpu.matmul %428, %386, %cst_140 {dimension_numbers = #tpu.dot_dimension_numbers<[1], [0], [0], [1], [0, 0, 1, 1], [], []>} : vector<16x16xf32>, vector<16x16xf32>, vector<16x16xf32> -> vector<16x16xf32>
    %c0_141 = arith.constant 0 : index
    %c112 = arith.constant 112 : index
    %c0_142 = arith.constant 0 : index
    %430 = vector.load %arg12[%c0_141, %c112, %c0_142] : memref<2x128x16xf32, #tpu.memory_space<vmem>>, vector<1x16x16xf32>
    %431 = vector.shape_cast %430 : vector<1x16x16xf32> to vector<16x16xf32>
    %432 = vector.shape_cast %429 : vector<16x16xf32> to vector<1x16x16xf32>
    tpu.vector_store %arg12[%c0_141, %c112, %c0_142], %432 {strides = array<i32>} : memref<2x128x16xf32, #tpu.memory_space<vmem>>, vector<1x16x16xf32>,
    %cst_143 = arith.constant dense<0.000000e+00> : vector<16x16xf32>
    %433 = tpu.matmul %428, %429, %cst_143 {dimension_numbers = #tpu.dot_dimension_numbers<[1], [0], [0], [1], [0, 0, 1, 1], [], []>} : vector<16x16xf32>, vector<16x16xf32>, vector<16x16xf32> -> vector<16x16xf32>
    %cst_144 = arith.constant 2.000000e+00 : f32
    %434 = vector.broadcast %cst_144 : f32 to vector<16x16xf32>
    %435 = arith.mulf %434, %433 : vector<16x16xf32>
    %436 = arith.subf %435, %386 : vector<16x16xf32>
    %c1_145 = arith.constant 1 : index
    %c112_146 = arith.constant 112 : index
    %c0_147 = arith.constant 0 : index
    %437 = vector.load %arg12[%c1_145, %c112_146, %c0_147] : memref<2x128x16xf32, #tpu.memory_space<vmem>>, vector<1x16x16xf32>
    %438 = vector.shape_cast %437 : vector<1x16x16xf32> to vector<16x16xf32>
    %439 = vector.shape_cast %436 : vector<16x16xf32> to vector<1x16x16xf32>
    tpu.vector_store %arg12[%c1_145, %c112_146, %c0_147], %439 {strides = array<i32>} : memref<2x128x16xf32, #tpu.memory_space<vmem>>, vector<1x16x16xf32>,
    %c0_148 = arith.constant 0 : index
    %c0_149 = arith.constant 0 : index
    %c0_150 = arith.constant 0 : index
    %440 = vector.load %arg7[%c0_148, %c0_149, %c0_150] : memref<3x16x16xf32, #tpu.memory_space<vmem>>, vector<1x16x16xf32>
    %441 = vector.shape_cast %440 : vector<1x16x16xf32> to vector<16x16xf32>
    %cst_151 = arith.constant dense<0.000000e+00> : vector<128x16xf32>
    %442 = tpu.matmul %3, %441, %cst_151 {dimension_numbers = #tpu.dot_dimension_numbers<[1], [0], [0], [1], [0, 0, 1, 1], [], []>} : vector<128x16xf32>, vector<16x16xf32>, vector<128x16xf32> -> vector<128x16xf32>
    %c0_152 = arith.constant 0 : index
    %c0_153 = arith.constant 0 : index
    %c0_154 = arith.constant 0 : index
    %443 = vector.load %arg12[%c0_152, %c0_153, %c0_154] : memref<2x128x16xf32, #tpu.memory_space<vmem>>, vector<1x128x16xf32>
    %444 = vector.shape_cast %443 : vector<1x128x16xf32> to vector<128x16xf32>
    %c1_155 = arith.constant 1 : index
    %c0_156 = arith.constant 0 : index
    %c0_157 = arith.constant 0 : index
    %445 = vector.load %arg7[%c1_155, %c0_156, %c0_157] : memref<3x16x16xf32, #tpu.memory_space<vmem>>, vector<1x16x16xf32>
    %446 = vector.shape_cast %445 : vector<1x16x16xf32> to vector<16x16xf32>
    %cst_158 = arith.constant dense<0.000000e+00> : vector<128x16xf32>
    %447 = tpu.matmul %444, %446, %cst_158 {dimension_numbers = #tpu.dot_dimension_numbers<[1], [0], [0], [1], [0, 0, 1, 1], [], []>} : vector<128x16xf32>, vector<16x16xf32>, vector<128x16xf32> -> vector<128x16xf32>
    %448 = arith.addf %442, %447 : vector<128x16xf32>
    %c1_159 = arith.constant 1 : index
    %c0_160 = arith.constant 0 : index
    %c0_161 = arith.constant 0 : index
    %449 = vector.load %arg12[%c1_159, %c0_160, %c0_161] : memref<2x128x16xf32, #tpu.memory_space<vmem>>, vector<1x128x16xf32>
    %450 = vector.shape_cast %449 : vector<1x128x16xf32> to vector<128x16xf32>
    %c2 = arith.constant 2 : index
    %c0_162 = arith.constant 0 : index
    %c0_163 = arith.constant 0 : index
    %451 = vector.load %arg7[%c2, %c0_162, %c0_163] : memref<3x16x16xf32, #tpu.memory_space<vmem>>, vector<1x16x16xf32>
    %452 = vector.shape_cast %451 : vector<1x16x16xf32> to vector<16x16xf32>
    %cst_164 = arith.constant dense<0.000000e+00> : vector<128x16xf32>
    %453 = tpu.matmul %450, %452, %cst_164 {dimension_numbers = #tpu.dot_dimension_numbers<[1], [0], [0], [1], [0, 0, 1, 1], [], []>} : vector<128x16xf32>, vector<16x16xf32>, vector<128x16xf32> -> vector<128x16xf32>
    %454 = arith.addf %448, %453 : vector<128x16xf32>
    %c0_165 = arith.constant 0 : index
    %c0_166 = arith.constant 0 : index
    %455 = vector.load %arg8[%c0_165, %c0_166] : memref<1x16xf32, #tpu.memory_space<vmem>>, vector<1x16xf32>
    %456 = vector.broadcast %455 : vector<1x16xf32> to vector<128x16xf32>
    %457 = arith.addf %454, %456 : vector<128x16xf32>
    %cst_167 = arith.constant 0.000000e+00 : f32
    %458 = vector.broadcast %cst_167 : f32 to vector<128x16xf32>
    %459 = arith.maximumf %457, %458 : vector<128x16xf32>
    %c0_168 = arith.constant 0 : index
    %c0_169 = arith.constant 0 : index
    %460 = vector.load %arg9[%c0_168, %c0_169] : memref<16x16xf32, #tpu.memory_space<vmem>>, vector<16x16xf32>
    %cst_170 = arith.constant dense<0.000000e+00> : vector<128x16xf32>
    %461 = tpu.matmul %459, %460, %cst_170 {dimension_numbers = #tpu.dot_dimension_numbers<[1], [0], [0], [1], [0, 0, 1, 1], [], []>} : vector<128x16xf32>, vector<16x16xf32>, vector<128x16xf32> -> vector<128x16xf32>
    %c0_171 = arith.constant 0 : index
    %462 = memref.load %arg10[%c0_171] : memref<1xf32, #tpu.memory_space<smem>>
    %463 = vector.broadcast %462 : f32 to vector<128x16xf32>
    %464 = arith.addf %461, %463 : vector<128x16xf32>
    %cst_172 = arith.constant 0.000000e+00 : f32
    %465 = vector.broadcast %cst_172 : f32 to vector<128x16xf32>
    %466 = arith.maximumf %464, %465 : vector<128x16xf32>
    %467 = vector.extract_strided_slice %466 {offsets = [0, 0], sizes = [16, 16], strides = [1, 1]} : vector<128x16xf32> to vector<16x16xf32>
    %c0_173 = arith.constant 0 : index
    %c0_174 = arith.constant 0 : index
    %c0_175 = arith.constant 0 : index
    %468 = vector.load %arg11[%c0_173, %c0_174, %c0_175] : memref<1x16x128xf32, #tpu.memory_space<vmem>>, vector<1x16x16xf32>
    %469 = vector.shape_cast %468 : vector<1x16x16xf32> to vector<16x16xf32>
    %470 = vector.shape_cast %467 : vector<16x16xf32> to vector<1x16x16xf32>
    tpu.vector_store %arg11[%c0_173, %c0_174, %c0_175], %470 {strides = array<i32>} : memref<1x16x128xf32, #tpu.memory_space<vmem>>, vector<1x16x16xf32>,
    %471 = vector.extract_strided_slice %466 {offsets = [16, 0], sizes = [16, 16], strides = [1, 1]} : vector<128x16xf32> to vector<16x16xf32>
    %c0_176 = arith.constant 0 : index
    %c0_177 = arith.constant 0 : index
    %c16_178 = arith.constant 16 : index
    %472 = vector.load %arg11[%c0_176, %c0_177, %c16_178] : memref<1x16x128xf32, #tpu.memory_space<vmem>>, vector<1x16x16xf32>
    %473 = vector.shape_cast %472 : vector<1x16x16xf32> to vector<16x16xf32>
    %474 = vector.shape_cast %471 : vector<16x16xf32> to vector<1x16x16xf32>
    tpu.vector_store %arg11[%c0_176, %c0_177, %c16_178], %474 {strides = array<i32>} : memref<1x16x128xf32, #tpu.memory_space<vmem>>, vector<1x16x16xf32>,
    %475 = vector.extract_strided_slice %466 {offsets = [32, 0], sizes = [16, 16], strides = [1, 1]} : vector<128x16xf32> to vector<16x16xf32>
    %c0_179 = arith.constant 0 : index
    %c0_180 = arith.constant 0 : index
    %c32_181 = arith.constant 32 : index
    %476 = vector.load %arg11[%c0_179, %c0_180, %c32_181] : memref<1x16x128xf32, #tpu.memory_space<vmem>>, vector<1x16x16xf32>
    %477 = vector.shape_cast %476 : vector<1x16x16xf32> to vector<16x16xf32>
    %478 = vector.shape_cast %475 : vector<16x16xf32> to vector<1x16x16xf32>
    tpu.vector_store %arg11[%c0_179, %c0_180, %c32_181], %478 {strides = array<i32>} : memref<1x16x128xf32, #tpu.memory_space<vmem>>, vector<1x16x16xf32>,
    %479 = vector.extract_strided_slice %466 {offsets = [48, 0], sizes = [16, 16], strides = [1, 1]} : vector<128x16xf32> to vector<16x16xf32>
    %c0_182 = arith.constant 0 : index
    %c0_183 = arith.constant 0 : index
    %c48_184 = arith.constant 48 : index
    %480 = vector.load %arg11[%c0_182, %c0_183, %c48_184] : memref<1x16x128xf32, #tpu.memory_space<vmem>>, vector<1x16x16xf32>
    %481 = vector.shape_cast %480 : vector<1x16x16xf32> to vector<16x16xf32>
    %482 = vector.shape_cast %479 : vector<16x16xf32> to vector<1x16x16xf32>
    tpu.vector_store %arg11[%c0_182, %c0_183, %c48_184], %482 {strides = array<i32>} : memref<1x16x128xf32, #tpu.memory_space<vmem>>, vector<1x16x16xf32>,
    %483 = vector.extract_strided_slice %466 {offsets = [64, 0], sizes = [16, 16], strides = [1, 1]} : vector<128x16xf32> to vector<16x16xf32>
    %c0_185 = arith.constant 0 : index
    %c0_186 = arith.constant 0 : index
    %c64_187 = arith.constant 64 : index
    %484 = vector.load %arg11[%c0_185, %c0_186, %c64_187] : memref<1x16x128xf32, #tpu.memory_space<vmem>>, vector<1x16x16xf32>
    %485 = vector.shape_cast %484 : vector<1x16x16xf32> to vector<16x16xf32>
    %486 = vector.shape_cast %483 : vector<16x16xf32> to vector<1x16x16xf32>
    tpu.vector_store %arg11[%c0_185, %c0_186, %c64_187], %486 {strides = array<i32>} : memref<1x16x128xf32, #tpu.memory_space<vmem>>, vector<1x16x16xf32>,
    %487 = vector.extract_strided_slice %466 {offsets = [80, 0], sizes = [16, 16], strides = [1, 1]} : vector<128x16xf32> to vector<16x16xf32>
    %c0_188 = arith.constant 0 : index
    %c0_189 = arith.constant 0 : index
    %c80_190 = arith.constant 80 : index
    %488 = vector.load %arg11[%c0_188, %c0_189, %c80_190] : memref<1x16x128xf32, #tpu.memory_space<vmem>>, vector<1x16x16xf32>
    %489 = vector.shape_cast %488 : vector<1x16x16xf32> to vector<16x16xf32>
    %490 = vector.shape_cast %487 : vector<16x16xf32> to vector<1x16x16xf32>
    tpu.vector_store %arg11[%c0_188, %c0_189, %c80_190], %490 {strides = array<i32>} : memref<1x16x128xf32, #tpu.memory_space<vmem>>, vector<1x16x16xf32>,
    %491 = vector.extract_strided_slice %466 {offsets = [96, 0], sizes = [16, 16], strides = [1, 1]} : vector<128x16xf32> to vector<16x16xf32>
    %c0_191 = arith.constant 0 : index
    %c0_192 = arith.constant 0 : index
    %c96_193 = arith.constant 96 : index
    %492 = vector.load %arg11[%c0_191, %c0_192, %c96_193] : memref<1x16x128xf32, #tpu.memory_space<vmem>>, vector<1x16x16xf32>
    %493 = vector.shape_cast %492 : vector<1x16x16xf32> to vector<16x16xf32>
    %494 = vector.shape_cast %491 : vector<16x16xf32> to vector<1x16x16xf32>
    tpu.vector_store %arg11[%c0_191, %c0_192, %c96_193], %494 {strides = array<i32>} : memref<1x16x128xf32, #tpu.memory_space<vmem>>, vector<1x16x16xf32>,
    %495 = vector.extract_strided_slice %466 {offsets = [112, 0], sizes = [16, 16], strides = [1, 1]} : vector<128x16xf32> to vector<16x16xf32>
    %c0_194 = arith.constant 0 : index
    %c0_195 = arith.constant 0 : index
    %c112_196 = arith.constant 112 : index
    %496 = vector.load %arg11[%c0_194, %c0_195, %c112_196] : memref<1x16x128xf32, #tpu.memory_space<vmem>>, vector<1x16x16xf32>
    %497 = vector.shape_cast %496 : vector<1x16x16xf32> to vector<16x16xf32>
    %498 = vector.shape_cast %495 : vector<16x16xf32> to vector<1x16x16xf32>
    tpu.vector_store %arg11[%c0_194, %c0_195, %c112_196], %498 {strides = array<i32>} : memref<1x16x128xf32, #tpu.memory_space<vmem>>, vector<1x16x16xf32>,
    return
  }
  func.func @transform_0(%arg0: i32) -> (i32, i32) {
    %c0_i32 = arith.constant 0 : i32
    %c0_i32_0 = arith.constant 0 : i32
    return %arg0, %c0_i32 : i32, i32
  }
  func.func @transform_1(%arg0: i32) -> (i32, i32) {
    %c0_i32 = arith.constant 0 : i32
    %c0_i32_0 = arith.constant 0 : i32
    %c0_i32_1 = arith.constant 0 : i32
    return %c0_i32, %c0_i32_0 : i32, i32
  }
  func.func @transform_2(%arg0: i32) -> (i32, i32) {
    %c0_i32 = arith.constant 0 : i32
    %c0_i32_0 = arith.constant 0 : i32
    %c0_i32_1 = arith.constant 0 : i32
    return %c0_i32, %c0_i32_0 : i32, i32
  }
  func.func @transform_3(%arg0: i32) -> (i32, i32) {
    %c0_i32 = arith.constant 0 : i32
    %c0_i32_0 = arith.constant 0 : i32
    %c0_i32_1 = arith.constant 0 : i32
    return %c0_i32, %c0_i32_0 : i32, i32
  }
  func.func @transform_4(%arg0: i32) -> (i32, i32) {
    %c0_i32 = arith.constant 0 : i32
    %c0_i32_0 = arith.constant 0 : i32
    %c0_i32_1 = arith.constant 0 : i32
    return %c0_i32, %c0_i32_0 : i32, i32
  }
  func.func @transform_5(%arg0: i32) -> (i32, i32) {
    %c0_i32 = arith.constant 0 : i32
    %c0_i32_0 = arith.constant 0 : i32
    %c0_i32_1 = arith.constant 0 : i32
    return %c0_i32, %c0_i32_0 : i32, i32
  }
  func.func @transform_6(%arg0: i32) -> (i32, i32, i32) {
    %c0_i32 = arith.constant 0 : i32
    %c0_i32_0 = arith.constant 0 : i32
    %c0_i32_1 = arith.constant 0 : i32
    %c0_i32_2 = arith.constant 0 : i32
    return %c0_i32, %c0_i32_0, %c0_i32_1 : i32, i32, i32
  }
  func.func @transform_7(%arg0: i32) -> (i32, i32) {
    %c0_i32 = arith.constant 0 : i32
    %c0_i32_0 = arith.constant 0 : i32
    %c0_i32_1 = arith.constant 0 : i32
    return %c0_i32, %c0_i32_0 : i32, i32
  }
  func.func @transform_8(%arg0: i32) -> (i32, i32) {
    %c0_i32 = arith.constant 0 : i32
    %c0_i32_0 = arith.constant 0 : i32
    %c0_i32_1 = arith.constant 0 : i32
    return %c0_i32, %c0_i32_0 : i32, i32
  }
  func.func @transform_9(%arg0: i32) -> i32 {
    %c0_i32 = arith.constant 0 : i32
    %c0_i32_0 = arith.constant 0 : i32
    return %c0_i32 : i32
  }
  func.func @transform_10(%arg0: i32) -> (i32, i32, i32) {
    %c0_i32 = arith.constant 0 : i32
    %c0_i32_0 = arith.constant 0 : i32
    %c0_i32_1 = arith.constant 0 : i32
    return %arg0, %c0_i32, %c0_i32_0 : i32, i32, i32
  }
}

</mosaic_0001>

<bundles_post_ra>
// kernel: tpu_custom_call.1
= control target key start
LH: loop header
LB: loop body
LE: loop exit
PB: predicated region body
PF: predicated region fallthrough
CT: control target
= control target key end

     0   :  { %s6741_s0 = inlined_call_operand.vmem [shape: f32[256,16], index: 0, kind: input, shape index: {}]   ;;  %s6742_s1 = inlined_call_operand.vmem [shape: f32[16,16], index: 1, kind: input, shape index: {}]   ;;  %s6743_s2 = inlined_call_operand.vmem [shape: f32[16,16], index: 2, kind: input, shape index: {}]   ;;  %s6744_s3 = inlined_call_operand.vmem [shape: f32[16,16], index: 3, kind: input, shape index: {}]   ;;  %s6745_s4 = inlined_call_operand.vmem [shape: f32[16,1], index: 4, kind: input, shape index: {}]   ;;  %s6746_s5 = inlined_call_operand.vmem [shape: f32[1,16], index: 5, kind: input, shape index: {}]   ;;  %s6747_s6 = inlined_call_operand.vmem [shape: f32[3,16,16], index: 6, kind: input, shape index: {}]   ;;  %s6748_s7 = inlined_call_operand.vmem [shape: f32[1,16], index: 7, kind: input, shape index: {}]   ;;  %s6749_s8 = inlined_call_operand.vmem [shape: f32[16,16], index: 8, kind: input, shape index: {}]   ;;  %s6750_s9 = inlined_call_operand.<no memory space> [shape: f32[1], index: 9, kind: input, shape index: {}]   ;;  %s6751_s10 = inlined_call_operand.hbm [shape: f32[2,16,128], index: 10, kind: output, shape index: {}]  }
   0x1   :  { %15 = sst [smem:[#allocation3]] %s6750_s9 }
   0x2   :  { %16 = vsyncpa [#allocation5], 0 }
   0x3   :  { %18 = vsyncpa [#allocation5 + $0x1], 0  ;;  %s5896_s15 = smov 0   ;;  %s5898_s16 = smov 0  }
   0x4   :  { %s5900_s17 = smov 0   ;;  %s5902_s18 = smov 0  }
   0x5 LB: > { %s5917_s9 = sadd.s32 4294967295, %s5822_s18   ;;  %s4630_s19 = sadd.s32 4294967294, %s5822_s18   ;;  %s5822_s18 = sphi %s5902_s18, %s6771_s18   ;;  %s5818_s17 = sphi %s5900_s17, %s6770_s17   ;;  %s5814_s16 = sphi %s5898_s16, %s6769_s16   ;;  %s5810_s15 = sphi %s5896_s15, %s6768_s15  }
   0x6   : > { %s5921_s20 = sadd.s32 1, %s5822_s18   ;;  %s246_s21 = sadd.s32 1, %s5818_s17 }
   0x7   : > { %s243_s22 = ssub.s32 %s5822_s18, %s5921_s20  ;;  %p256_p0 = scmp.ne.s32.totalorder %s5818_s17, %s5814_s16 }
   0x8   : > { %p244_p1 = scmp.eq.s32.totalorder %s243_s22, 0  ;;  %p257_p2 = scmp.eq.s32.totalorder %s5917_s9, 1 }
   0x9   : > { %p262_p3 = scmp.ne.s32.totalorder %s5814_s16, %s5810_s15  ;;  %p263_p4 = scmp.eq.s32.totalorder %s4630_s19, 1 }
   0xa   : > { %s5932_s23 = scalar_select %p244_p1, %s5818_s17, %s246_s21  }
   0xb   : > { %p5934_p5 = por %p257_p2, %p256_p0  ;;  %p5938_p6 = por %p263_p4, %p262_p3 }
   0xc   : > { %p4633_p7 = scmp.ge.s32.totalorder %s5822_s18, 1  ;;  %p317_p8 = scmp.lt.s32.totalorder %s5822_s18, 3 }
   0xe   : > { %p318_p9 = pnand %p4633_p7, %p317_p8 }
   0xf   : > { %v383_v0 = vld [vmem:[%s6745_s4] sm:$0xff] (!%p318_p9)  ;;  %v384_v1 = vld [vmem:[%s6745_s4 + $0x8] sm:$0xff] (!%p318_p9)  ;;  %s4635_s30 = sshll.u32 (!%p318_p9), %s5917_s9, 4  ;;  %vm385_vm0 = vcmask (!%p318_p9), 130048   ;;  %v5824_v3 = vmov (!%p318_p9), 0.0|0.0   ;;  %vm5825_vm2 = vmmov (!%p318_p9), 0   ;;  %v663_v51 = vlaneseq (!%p318_p9) }
  0x10   : > { %321 = sbr.rel (%p318_p9) target bundleno = 6105 (0x17d9), region = 60  ;;  %v5339_v2 = vpack.c.bf16 (!%p318_p9), %v384_v1, %v383_v0  ;;  %p356_p10 = scmp.lt.s32.totalorder (!%p318_p9), %s4635_s30, 31  ;;  %vm5975_vm1 = vmpackc.low (!%p318_p9), %vm385_vm0, %vm385_vm0  ;;  %v5826_v25 = vmov (!%p318_p9), 0.0   ;;  %v579_v30 = vld [vmem:[%s6746_s5] sm:$0x1] (!%p318_p9)  ;;  %v5827_v31 = vmov (!%p318_p9), 0  }
  0x11   : > { %5573 = vset.pattern.permute.xlu0 (!%p318_p9), %v5827_v31  ;;  %5574 = vset.pattern.permute.xlu1 (!%p318_p9), %v5827_v31  ;;  %v6085_v50 = vld [vmem:[%s6743_s2] sm:$0xff] (!%p318_p9)  ;;  %v664_v52 = vshrl.u32 (!%p318_p9), %v663_v51, 7  ;;  %v6102_v58 = vld [vmem:[%s6744_s3 + $0x8] sm:$0xff] (!%p318_p9)  ;;  %s5828_s26 = smov (!%p318_p9), 16   ;;  %vm1045_vm5 = vcmask (!%p318_p9), 261248   ;;  %s6752_s27 = smov (!%p318_p9), 112  }
  0x12   : > { %5340 = vmatprep.subr.bf16.mxu1 (!%p318_p9), %v5339_v2  ;;  %5063 = vmatprep.mubr.msk.f32.mxu0 (!%p318_p9), %vm385_vm0, %v6085_v50  ;;  %v6097_v57 = vld [vmem:[%s6744_s3] sm:$0xff] (!%p318_p9)  ;;  %s5830_s28 = smov (!%p318_p9), 32   ;;  %vm1419_vm8 = vcmask (!%p318_p9), 392448   ;;  %s5831_s29 = smov (!%p318_p9), 48   ;;  %vm1793_vm9 = vcmask (!%p318_p9), 523648   ;;  %vm2167_vm14 = vcmask (!%p318_p9), 654848  }
  0x13   : > { %5342 = vmatpush3.bf16.msra.mxu1 (!%p318_p9), %v5339_v2  ;;  %v665_v53 = vsub.s32 (!%p318_p9), 0, %v664_v52  ;;  %s6758_s12 = smov (!%p318_p9), 64   ;;  %vm2541_vm15 = vcmask (!%p318_p9), 786048   ;;  %s4271_s19 = sld [smem:[#allocation3]] (!%p318_p9) }
  0x14   : > { %5343 = vmatprep.subr.bf16.mxu1 (!%p318_p9), %v5824_v3  ;;  %s352_s21 = sand.u32 (!%p318_p9), 1, %s5814_s16  }
  0x17   : > { %s6773_s30 = smov (!%p356_p10, %s4635_s30), 31 }
  0x18   : > { %s4636_s11 = sshll.u32 %s6773_s30, 3  ;;  %s6754_s30 = smov 96  }
  0x19   : > { %s5954_s14 = scalar_lea.vmem %s6741_s0, %s4636_s11  ;;  %s6756_s11 = smov 80  }
  0x1a   : > { %v5957_v4 = vld [vmem:[%s5954_s14] sm:$0xff]  ;;  %v5960_v5 = vld [vmem:[%s5954_s14 + $0x8] sm:$0xff]  ;;  %v5971_v7 = vld [vmem:[%s5954_s14 + $0x10] sm:$0xff] }
  0x1b   : > { %5000 = vmatprep.mubr.msk.f32.mxu1 %vm385_vm0, %v5957_v4  ;;  %v5968_v6 = vpack.c.bf16 %v5960_v5, %v5957_v4  ;;  %v5985_v9 = vld [vmem:[%s5954_s14 + $0x18] sm:$0xff]  ;;  %v371_v10 = vld [vmem:[%s5954_s14 + $0x20] sm:$0xff]  ;;  %v372_v12 = vld [vmem:[%s5954_s14 + $0x28] sm:$0xff] }
  0x1c   : > { %5001 = vmatmul.mubr.msk.f32.vlgmr.msra.gmra.mrb[0].mxu1 %vm385_vm0, %v5960_v5  ;;  %v5993_v11 = vpack.c.bf16 %v5985_v9, %v5971_v7  ;;  %v373_v13 = vld [vmem:[%s5954_s14 + $0x30] sm:$0xff]  ;;  %v374_v14 = vld [vmem:[%s5954_s14 + $0x38] sm:$0xff]  ;;  %v375_v15 = vld [vmem:[%s5954_s14 + $0x40] sm:$0xff]  ;;  %v6006_v16 = vpack.c.bf16 %v372_v12, %v371_v10 }
  0x1d   : > { %5003 = vmatprep.mubr.msk.f32.mxu1 %vm385_vm0, %v5971_v7  ;;  %5346 = vmatpush3.bf16.xpose.msk.msra.mxu1 %vm5975_vm1, %v5968_v6  ;;  %v376_v17 = vld [vmem:[%s5954_s14 + $0x48] sm:$0xff]  ;;  %v377_v18 = vld [vmem:[%s5954_s14 + $0x50] sm:$0xff]  ;;  %v378_v19 = vld [vmem:[%s5954_s14 + $0x58] sm:$0xff]  ;;  %v6019_v21 = vpack.c.bf16 %v374_v14, %v373_v13 }
  0x1e   : > { %5347 = vmatprep.subr.bf16.mxu1 %v5824_v3  ;;  %v379_v20 = vld [vmem:[%s5954_s14 + $0x60] sm:$0xff]  ;;  %v380_v22 = vld [vmem:[%s5954_s14 + $0x68] sm:$0xff]  ;;  %v381_v23 = vld [vmem:[%s5954_s14 + $0x70] sm:$0xff]  ;;  %v6030_v26 = vpack.c.bf16 %v376_v17, %v375_v15  ;;  %v6035_v27 = vpack.c.bf16 %v378_v19, %v377_v18 }
  0x1f   : > { %v382_v24 = vld [vmem:[%s5954_s14 + $0x78] sm:$0xff]  ;;  %v6040_v28 = vpack.c.bf16 %v380_v22, %v379_v20 }
  0x20   : > { %5004 = vmatmul.mubr.msk.f32.gmra.mrb[2].mxu1 %vm385_vm0, %v5985_v9  ;;  %v6045_v29 = vpack.c.bf16 %v382_v24, %v381_v23 }
  0x21   : > { %5006 = vmatprep.mubr.msk.f32.mxu1 %vm385_vm0, %v371_v10 }
  0x24   : > { %5007 = vmatmul.mubr.msk.f32.gmra.mrb[4].mxu1 %vm385_vm0, %v372_v12 }
  0x25   : > { %5009 = vmatprep.mubr.msk.f32.mxu1 %vm385_vm0, %v373_v13  ;;  %5350 = vmatpush3.bf16.xpose.msk.msra.mxu1 %vm5975_vm1, %v5993_v11 }
  0x26   : > { %5351 = vmatprep.subr.bf16.mxu1 %v5824_v3 }
  0x28   : > { %5010 = vmatmul.mubr.msk.f32.gmra.mrb[6].mxu1 %vm385_vm0, %v374_v14 }
  0x29   : > { %5012 = vmatprep.mubr.msk.f32.mxu1 %vm385_vm0, %v375_v15 }
  0x2c   : > { %5013 = vmatmul.mubr.msk.f32.gmra.mrb[8].mxu1 %vm385_vm0, %v376_v17 }
  0x2d   : > { %5015 = vmatprep.mubr.msk.f32.mxu1 %vm385_vm0, %v377_v18  ;;  %5354 = vmatpush3.bf16.xpose.msk.msra.mxu1 %vm5975_vm1, %v6006_v16 }
  0x2e   : > { %5355 = vmatprep.subr.bf16.mxu1 %v5824_v3 }
  0x30   : > { %5016 = vmatmul.mubr.msk.f32.gmra.mrb[10].mxu1 %vm385_vm0, %v378_v19 }
  0x31   : > { %5018 = vmatprep.mubr.msk.f32.mxu1 %vm385_vm0, %v379_v20 }
  0x34   : > { %5019 = vmatmul.mubr.msk.f32.gmra.mrb[12].mxu1 %vm385_vm0, %v380_v22 }
  0x35   : > { %5021 = vmatprep.mubr.msk.f32.mxu1 %vm385_vm0, %v381_v23  ;;  %5358 = vmatpush3.bf16.xpose.msk.msra.mxu1 %vm5975_vm1, %v6019_v21 }
  0x36   : > { %5359 = vmatprep.subr.bf16.mxu1 %v5824_v3 }
  0x38   : > { %5022 = vmatmul.mubr.msk.f32.gmra.mrb[14].mxu1 %vm385_vm0, %v382_v24 }
  0x39   : > { %5056 = vmatprep.mubr.msk.f32.mxu1 %vm5825_vm2, %v5826_v25 }
  0x3d   : > { %5362 = vmatpush3.bf16.xpose.msk.msra.mxu1 %vm5975_vm1, %v6030_v26 }
  0x3e   : > { %5363 = vmatprep.subr.bf16.mxu1 %v5824_v3 }
  0x45   : > { %5366 = vmatpush3.bf16.xpose.msk.msra.mxu1 %vm5975_vm1, %v6035_v27 }
  0x46   : > { %5367 = vmatprep.subr.bf16.mxu1 %v5824_v3 }
  0x4d   : > { %5370 = vmatpush3.bf16.xpose.msk.msra.mxu1 %vm5975_vm1, %v6040_v28 }
  0x4e   : > { %5371 = vmatprep.subr.bf16.mxu1 %v5824_v3 }
  0x55   : > { %5374 = vmatpush3.bf16.xpose.msk.msra.mxu1 %vm5975_vm1, %v6045_v29 }
  0x5c   : > { %5057 = vmatmul.mubr.msk.f32.vlgmr.msra.gmra.mrb[16].mxu1 %vm385_vm0, %v579_v30 }
  0x5d   : > { %5126 = vmatprep.mubr.msk.f32.mxu1 %vm385_vm0, %v6085_v50 }
  0xef   : > { %v5002_v32 = vpop.f32.mrb[0].mxu1 }
  0xf0   : > { %v500_v33 = vpop.f32.mrb[1].mxu1 }
  0xf1   : > { %655 = vperm.xlu0 %5573, %v500_v33  }
  0xf3   : > { %v6054_v34 = vpop.f32.mrb[2].mxu1 }
  0xf4   : > { %v6056_v35 = vpop.f32.mrb[3].mxu1 }
  0xf5   : > { %660 = vperm.xlu0 %5573, %v5002_v32  }
  0xf7   : > { %v6058_v36 = vpop.f32.mrb[4].mxu1 }
  0xf8   : > { %v6060_v37 = vpop.f32.mrb[5].mxu1 }
  0xfb   : > { %v6062_v38 = vpop.f32.mrb[6].mxu1 }
  0xfc   : > { %v6064_v39 = vpop.f32.mrb[7].mxu1 }
  0xff   : > { %v6066_v40 = vpop.f32.mrb[8].mxu1 }
 0x100   : > { %v6068_v41 = vpop.f32.mrb[9].mxu1 }
 0x103   : > { %v6070_v42 = vpop.f32.mrb[10].mxu1 }
 0x104   : > { %v6072_v43 = vpop.f32.mrb[11].mxu1 }
 0x107   : > { %v6074_v44 = vpop.f32.mrb[12].mxu1 }
 0x108   : > { %v6076_v45 = vpop.f32.mrb[13].mxu1 }
 0x10b   : > { %v6078_v46 = vpop.f32.mrb[14].mxu1 }
 0x10c   : > { %v6080_v47 = vpop.f32.mrb[15].mxu1 }
 0x12f   : > { %v649_v48 = vpop.f32.mrb[16].mxu1 }
 0x130   : > { %v5058_v49 = vpop.f32.mrb[17].mxu1  ;;  %v6091_v54 = vrot.slane %v649_v48, %v665_v53 }
 0x170   : > { %v656_v55 = vpop.permute.xlu0 %655 }
 0x171   : > { %v667_v56 = vmul.f32 %v6091_v54, %v656_v55  ;;  %v6114_v55 = vld [vmem:[%s6743_s2 + $0x8] sm:$0xff] }
 0x173   : > { %v669_v60 = vadd.f32 %v667_v56, %v6097_v57 }
 0x174   : > { %v661_v59 = vpop.permute.xlu0 %660 }
 0x175   : > { %v668_v61 = vmul.f32 %v6091_v54, %v661_v59  ;;  %v671_v63 = vsel %vm385_vm0, %v669_v60, -inf }
 0x177   : > { %v670_v62 = vadd.f32 %v668_v61, %v6102_v58 }
 0x179   : > { %v672_v0 = vsel %vm385_vm0, %v670_v62, -inf }
 0x17a   : > { %v673_v1 = vmax.f32 %v671_v63, %v672_v0 }
 0x17c   : > { %v674_v2 = vrot.slane %v673_v1, 4 }
 0x17e   : > { %v675_v3 = vmax.f32 %v673_v1, %v674_v2 }
 0x180   : > { %v676_v8 = vrot.slane %v675_v3, 2 }
 0x182   : > { %v677_v10 = vmax.f32 %v675_v3, %v676_v8 }
 0x184   : > { %v678_v12 = vrot.slane %v677_v10, 1 }
 0x186   : > { %v679_v13 = vmax.f32 %v677_v10, %v678_v12 }
 0x188   : > { %v680_v14 = vsub.f32 %v669_v60, %v679_v13  ;;  %v681_v15 = vsub.f32 %v670_v62, %v679_v13 }
 0x18a   : > { %v682_v17 = vmul.f32 1.442695, %v680_v14  ;;  %v684_v18 = vmul.f32 1.442695, %v681_v15 }
 0x18c   : > { %5610 = vpow2.f32 %v682_v17 }
 0x18d   : > { %5612 = vpow2.f32 %v684_v18 }
 0x196   : > { %v5611_v19 = vpop.eup %5610 }
 0x197   : > { %v5613_v20 = vpop.eup %5612  ;;  %v686_v22 = vsel %vm385_vm0, %v5611_v19, 0.0 }
 0x198   : > { %v687_v23 = vsel %vm385_vm0, %v5613_v20, 0.0 }
 0x199   : > { %v688_v24 = vadd.f32 %v687_v23, %v686_v22 }
 0x19b   : > { %v689_v25 = vrot.slane %v688_v24, 4 }
 0x19d   : > { %v690_v30 = vadd.f32 %v689_v25, %v688_v24 }
 0x19f   : > { %v691_v31 = vrot.slane %v690_v30, 2 }
 0x1a1   : > { %v692_v32 = vadd.f32 %v691_v31, %v690_v30 }
 0x1a3   : > { %v693_v33 = vrot.slane %v692_v32, 1 }
 0x1a5   : > { %v694_v48 = vadd.f32 %v693_v33, %v692_v32  ;;  %v6127_v32 = vld [vmem:[%s6742_s1] sm:$0xff] }
 0x1a7   : > { %5614 = vrcp.f32 %v694_v48 }
 0x1b1   : > { %v5615_v49 = vpop.eup %5614 }
 0x1b2   : > { %v696_v51 = vmul.f32 %v5615_v49, %v5611_v19  ;;  %v697_v52 = vmul.f32 %v5615_v49, %v5613_v20  ;;  %v6132_v49 = vld [vmem:[%s6742_s1 + $0x8] sm:$0xff] }
 0x1b4   : > { %v5375_v53 = vpack.c.bf16 %v697_v52, %v696_v51 }
 0x1b6   : > { %5376 = vmatprep.subr.bf16.mxu0 %v5375_v53 }
 0x1b7   : > { %5378 = vmatpush3.bf16.msra.mxu0 %v5375_v53 }
 0x1b8   : > { %5380 = vmatprep.subr.bf16.mxu0 %v5968_v6 }
 0x1ba   : > { %5064 = vmatmul.mubr.msk.f32.vlgmr.msra.gmra.mrb[0].mxu0 %vm385_vm0, %v6114_v55 }
 0x1bb   : > { %5382 = vmatpush3.bf16.msra.mxu0 %v5968_v6 }
 0x28d   : > { %v5065_v56 = vpop.f32.mrb[0].mxu0 }
 0x28e   : > { %v780_v59 = vsel %vm385_vm0, %v5065_v56, -inf  ;;  %v770_v60 = vpop.f32.mrb[1].mxu0 }
 0x28f   : > { %v779_v61 = vsel %vm385_vm0, %v770_v60, -inf }
 0x290   : > { %v781_v62 = vmax.f32 %v779_v61, %v780_v59 }
 0x292   : > { %v782_v63 = vrot.slane %v781_v62, 4 }
 0x294   : > { %v783_v0 = vmax.f32 %v781_v62, %v782_v63 }
 0x296   : > { %v784_v1 = vrot.slane %v783_v0, 2 }
 0x298   : > { %v785_v2 = vmax.f32 %v783_v0, %v784_v1 }
 0x29a   : > { %v786_v3 = vrot.slane %v785_v2, 1 }
 0x29c   : > { %v787_v8 = vmax.f32 %v785_v2, %v786_v3 }
 0x29e   : > { %v788_v10 = vsub.f32 %v770_v60, %v787_v8  ;;  %v789_v12 = vsub.f32 %v5065_v56, %v787_v8 }
 0x2a0   : > { %v790_v13 = vmul.f32 1.442695, %v788_v10  ;;  %v792_v14 = vmul.f32 1.442695, %v789_v12 }
 0x2a2   : > { %5616 = vpow2.f32 %v790_v13 }
 0x2a3   : > { %5618 = vpow2.f32 %v792_v14 }
 0x2ac   : > { %v5617_v6 = vpop.eup %5616 }
 0x2ad   : > { %v5619_v15 = vpop.eup %5618  ;;  %v794_v17 = vsel %vm385_vm0, %v5617_v6, 0.0 }
 0x2ae   : > { %v795_v18 = vsel %vm385_vm0, %v5619_v15, 0.0 }
 0x2af   : > { %v796_v19 = vadd.f32 %v795_v18, %v794_v17 }
 0x2b1   : > { %v797_v20 = vrot.slane %v796_v19, 4 }
 0x2b3   : > { %v798_v22 = vadd.f32 %v797_v20, %v796_v19 }
 0x2b5   : > { %v799_v23 = vrot.slane %v798_v22, 2 }
 0x2b7   : > { %v800_v24 = vadd.f32 %v799_v23, %v798_v22 }
 0x2b9   : > { %v801_v25 = vrot.slane %v800_v24, 1 }
 0x2bb   : > { %v802_v30 = vadd.f32 %v801_v25, %v800_v24 }
 0x2bd   : > { %5620 = vrcp.f32 %v802_v30 }
 0x2c7   : > { %v5621_v31 = vpop.eup %5620 }
 0x2c8   : > { %v804_v33 = vmul.f32 %v5621_v31, %v5617_v6  ;;  %v805_v48 = vmul.f32 %v5621_v31, %v5619_v15 }
 0x2ca   : > { %v806_v51 = vmul.f32 %v804_v33, %v6127_v32  ;;  %v807_v53 = vmul.f32 %v805_v48, %v6132_v49 }
 0x2cc   : > { %v808_v52 = vsel %vm385_vm0, %v806_v51, 0.0  ;;  %v811_v56 = vsel %vm385_vm0, %v807_v53, 0.0 }
 0x2cd   : > { %809 = vadd.xlane.f32.xlu1 %v808_v52 }
 0x2d1   : > { %812 = vadd.xlane.f32.xlu1 %v811_v56 }
 0x2e2   : > { %1025 = vperm.xlu1 %5574, %v6056_v35  }
 0x2e6   : > { %1030 = vperm.xlu1 %5574, %v6054_v34  }
 0x2ea   : > { %1037 = vrot.lane.b32.xlu1 %v6097_v57, %s5828_s26 }
 0x2ee   : > { %1039 = vrot.lane.b32.xlu1 %v6102_v58, %s5828_s26 }
 0x35a   : > { %v810_v59 = vpop.xlane.xlu1 %809 }
 0x35b   : > { %5622 = vrsqrt.f32 %v810_v59  ;;  %vm814_vm3 = vcmp.gt.f32.partialorder %v810_v59, 0.0 }
 0x35e   : > { %v813_v60 = vpop.xlane.xlu1 %812 }
 0x35f   : > { %5624 = vrsqrt.f32 %v813_v60  ;;  %vm815_vm4 = vcmp.gt.f32.partialorder %v813_v60, 0.0 }
 0x362   : > { %v1026_v61 = vpop.permute.xlu1 %1025 }
 0x363   : > { %v1033_v8 = vmul.f32 %v1026_v61, %v6091_v54 }
 0x365   : > { %v5623_v62 = vpop.eup %5622 }
 0x366   : > { %v818_v63 = vsel %vm814_vm3, %v5623_v62, 0.0  ;;  %v1031_v0 = vpop.permute.xlu1 %1030  ;;  %vm2915_vm3 = vcmask 917248  }
 0x367   : > { %v822_v1 = vmul.f32 %v818_v63, %v806_v51  ;;  %v1034_v10 = vmul.f32 %v1031_v0, %v6091_v54 }
 0x369   : > { %v5625_v35 = vpop.eup %5624  ;;  %824 = vxpose.xlu0.b32.start [1/2] (short) (narrow) %v822_v1, 16 }
 0x36a   : > { %v819_v34 = vsel %vm815_vm4, %v5625_v35, 0.0  ;;  %v1038_v2 = vpop.permute.xlu1 %1037 }
 0x36b   : > { %v823_v3 = vmul.f32 %v819_v34, %v807_v53  ;;  %v1043_v12 = vadd.f32 %v1038_v2, %v1033_v8 }
 0x36d   : > { %825 = vxpose.xlu0.b32.end [2/2] (short) (narrow) %v823_v3, 16  ;;  %v1046_v6 = vsel %vm1045_vm5, %v1043_v12, -inf }
 0x36e   : > { %v1040_v13 = vpop.permute.xlu1 %1039 }
 0x36f   : > { %v1044_v14 = vadd.f32 %v1040_v13, %v1034_v10  ;;  %v820_v10 = vsub.f32 0.0, %v818_v63 }
 0x371   : > { %v1047_v15 = vsel %vm1045_vm5, %v1044_v14, -inf }
 0x372   : > { %v1048_v17 = vmax.f32 %v1046_v6, %v1047_v15 }
 0x374   : > { %v1049_v18 = vrot.slane %v1048_v17, 4 }
 0x376   : > { %v1050_v19 = vmax.f32 %v1048_v17, %v1049_v18 }
 0x378   : > { %v1051_v20 = vrot.slane %v1050_v19, 2 }
 0x37a   : > { %v1052_v22 = vmax.f32 %v1050_v19, %v1051_v20 }
 0x37c   : > { %v1053_v23 = vrot.slane %v1052_v22, 1 }
 0x37e   : > { %v1054_v24 = vmax.f32 %v1052_v22, %v1053_v23 }
 0x380   : > { %v1055_v25 = vsub.f32 %v1043_v12, %v1054_v24  ;;  %v1056_v30 = vsub.f32 %v1044_v14, %v1054_v24  ;;  %v821_v14 = vsub.f32 0.0, %v819_v34 }
 0x382   : > { %v1057_v31 = vmul.f32 1.442695, %v1055_v25  ;;  %v1059_v33 = vmul.f32 1.442695, %v1056_v30 }
 0x384   : > { %5626 = vpow2.f32 %v1057_v31 }
 0x385   : > { %5628 = vpow2.f32 %v1059_v33 }
 0x38e   : > { %v5627_v48 = vpop.eup %5626 }
 0x38f   : > { %v5629_v51 = vpop.eup %5628  ;;  %v1061_v52 = vsel %vm1045_vm5, %v5627_v48, 0.0 }
 0x390   : > { %v1062_v53 = vsel %vm1045_vm5, %v5629_v51, 0.0 }
 0x391   : > { %v1063_v56 = vadd.f32 %v1062_v53, %v1061_v52 }
 0x393   : > { %v1064_v59 = vrot.slane %v1063_v56, 4 }
 0x395   : > { %v1065_v60 = vadd.f32 %v1064_v59, %v1063_v56 }
 0x397   : > { %v1066_v61 = vrot.slane %v1065_v60, 2 }
 0x399   : > { %v1067_v62 = vadd.f32 %v1066_v61, %v1065_v60 }
 0x39b   : > { %v1068_v0 = vrot.slane %v1067_v62, 1 }
 0x39d   : > { %v1069_v1 = vadd.f32 %v1068_v0, %v1067_v62 }
 0x39f   : > { %5630 = vrcp.f32 %v1069_v1 }
 0x3a9   : > { %v5631_v35 = vpop.eup %5630 }
 0x3aa   : > { %v1071_v2 = vmul.f32 %v5631_v35, %v5627_v48  ;;  %v1072_v3 = vmul.f32 %v5631_v35, %v5629_v51 }
 0x3ac   : > { %v5575_v8 = vpack.i.bf16 %v1072_v3, %v1071_v2 }
 0x3ae   : > { %5576 = vrot.lane.b32.xlu1 %v5575_v8, %s6752_s27 }
 0x3e9   : > { %v840_v12 = vpop.trf.xlu0 }
 0x3ea   : > { %v856_v13 = vmul.f32 %v840_v12, %v820_v10 }
 0x3ec   : > { %5070 = vmatprep.mubr.msk.f32.mxu0 %vm385_vm0, %v856_v13 }
 0x3ed   : > { %v841_v6 = vpop.trf.xlu0 }
 0x3ee   : > { %v857_v15 = vmul.f32 %v841_v6, %v821_v14 }
 0x3f0   : > { %5071 = vmatmul.mubr.msk.f32.vlgmr.msra.gmra.mrb[2].mxu0 %vm385_vm0, %v857_v15 }
 0x3f1   : > { %5077 = vmatprep.mubr.msk.f32.mxu0 %vm385_vm0, %v856_v13 }
 0x420   : > { %v5577_v17 = vpop.permute.xlu1 %5576 }
 0x421   : > { %v5579_v18 = vunpack.i.h.bf16 %v5577_v17  ;;  %v5578_v19 = vunpack.i.l.bf16 %v5577_v17 }
 0x423   : > { %v5387_v23 = vpack.c.bf16 %v5579_v18, %v5578_v19 }
 0x4c3   : > { %v5072_v20 = vpop.f32.mrb[2].mxu0 }
 0x4c4   : > { %940 = vst.msk [vmem:[#allocation2 + $0x8] sm:$0xff] %vm385_vm0, %v5072_v20  ;;  %v930_v22 = vpop.f32.mrb[3].mxu0 }
 0x4c5   : > { %939 = vst.msk [vmem:[#allocation2] sm:$0xff] %vm385_vm0, %v930_v22  ;;  %v5383_v63 = vpack.c.bf16 %v5072_v20, %v930_v22 }
 0x4c7   : > { %5384 = vmatprep.subr.bf16.mxu0 %v5383_v63 }
 0x4c8   : > { %5386 = vmatpush3.bf16.msra.mxu0 %v5383_v63 }
 0x4c9   : > { %5388 = vmatprep.subr.bf16.mxu0 %v5387_v23 }
 0x4cb   : > { %5078 = vmatmul.mubr.msk.f32.vlgmr.msra.gmra.mrb[4].mxu0 %vm385_vm0, %v857_v15 }
 0x4cc   : > { %5390 = vmatpush3.bf16.msra.mxu0 %v5387_v23  ;;  %5084 = vmatprep.mubr.msk.f32.mxu0 %vm385_vm0, %v6085_v50 }
 0x4cd   : > { %5392 = vmatprep.subr.bf16.mxu0 %v5993_v11 }
 0x4cf   : > { %5085 = vmatmul.mubr.msk.f32.vlgmr.msra.gmra.mrb[6].mxu0 %vm385_vm0, %v6114_v55 }
 0x4d0   : > { %5394 = vmatpush3.bf16.msra.mxu0 %v5993_v11 }
 0x59e   : > { %v5079_v34 = vpop.f32.mrb[4].mxu0 }
 0x59f   : > { %v1017_v24 = vmul.f32 2.0, %v5079_v34  ;;  %v1007_v25 = vpop.f32.mrb[5].mxu0 }
 0x5a0   : > { %v1016_v30 = vmul.f32 2.0, %v1007_v25 }
 0x5a1   : > { %v1019_v31 = vsub.f32 %v1017_v24, %v5960_v5 }
 0x5a2   : > { %v1018_v33 = vsub.f32 %v1016_v30, %v5957_v4  ;;  %v5086_v48 = vpop.f32.mrb[6].mxu0 }
 0x5a3   : > { %1022 = vst.msk [vmem:[#allocation2 + $0x88] sm:$0xff] %vm385_vm0, %v1019_v31  ;;  %v1157_v51 = vsel %vm385_vm0, %v5086_v48, -inf  ;;  %v1147_v52 = vpop.f32.mrb[7].mxu0 }
 0x5a4   : > { %1021 = vst.msk [vmem:[#allocation2 + $0x80] sm:$0xff] %vm385_vm0, %v1018_v33  ;;  %v1156_v53 = vsel %vm385_vm0, %v1147_v52, -inf }
 0x5a5   : > { %v1158_v56 = vmax.f32 %v1156_v53, %v1157_v51 }
 0x5a7   : > { %v1159_v11 = vrot.slane %v1158_v56, 4 }
 0x5a9   : > { %v1160_v59 = vmax.f32 %v1158_v56, %v1159_v11 }
 0x5ab   : > { %v1161_v60 = vrot.slane %v1160_v59, 2 }
 0x5ad   : > { %v1162_v61 = vmax.f32 %v1160_v59, %v1161_v60 }
 0x5af   : > { %v1163_v62 = vrot.slane %v1162_v61, 1 }
 0x5b1   : > { %v1164_v0 = vmax.f32 %v1162_v61, %v1163_v62 }
 0x5b3   : > { %v1165_v5 = vsub.f32 %v1147_v52, %v1164_v0  ;;  %v1166_v1 = vsub.f32 %v5086_v48, %v1164_v0 }
 0x5b5   : > { %v1167_v4 = vmul.f32 1.442695, %v1165_v5  ;;  %v1169_v35 = vmul.f32 1.442695, %v1166_v1 }
 0x5b7   : > { %5632 = vpow2.f32 %v1167_v4 }
 0x5b8   : > { %5634 = vpow2.f32 %v1169_v35 }
 0x5c1   : > { %v5633_v2 = vpop.eup %5632 }
 0x5c2   : > { %v5635_v3 = vpop.eup %5634  ;;  %v1171_v8 = vsel %vm385_vm0, %v5633_v2, 0.0 }
 0x5c3   : > { %v1172_v10 = vsel %vm385_vm0, %v5635_v3, 0.0 }
 0x5c4   : > { %v1173_v12 = vadd.f32 %v1172_v10, %v1171_v8 }
 0x5c6   : > { %v1174_v13 = vrot.slane %v1173_v12, 4 }
 0x5c8   : > { %v1175_v14 = vadd.f32 %v1174_v13, %v1173_v12 }
 0x5ca   : > { %v1176_v6 = vrot.slane %v1175_v14, 2 }
 0x5cc   : > { %v1177_v15 = vadd.f32 %v1176_v6, %v1175_v14 }
 0x5ce   : > { %v1178_v17 = vrot.slane %v1177_v15, 1 }
 0x5d0   : > { %v1179_v18 = vadd.f32 %v1178_v17, %v1177_v15 }
 0x5d2   : > { %5636 = vrcp.f32 %v1179_v18 }
 0x5dc   : > { %v5637_v19 = vpop.eup %5636 }
 0x5dd   : > { %v1182_v20 = vmul.f32 %v5637_v19, %v5635_v3  ;;  %v1181_v22 = vmul.f32 %v5637_v19, %v5633_v2 }
 0x5df   : > { %v1184_v63 = vmul.f32 %v1182_v20, %v6132_v49  ;;  %v1183_v23 = vmul.f32 %v1181_v22, %v6127_v32 }
 0x5e1   : > { %v1188_v34 = vsel %vm385_vm0, %v1184_v63, 0.0  ;;  %v1185_v24 = vsel %vm385_vm0, %v1183_v23, 0.0 }
 0x5e2   : > { %1189 = vadd.xlane.f32.xlu0 %v1188_v34  ;;  %1186 = vadd.xlane.f32.xlu1 %v1185_v24 }
 0x5f8   : > { %1401 = vperm.xlu0 %5573, %v6060_v37  }
 0x5fc   : > { %1406 = vperm.xlu0 %5573, %v6058_v36  }
 0x600   : > { %1411 = vrot.lane.b32.xlu0 %v6097_v57, %s5830_s28 }
 0x604   : > { %1413 = vrot.lane.b32.xlu0 %v6102_v58, %s5830_s28 }
 0x66f   : > { %v1190_v25 = vpop.xlane.xlu0 %1189  ;;  %v1187_v30 = vpop.xlane.xlu1 %1186 }
 0x670   : > { %5638 = vrsqrt.f32 %v1190_v25  ;;  %vm1191_vm6 = vcmp.gt.f32.partialorder %v1187_v30, 0.0  ;;  %vm1192_vm7 = vcmp.gt.f32.partialorder %v1190_v25, 0.0 }
 0x671   : > { %5640 = vrsqrt.f32 %v1187_v30 }
 0x677   : > { %v1402_v31 = vpop.permute.xlu0 %1401 }
 0x678   : > { %v1409_v56 = vmul.f32 %v1402_v31, %v6091_v54 }
 0x67a   : > { %v5639_v33 = vpop.eup %5638 }
 0x67b   : > { %v5641_v48 = vpop.eup %5640  ;;  %v1407_v51 = vpop.permute.xlu0 %1406  ;;  %v1196_v36 = vsel %vm1192_vm7, %v5639_v33, 0.0  ;;  %vm3289_vm7 = vcmask 1048448  }
 0x67c   : > { %v1195_v52 = vsel %vm1191_vm6, %v5641_v48, 0.0  ;;  %v1200_v11 = vmul.f32 %v1196_v36, %v1184_v63  ;;  %v1410_v59 = vmul.f32 %v1407_v51, %v6091_v54 }
 0x67d   : > { %v1199_v37 = vmul.f32 %v1195_v52, %v1183_v23  ;;  %v1197_v51 = vsub.f32 0.0, %v1195_v52 }
 0x67f   : > { %1201 = vxpose.xlu1.b32.start [1/2] (short) (narrow) %v1199_v37, 16  ;;  %v1412_v53 = vpop.permute.xlu0 %1411 }
 0x680   : > { %v1417_v60 = vadd.f32 %v1412_v53, %v1409_v56  ;;  %v1198_v56 = vsub.f32 0.0, %v1196_v36 }
 0x682   : > { %v1420_v0 = vsel %vm1419_vm8, %v1417_v60, -inf }
 0x683   : > { %1202 = vxpose.xlu1.b32.end [2/2] (short) (narrow) %v1200_v11, 16  ;;  %v1414_v61 = vpop.permute.xlu0 %1413 }
 0x684   : > { %v1418_v62 = vadd.f32 %v1414_v61, %v1410_v59 }
 0x686   : > { %v1421_v5 = vsel %vm1419_vm8, %v1418_v62, -inf }
 0x687   : > { %v1422_v1 = vmax.f32 %v1420_v0, %v1421_v5 }
 0x689   : > { %v1423_v4 = vrot.slane %v1422_v1, 4 }
 0x68b   : > { %v1424_v35 = vmax.f32 %v1422_v1, %v1423_v4 }
 0x68d   : > { %v1425_v2 = vrot.slane %v1424_v35, 2 }
 0x68f   : > { %v1426_v3 = vmax.f32 %v1424_v35, %v1425_v2 }
 0x691   : > { %v1427_v8 = vrot.slane %v1426_v3, 1 }
 0x693   : > { %v1428_v10 = vmax.f32 %v1426_v3, %v1427_v8 }
 0x695   : > { %v1429_v12 = vsub.f32 %v1417_v60, %v1428_v10  ;;  %v1430_v13 = vsub.f32 %v1418_v62, %v1428_v10 }
 0x697   : > { %v1431_v14 = vmul.f32 1.442695, %v1429_v12  ;;  %v1433_v6 = vmul.f32 1.442695, %v1430_v13 }
 0x699   : > { %5642 = vpow2.f32 %v1431_v14 }
 0x69a   : > { %5644 = vpow2.f32 %v1433_v6 }
 0x6a1   : > { %1785 = vrot.lane.b32.xlu1 %v6097_v57, %s5831_s29 }
 0x6a3   : > { %v5643_v15 = vpop.eup %5642 }
 0x6a4   : > { %v5645_v17 = vpop.eup %5644  ;;  %v1435_v18 = vsel %vm1419_vm8, %v5643_v15, 0.0 }
 0x6a5   : > { %v1436_v19 = vsel %vm1419_vm8, %v5645_v17, 0.0 }
 0x6a6   : > { %v1437_v20 = vadd.f32 %v1436_v19, %v1435_v18 }
 0x6a8   : > { %v1438_v22 = vrot.slane %v1437_v20, 4 }
 0x6aa   : > { %v1439_v63 = vadd.f32 %v1438_v22, %v1437_v20 }
 0x6ac   : > { %v1440_v23 = vrot.slane %v1439_v63, 2 }
 0x6ae   : > { %v1441_v34 = vadd.f32 %v1440_v23, %v1439_v63 }
 0x6b0   : > { %v1442_v24 = vrot.slane %v1441_v34, 1 }
 0x6b2   : > { %v1443_v25 = vadd.f32 %v1442_v24, %v1441_v34 }
 0x6b4   : > { %5646 = vrcp.f32 %v1443_v25 }
 0x6be   : > { %v5647_v30 = vpop.eup %5646 }
 0x6bf   : > { %v1445_v31 = vmul.f32 %v5647_v30, %v5643_v15  ;;  %v1446_v33 = vmul.f32 %v5647_v30, %v5645_v17 }
 0x6c1   : > { %v5580_v48 = vpack.i.bf16 %v1446_v33, %v1445_v31 }
 0x6c3   : > { %5581 = vrot.lane.b32.xlu0 %v5580_v48, %s6754_s30 }
 0x6c7   : > { %1775 = vperm.xlu0 %5573, %v6064_v39  }
 0x6cb   : > { %1780 = vperm.xlu0 %5573, %v6062_v38  }
 0x6cf   : > { %1787 = vrot.lane.b32.xlu0 %v6102_v58, %s5831_s29 }
 0x6ff   : > { %v1217_v37 = vpop.trf.xlu1 }
 0x700   : > { %v1233_v53 = vmul.f32 %v1217_v37, %v1197_v51 }
 0x702   : > { %5091 = vmatprep.mubr.msk.f32.mxu0 %vm385_vm0, %v1233_v53 }
 0x703   : > { %v1218_v11 = vpop.trf.xlu1 }
 0x704   : > { %v1234_v59 = vmul.f32 %v1218_v11, %v1198_v56 }
 0x706   : > { %5092 = vmatmul.mubr.msk.f32.vlgmr.msra.gmra.mrb[8].mxu0 %vm385_vm0, %v1234_v59 }
 0x707   : > { %5098 = vmatprep.mubr.msk.f32.mxu0 %vm385_vm0, %v1233_v53 }
 0x713   : > { %v1786_v38 = vpop.permute.xlu1 %1785 }
 0x735   : > { %v5582_v60 = vpop.permute.xlu0 %5581 }
 0x736   : > { %v5584_v53 = vunpack.i.h.bf16 %v5582_v60  ;;  %v5583_v56 = vunpack.i.l.bf16 %v5582_v60 }
 0x746   : > { %v1776_v61 = vpop.permute.xlu0 %1775 }
 0x747   : > { %v1783_v39 = vmul.f32 %v1776_v61, %v6091_v54 }
 0x749   : > { %v1791_v0 = vadd.f32 %v1786_v38, %v1783_v39  ;;  %v5399_v38 = vpack.c.bf16 %v5584_v53, %v5583_v56 }
 0x74a   : > { %v1781_v62 = vpop.permute.xlu0 %1780 }
 0x74b   : > { %v1784_v52 = vmul.f32 %v1781_v62, %v6091_v54  ;;  %v1794_v36 = vsel %vm1793_vm9, %v1791_v0, -inf }
 0x74e   : > { %v1788_v5 = vpop.permute.xlu0 %1787 }
 0x74f   : > { %v1792_v1 = vadd.f32 %v1788_v5, %v1784_v52 }
 0x751   : > { %v1795_v4 = vsel %vm1793_vm9, %v1792_v1, -inf }
 0x752   : > { %v1796_v35 = vmax.f32 %v1794_v36, %v1795_v4 }
 0x754   : > { %v1797_v2 = vrot.slane %v1796_v35, 4 }
 0x756   : > { %v1798_v3 = vmax.f32 %v1796_v35, %v1797_v2 }
 0x758   : > { %v1799_v8 = vrot.slane %v1798_v3, 2 }
 0x75a   : > { %v1800_v10 = vmax.f32 %v1798_v3, %v1799_v8 }
 0x75c   : > { %v1801_v12 = vrot.slane %v1800_v10, 1 }
 0x75e   : > { %v1802_v13 = vmax.f32 %v1800_v10, %v1801_v12 }
 0x760   : > { %v1803_v14 = vsub.f32 %v1791_v0, %v1802_v13  ;;  %v1804_v6 = vsub.f32 %v1792_v1, %v1802_v13 }
 0x762   : > { %v1805_v15 = vmul.f32 1.442695, %v1803_v14  ;;  %v1807_v17 = vmul.f32 1.442695, %v1804_v6 }
 0x764   : > { %5648 = vpow2.f32 %v1805_v15 }
 0x765   : > { %5650 = vpow2.f32 %v1807_v17 }
 0x76e   : > { %v5649_v18 = vpop.eup %5648 }
 0x76f   : > { %v5651_v19 = vpop.eup %5650  ;;  %v1809_v20 = vsel %vm1793_vm9, %v5649_v18, 0.0 }
 0x770   : > { %v1810_v22 = vsel %vm1793_vm9, %v5651_v19, 0.0 }
 0x771   : > { %v1811_v63 = vadd.f32 %v1810_v22, %v1809_v20 }
 0x773   : > { %v1812_v23 = vrot.slane %v1811_v63, 4 }
 0x775   : > { %v1813_v34 = vadd.f32 %v1812_v23, %v1811_v63 }
 0x777   : > { %v1814_v24 = vrot.slane %v1813_v34, 2 }
 0x779   : > { %v1815_v25 = vadd.f32 %v1814_v24, %v1813_v34 }
 0x77b   : > { %v1816_v30 = vrot.slane %v1815_v25, 1 }
 0x77d   : > { %v1817_v31 = vadd.f32 %v1816_v30, %v1815_v25 }
 0x77f   : > { %5652 = vrcp.f32 %v1817_v31 }
 0x789   : > { %v5653_v33 = vpop.eup %5652 }
 0x78a   : > { %v1819_v48 = vmul.f32 %v5653_v33, %v5649_v18  ;;  %v1820_v51 = vmul.f32 %v5653_v33, %v5651_v19 }
 0x78c   : > { %v5585_v37 = vpack.i.bf16 %v1820_v51, %v1819_v48 }
 0x78e   : > { %5586 = vrot.lane.b32.xlu0 %v5585_v37, %s6756_s11 }
 0x7d9   : > { %v5093_v11 = vpop.f32.mrb[8].mxu0 }
 0x7da   : > { %1317 = vst.msk [vmem:[#allocation2 + $0x18] sm:$0xff] %vm385_vm0, %v5093_v11  ;;  %v1307_v61 = vpop.f32.mrb[9].mxu0 }
 0x7db   : > { %1316 = vst.msk [vmem:[#allocation2 + $0x10] sm:$0xff] %vm385_vm0, %v1307_v61  ;;  %v5395_v39 = vpack.c.bf16 %v5093_v11, %v1307_v61 }
 0x7dd   : > { %5396 = vmatprep.subr.bf16.mxu0 %v5395_v39 }
 0x7de   : > { %5398 = vmatpush3.bf16.msra.mxu0 %v5395_v39 }
 0x7df   : > { %5400 = vmatprep.subr.bf16.mxu0 %v5399_v38 }
 0x7e1   : > { %5099 = vmatmul.mubr.msk.f32.vlgmr.msra.gmra.mrb[10].mxu0 %vm385_vm0, %v1234_v59 }
 0x7e2   : > { %5402 = vmatpush3.bf16.msra.mxu0 %v5399_v38  ;;  %5105 = vmatprep.mubr.msk.f32.mxu0 %vm385_vm0, %v6085_v50 }
 0x7e3   : > { %5404 = vmatprep.subr.bf16.mxu0 %v6006_v16 }
 0x7e5   : > { %5106 = vmatmul.mubr.msk.f32.vlgmr.msra.gmra.mrb[12].mxu0 %vm385_vm0, %v6114_v55 }
 0x7e6   : > { %5406 = vmatpush3.bf16.msra.mxu0 %v6006_v16 }
 0x800   : > { %v5587_v60 = vpop.permute.xlu0 %5586 }
 0x801   : > { %v5589_v62 = vunpack.i.h.bf16 %v5587_v60  ;;  %v5588_v0 = vunpack.i.l.bf16 %v5587_v60 }
 0x803   : > { %v5411_v52 = vpack.c.bf16 %v5589_v62, %v5588_v0 }
 0x805   : > { %5412 = vmatprep.subr.bf16.mxu1 %v5411_v52 }
 0x806   : > { %5414 = vmatpush3.bf16.msra.mxu1 %v5411_v52 }
 0x809   : > { %5127 = vmatmul.mubr.msk.f32.vlgmr.msra.gmra.mrb[18].mxu1 %vm385_vm0, %v6114_v55 }
 0x8b4   : > { %v5100_v59 = vpop.f32.mrb[10].mxu0 }
 0x8b5   : > { %v1394_v5 = vmul.f32 2.0, %v5100_v59  ;;  %v1384_v1 = vpop.f32.mrb[11].mxu0 }
 0x8b6   : > { %v1393_v50 = vmul.f32 2.0, %v1384_v1 }
 0x8b7   : > { %v1396_v36 = vsub.f32 %v1394_v5, %v5985_v9 }
 0x8b8   : > { %v1395_v4 = vsub.f32 %v1393_v50, %v5971_v7  ;;  %v5107_v35 = vpop.f32.mrb[12].mxu0 }
 0x8b9   : > { %1398 = vst.msk [vmem:[#allocation2 + $0x98] sm:$0xff] %vm385_vm0, %v1396_v36  ;;  %v1531_v16 = vsel %vm385_vm0, %v5107_v35, -inf  ;;  %v1521_v2 = vpop.f32.mrb[13].mxu0 }
 0x8ba   : > { %1397 = vst.msk [vmem:[#allocation2 + $0x90] sm:$0xff] %vm385_vm0, %v1395_v4  ;;  %v1530_v3 = vsel %vm385_vm0, %v1521_v2, -inf }
 0x8bb   : > { %v1532_v8 = vmax.f32 %v1530_v3, %v1531_v16 }
 0x8bd   : > { %v1533_v55 = vrot.slane %v1532_v8, 4 }
 0x8bf   : > { %v1534_v10 = vmax.f32 %v1532_v8, %v1533_v55 }
 0x8c1   : > { %v1535_v12 = vrot.slane %v1534_v10, 2 }
 0x8c3   : > { %v1536_v13 = vmax.f32 %v1534_v10, %v1535_v12 }
 0x8c5   : > { %v1537_v14 = vrot.slane %v1536_v13, 1 }
 0x8c7   : > { %v1538_v6 = vmax.f32 %v1536_v13, %v1537_v14 }
 0x8c9   : > { %v1539_v9 = vsub.f32 %v1521_v2, %v1538_v6  ;;  %v1540_v15 = vsub.f32 %v5107_v35, %v1538_v6 }
 0x8cb   : > { %v1541_v7 = vmul.f32 1.442695, %v1539_v9  ;;  %v1543_v17 = vmul.f32 1.442695, %v1540_v15 }
 0x8cd   : > { %5654 = vpow2.f32 %v1541_v7 }
 0x8ce   : > { %5656 = vpow2.f32 %v1543_v17 }
 0x8d7   : > { %v5655_v18 = vpop.eup %5654 }
 0x8d8   : > { %v5657_v19 = vpop.eup %5656  ;;  %v1545_v20 = vsel %vm385_vm0, %v5655_v18, 0.0 }
 0x8d9   : > { %v1546_v22 = vsel %vm385_vm0, %v5657_v19, 0.0 }
 0x8da   : > { %v1547_v63 = vadd.f32 %v1546_v22, %v1545_v20 }
 0x8dc   : > { %v1548_v23 = vrot.slane %v1547_v63, 4  ;;  %v5128_v34 = vpop.f32.mrb[18].mxu1 }
 0x8dd   : > { %v1905_v24 = vsel %vm385_vm0, %v5128_v34, -inf  ;;  %v1895_v25 = vpop.f32.mrb[19].mxu1 }
 0x8de   : > { %v1549_v30 = vadd.f32 %v1548_v23, %v1547_v63  ;;  %v1904_v31 = vsel %vm385_vm0, %v1895_v25, -inf }
 0x8df   : > { %v1906_v33 = vmax.f32 %v1904_v31, %v1905_v24 }
 0x8e0   : > { %v1550_v48 = vrot.slane %v1549_v30, 2 }
 0x8e1   : > { %v1907_v51 = vrot.slane %v1906_v33, 4 }
 0x8e2   : > { %v1551_v37 = vadd.f32 %v1550_v48, %v1549_v30 }
 0x8e3   : > { %v1908_v53 = vmax.f32 %v1906_v33, %v1907_v51 }
 0x8e4   : > { %v1552_v56 = vrot.slane %v1551_v37, 1 }
 0x8e5   : > { %v1909_v11 = vrot.slane %v1908_v53, 2 }
 0x8e6   : > { %v1553_v61 = vadd.f32 %v1552_v56, %v1551_v37 }
 0x8e7   : > { %v1910_v39 = vmax.f32 %v1908_v53, %v1909_v11 }
 0x8e8   : > { %5658 = vrcp.f32 %v1553_v61 }
 0x8e9   : > { %v1911_v38 = vrot.slane %v1910_v39, 1 }
 0x8eb   : > { %v1912_v60 = vmax.f32 %v1910_v39, %v1911_v38 }
 0x8ed   : > { %v1913_v62 = vsub.f32 %v1895_v25, %v1912_v60  ;;  %v1914_v0 = vsub.f32 %v5128_v34, %v1912_v60 }
 0x8ef   : > { %v1915_v52 = vmul.f32 1.442695, %v1913_v62  ;;  %v1917_v59 = vmul.f32 1.442695, %v1914_v0 }
 0x8f1   : > { %5660 = vpow2.f32 %v1915_v52 }
 0x8f2   : > { %v5659_v5 = vpop.eup %5658  ;;  %5662 = vpow2.f32 %v1917_v59 }
 0x8f3   : > { %v1556_v1 = vmul.f32 %v5659_v5, %v5657_v19  ;;  %v1555_v50 = vmul.f32 %v5659_v5, %v5655_v18 }
 0x8f5   : > { %v1558_v36 = vmul.f32 %v1556_v1, %v6132_v49  ;;  %v1557_v4 = vmul.f32 %v1555_v50, %v6127_v32 }
 0x8f7   : > { %v1562_v35 = vsel %vm385_vm0, %v1558_v36, 0.0  ;;  %v1559_v16 = vsel %vm385_vm0, %v1557_v4, 0.0 }
 0x8f8   : > { %1563 = vadd.xlane.f32.xlu1 %v1562_v35  ;;  %1560 = vadd.xlane.f32.xlu0 %v1559_v16 }
 0x8fb   : > { %v5661_v2 = vpop.eup %5660 }
 0x8fc   : > { %v5663_v3 = vpop.eup %5662  ;;  %v1919_v8 = vsel %vm385_vm0, %v5661_v2, 0.0 }
 0x8fd   : > { %v1920_v55 = vsel %vm385_vm0, %v5663_v3, 0.0 }
 0x8fe   : > { %v1921_v10 = vadd.f32 %v1920_v55, %v1919_v8 }
 0x900   : > { %v1922_v12 = vrot.slane %v1921_v10, 4 }
 0x902   : > { %v1923_v13 = vadd.f32 %v1922_v12, %v1921_v10 }
 0x904   : > { %v1924_v14 = vrot.slane %v1923_v13, 2 }
 0x906   : > { %v1925_v6 = vadd.f32 %v1924_v14, %v1923_v13 }
 0x908   : > { %v1926_v9 = vrot.slane %v1925_v6, 1 }
 0x909   : > { %2149 = vperm.xlu1 %5574, %v6068_v41  }
 0x90a   : > { %v1927_v15 = vadd.f32 %v1926_v9, %v1925_v6 }
 0x90c   : > { %5664 = vrcp.f32 %v1927_v15 }
 0x90d   : > { %2154 = vperm.xlu1 %5574, %v6066_v40  }
 0x911   : > { %2159 = vrot.lane.b32.xlu1 %v6097_v57, %s6758_s12 }
 0x916   : > { %v5665_v7 = vpop.eup %5664 }
 0x917   : > { %v1929_v17 = vmul.f32 %v5665_v7, %v5661_v2  ;;  %v1930_v18 = vmul.f32 %v5665_v7, %v5663_v3 }
 0x919   : > { %v1931_v19 = vmul.f32 %v1929_v17, %v6127_v32  ;;  %v1932_v22 = vmul.f32 %v1930_v18, %v6132_v49 }
 0x91b   : > { %v1933_v20 = vsel %vm385_vm0, %v1931_v19, 0.0  ;;  %v1936_v41 = vsel %vm385_vm0, %v1932_v22, 0.0 }
 0x935   : > { %1934 = vadd.xlane.f32.xlu1 %v1933_v20 }
 0x939   : > { %1937 = vadd.xlane.f32.xlu1 %v1936_v41 }
 0x985   : > { %v1564_v63 = vpop.xlane.xlu1 %1563  ;;  %v1561_v23 = vpop.xlane.xlu0 %1560 }
 0x986   : > { %5666 = vrsqrt.f32 %v1564_v63  ;;  %vm1565_vm10 = vcmp.gt.f32.partialorder %v1561_v23, 0.0  ;;  %vm1566_vm11 = vcmp.gt.f32.partialorder %v1564_v63, 0.0 }
 0x987   : > { %5668 = vrsqrt.f32 %v1561_v23 }
 0x989   : > { %v2150_v40 = vpop.permute.xlu1 %2149 }
 0x98a   : > { %v2157_v24 = vmul.f32 %v2150_v40, %v6091_v54 }
 0x98d   : > { %v2155_v34 = vpop.permute.xlu1 %2154 }
 0x98e   : > { %v2158_v5 = vmul.f32 %v2155_v34, %v6091_v54 }
 0x990   : > { %v5667_v57 = vpop.eup %5666 }
 0x991   : > { %v5669_v25 = vpop.eup %5668  ;;  %v2160_v32 = vpop.permute.xlu1 %2159  ;;  %v1570_v33 = vsel %vm1566_vm11, %v5667_v57, 0.0 }
 0x992   : > { %v1569_v30 = vsel %vm1565_vm10, %v5669_v25, 0.0  ;;  %v2165_v31 = vadd.f32 %v2160_v32, %v2157_v24  ;;  %v1574_v48 = vmul.f32 %v1570_v33, %v1558_v36 }
 0x993   : > { %v1573_v49 = vmul.f32 %v1569_v30, %v1557_v4  ;;  %v1571_v60 = vsub.f32 0.0, %v1569_v30 }
 0x994   : > { %v2168_v36 = vsel %vm2167_vm14, %v2165_v31, -inf }
 0x995   : > { %1575 = vxpose.xlu0.b32.start [1/2] (short) (narrow) %v1573_v49, 16  ;;  %v6270_v49 = vld [vmem:[%s6744_s3 + $0x8] sm:$0xff] }
 0x999   : > { %1576 = vxpose.xlu0.b32.end [2/2] (short) (narrow) %v1574_v48, 16 }
 0x9c2   : > { %2161 = vrot.lane.b32.xlu0 %v6102_v58, %s6758_s12  ;;  %v1935_v51 = vpop.xlane.xlu1 %1934  ;;  %v1572_v58 = vsub.f32 0.0, %v1570_v33 }
 0x9c3   : > { %5670 = vrsqrt.f32 %v1935_v51  ;;  %vm1939_vm12 = vcmp.gt.f32.partialorder %v1935_v51, 0.0 }
 0x9c6   : > { %v1938_v37 = vpop.xlane.xlu1 %1937 }
 0x9c7   : > { %5672 = vrsqrt.f32 %v1938_v37  ;;  %vm1940_vm13 = vcmp.gt.f32.partialorder %v1938_v37, 0.0 }
 0x9cd   : > { %v5671_v53 = vpop.eup %5670 }
 0x9ce   : > { %v1943_v56 = vsel %vm1939_vm12, %v5671_v53, 0.0 }
 0x9cf   : > { %v1947_v11 = vmul.f32 %v1943_v56, %v1931_v19  ;;  %v1945_v9 = vsub.f32 0.0, %v1943_v56 }
 0x9d1   : > { %v5673_v61 = vpop.eup %5672  ;;  %1949 = vxpose.xlu1.b32.start [1/2] (short) (narrow) %v1947_v11, 16 }
 0x9d2   : > { %v6242_v39 = vsel %vm1940_vm13, %v5673_v61, 0.0 }
 0x9d3   : > { %v1948_v38 = vmul.f32 %v6242_v39, %v1932_v22  ;;  %v1946_v56 = vsub.f32 0.0, %v6242_v39  ;;  %v6293_v39 = vld [vmem:[%s6743_s2 + $0x8] sm:$0xff] }
 0x9d5   : > { %1950 = vxpose.xlu1.b32.end [2/2] (short) (narrow) %v1948_v38, 16  ;;  %v6286_v38 = vld [vmem:[%s6743_s2] sm:$0xff] }
 0xa15   : > { %v1591_v62 = vpop.trf.xlu0 }
 0xa16   : > { %v1607_v0 = vmul.f32 %v1591_v62, %v1571_v60 }
 0xa18   : > { %5112 = vmatprep.mubr.msk.f32.mxu0 %vm385_vm0, %v1607_v0 }
 0xa19   : > { %v1592_v52 = vpop.trf.xlu0 }
 0xa1a   : > { %v6246_v59 = vmul.f32 %v1592_v52, %v1572_v58 }
 0xa1c   : > { %5113 = vmatmul.mubr.msk.f32.vlgmr.msra.gmra.mrb[14].mxu0 %vm385_vm0, %v6246_v59 }
 0xa1d   : > { %5119 = vmatprep.mubr.msk.f32.mxu0 %vm385_vm0, %v1607_v0 }
 0xa34   : > { %v2162_v1 = vpop.permute.xlu0 %2161 }
 0xa35   : > { %v2166_v50 = vadd.f32 %v2162_v1, %v2158_v5 }
 0xa37   : > { %v2169_v4 = vsel %vm2167_vm14, %v2166_v50, -inf }
 0xa38   : > { %v2170_v35 = vmax.f32 %v2168_v36, %v2169_v4 }
 0xa3a   : > { %v2171_v16 = vrot.slane %v2170_v35, 4 }
 0xa3c   : > { %v2172_v2 = vmax.f32 %v2170_v35, %v2171_v16 }
 0xa3e   : > { %v2173_v3 = vrot.slane %v2172_v2, 2 }
 0xa40   : > { %v2174_v8 = vmax.f32 %v2172_v2, %v2173_v3 }
 0xa42   : > { %v2175_v55 = vrot.slane %v2174_v8, 1 }
 0xa44   : > { %v2176_v10 = vmax.f32 %v2174_v8, %v2175_v55  ;;  %v6302_v8 = vld [vmem:[%s5954_s14 + $0x28] sm:$0xff] }
 0xa46   : > { %v2177_v12 = vsub.f32 %v2165_v31, %v2176_v10  ;;  %v2178_v13 = vsub.f32 %v2166_v50, %v2176_v10  ;;  %v6263_v31 = vld [vmem:[%s6744_s3] sm:$0xff] }
 0xa47   : > { %v6306_v10 = vld [vmem:[%s5954_s14 + $0x20] sm:$0xff] }
 0xa48   : > { %v2179_v14 = vmul.f32 1.442695, %v2177_v12  ;;  %v2181_v6 = vmul.f32 1.442695, %v2178_v13 }
 0xa4a   : > { %5674 = vpow2.f32 %v2179_v14 }
 0xa4b   : > { %5676 = vpow2.f32 %v2181_v6 }
 0xa51   : > { %v1965_v15 = vpop.trf.xlu1 }
 0xa52   : > { %v1981_v7 = vmul.f32 %v1965_v15, %v1945_v9 }
 0xa54   : > { %v5675_v17 = vpop.eup %5674  ;;  %5140 = vmatprep.mubr.msk.f32.mxu1 %vm385_vm0, %v1981_v7 }
 0xa55   : > { %v5677_v18 = vpop.eup %5676  ;;  %v2183_v19 = vsel %vm2167_vm14, %v5675_v17, 0.0  ;;  %v1966_v53 = vpop.trf.xlu1 }
 0xa56   : > { %v2184_v20 = vsel %vm2167_vm14, %v5677_v18, 0.0  ;;  %v1982_v61 = vmul.f32 %v1966_v53, %v1946_v56 }
 0xa57   : > { %v2185_v22 = vadd.f32 %v2184_v20, %v2183_v19 }
 0xa59   : > { %v2186_v41 = vrot.slane %v2185_v22, 4 }
 0xa5b   : > { %v2187_v63 = vadd.f32 %v2186_v41, %v2185_v22 }
 0xa5d   : > { %v2188_v23 = vrot.slane %v2187_v63, 2 }
 0xa5f   : > { %v2189_v40 = vadd.f32 %v2188_v23, %v2187_v63 }
 0xa61   : > { %v2190_v34 = vrot.slane %v2189_v40, 1 }
 0xa63   : > { %v2191_v57 = vadd.f32 %v2190_v34, %v2189_v40 }
 0xa65   : > { %5678 = vrcp.f32 %v2191_v57 }
 0xa6f   : > { %v5679_v24 = vpop.eup %5678 }
 0xa70   : > { %v2193_v25 = vmul.f32 %v5679_v24, %v5675_v17  ;;  %v2194_v32 = vmul.f32 %v5679_v24, %v5677_v18 }
 0xa72   : > { %v5590_v30 = vpack.i.bf16 %v2194_v32, %v2193_v25 }
 0xa74   : > { %5591 = vrot.lane.b32.xlu0 %v5590_v30, %s6758_s12 }
 0xa78   : > { %2523 = vperm.xlu0 %5573, %v6072_v43  }
 0xa7c   : > { %2528 = vperm.xlu0 %5573, %v6070_v42  }
 0xa80   : > { %2533 = vrot.lane.b32.xlu0 %v6263_v31, %s6756_s11 }
 0xa84   : > { %2535 = vrot.lane.b32.xlu0 %v6270_v49, %s6756_s11  ;;  %s4792_s11 = sshll.u32 %s5917_s9, 8 }
 0xae6   : > { %v5592_v43 = vpop.permute.xlu0 %5591 }
 0xae7   : > { %v5594_v51 = vunpack.i.h.bf16 %v5592_v43  ;;  %v5593_v37 = vunpack.i.l.bf16 %v5592_v43 }
 0xae9   : > { %v5423_v11 = vpack.c.bf16 %v5594_v51, %v5593_v37 }
 0xaef   : > { %v5114_v33 = vpop.f32.mrb[14].mxu0 }
 0xaf0   : > { %1691 = vst.msk [vmem:[#allocation2 + $0x28] sm:$0xff] %vm385_vm0, %v5114_v33  ;;  %v1681_v42 = vpop.f32.mrb[15].mxu0 }
 0xaf1   : > { %1690 = vst.msk [vmem:[#allocation2 + $0x20] sm:$0xff] %vm385_vm0, %v1681_v42  ;;  %v5407_v48 = vpack.c.bf16 %v5114_v33, %v1681_v42 }
 0xaf3   : > { %5408 = vmatprep.subr.bf16.mxu0 %v5407_v48 }
 0xaf4   : > { %5410 = vmatpush3.bf16.msra.mxu0 %v5407_v48 }
 0xaf5   : > { %5416 = vmatprep.subr.bf16.mxu0 %v6019_v21 }
 0xaf7   : > { %5120 = vmatmul.mubr.msk.f32.vlgmr.msra.gmra.mrb[16].mxu0 %vm385_vm0, %v6246_v59 }
 0xaf8   : > { %5418 = vmatpush3.bf16.msra.mxu0 %v6019_v21  ;;  %5133 = vmatprep.mubr.msk.f32.mxu0 %vm385_vm0, %v1981_v7  ;;  %v2524_v21 = vpop.permute.xlu0 %2523 }
 0xaf9   : > { %5424 = vmatprep.subr.bf16.mxu0 %v5423_v11  ;;  %v2531_v52 = vmul.f32 %v2524_v21, %v6091_v54 }
 0xafb   : > { %5134 = vmatmul.mubr.msk.f32.vlgmr.msra.gmra.mrb[18].mxu0 %vm385_vm0, %v1982_v61 }
 0xafc   : > { %5426 = vmatpush3.bf16.msra.mxu0 %v5423_v11  ;;  %5147 = vmatprep.mubr.msk.f32.mxu0 %vm385_vm0, %v6286_v38  ;;  %v2529_v60 = vpop.permute.xlu0 %2528 }
 0xafd   : > { %v2532_v58 = vmul.f32 %v2529_v60, %v6091_v54 }
 0xaff   : > { %5148 = vmatmul.mubr.msk.f32.vlgmr.msra.gmra.mrb[20].mxu0 %vm385_vm0, %v6293_v39 }
 0xb00   : > { %v2534_v62 = vpop.permute.xlu0 %2533 }
 0xb01   : > { %v2539_v5 = vadd.f32 %v2534_v62, %v2531_v52 }
 0xb03   : > { %v2542_v50 = vsel %vm2541_vm15, %v2539_v5, -inf }
 0xb04   : > { %v2536_v0 = vpop.permute.xlu0 %2535 }
 0xb05   : > { %v2540_v59 = vadd.f32 %v2536_v0, %v2532_v58 }
 0xb07   : > { %v2543_v1 = vsel %vm2541_vm15, %v2540_v59, -inf }
 0xb08   : > { %v2544_v36 = vmax.f32 %v2542_v50, %v2543_v1 }
 0xb0a   : > { %v2545_v2 = vrot.slane %v2544_v36, 4 }
 0xb0c   : > { %v2546_v6 = vmax.f32 %v2544_v36, %v2545_v2 }
 0xb0e   : > { %v2547_v18 = vrot.slane %v2546_v6, 2 }
 0xb10   : > { %v2548_v41 = vmax.f32 %v2546_v6, %v2547_v18 }
 0xb12   : > { %v2549_v40 = vrot.slane %v2548_v41, 1 }
 0xb14   : > { %v2550_v24 = vmax.f32 %v2548_v41, %v2549_v40 }
 0xb16   : > { %v2551_v33 = vsub.f32 %v2539_v5, %v2550_v24  ;;  %v2552_v43 = vsub.f32 %v2540_v59, %v2550_v24 }
 0xb18   : > { %v2553_v51 = vmul.f32 1.442695, %v2551_v33  ;;  %v2555_v37 = vmul.f32 1.442695, %v2552_v43 }
 0xbca   : > { %v5121_v4 = vpop.f32.mrb[16].mxu0 }
 0xbcb   : > { %v1768_v35 = vmul.f32 2.0, %v5121_v4  ;;  %v1758_v16 = vpop.f32.mrb[17].mxu0 }
 0xbcc   : > { %v1767_v3 = vmul.f32 2.0, %v1758_v16 }
 0xbcd   : > { %v1770_v55 = vsub.f32 %v1768_v35, %v6302_v8 }
 0xbce   : > { %v1769_v12 = vsub.f32 %v1767_v3, %v6306_v10  ;;  %v5135_v13 = vpop.f32.mrb[18].mxu0 }
 0xbcf   : > { %1772 = vst.msk [vmem:[#allocation2 + $0xa8] sm:$0xff] %vm385_vm0, %v1770_v55  ;;  %2065 = vst.msk [vmem:[#allocation2 + $0x38] sm:$0xff] %vm385_vm0, %v5135_v13  ;;  %v2055_v14 = vpop.f32.mrb[19].mxu0 }
 0xbd0   : > { %1771 = vst.msk [vmem:[#allocation2 + $0xa0] sm:$0xff] %vm385_vm0, %v1769_v12  ;;  %2064 = vst.msk [vmem:[#allocation2 + $0x30] sm:$0xff] %vm385_vm0, %v2055_v14  ;;  %v5419_v9 = vpack.c.bf16 %v5135_v13, %v2055_v14  ;;  %v6325_v13 = vld [vmem:[%s6742_s1] sm:$0xff] }
 0xbd2   : > { %5420 = vmatprep.subr.bf16.mxu1 %v5419_v9  ;;  %v5149_v15 = vpop.f32.mrb[20].mxu0 }
 0xbd3   : > { %v2279_v7 = vsel %vm385_vm0, %v5149_v15, -inf  ;;  %5422 = vmatpush3.bf16.msra.mxu1 %v5419_v9  ;;  %v2269_v17 = vpop.f32.mrb[21].mxu0  ;;  %v6332_v9 = vld [vmem:[%s6742_s1 + $0x8] sm:$0xff] }
 0xbd4   : > { %v2278_v19 = vsel %vm385_vm0, %v2269_v17, -inf  ;;  %5428 = vmatprep.subr.bf16.mxu1 %v6030_v26 }
 0xbd5   : > { %v2280_v20 = vmax.f32 %v2278_v19, %v2279_v7 }
 0xbd6   : > { %5141 = vmatmul.mubr.msk.f32.vlgmr.msra.gmra.mrb[20].mxu1 %vm385_vm0, %v1982_v61 }
 0xbd7   : > { %v2281_v22 = vrot.slane %v2280_v20, 4  ;;  %5430 = vmatpush3.bf16.msra.mxu1 %v6030_v26 }
 0xbd9   : > { %v2282_v63 = vmax.f32 %v2280_v20, %v2281_v22 }
 0xbdb   : > { %v2283_v23 = vrot.slane %v2282_v63, 2 }
 0xbdd   : > { %v2284_v34 = vmax.f32 %v2282_v63, %v2283_v23 }
 0xbdf   : > { %v2285_v57 = vrot.slane %v2284_v34, 1 }
 0xbe1   : > { %v2286_v25 = vmax.f32 %v2284_v34, %v2285_v57 }
 0xbe3   : > { %v2287_v32 = vsub.f32 %v2269_v17, %v2286_v25  ;;  %v2288_v30 = vsub.f32 %v5149_v15, %v2286_v25 }
 0xbe5   : > { %v2289_v42 = vmul.f32 1.442695, %v2287_v32  ;;  %v2291_v48 = vmul.f32 1.442695, %v2288_v30 }
 0xbe7   : > { %5680 = vpow2.f32 %v2289_v42 }
 0xbe8   : > { %5682 = vpow2.f32 %v2291_v48  ;;  %v6343_v48 = vld [vmem:[%s5954_s14 + $0x38] sm:$0xff] }
 0xbe9   : > { %5684 = vpow2.f32 %v2553_v51 }
 0xbea   : > { %5686 = vpow2.f32 %v2555_v37  ;;  %v6347_v37 = vld [vmem:[%s5954_s14 + $0x30] sm:$0xff] }
 0xbf1   : > { %v5681_v26 = vpop.eup %5680 }
 0xbf2   : > { %v5683_v53 = vpop.eup %5682  ;;  %v2293_v56 = vsel %vm385_vm0, %v5681_v26, 0.0 }
 0xbf3   : > { %v2294_v11 = vsel %vm385_vm0, %v5683_v53, 0.0  ;;  %v5685_v21 = vpop.eup %5684 }
 0xbf4   : > { %v2295_v61 = vadd.f32 %v2294_v11, %v2293_v56  ;;  %v5687_v62 = vpop.eup %5686  ;;  %v2557_v58 = vsel %vm2541_vm15, %v5685_v21, 0.0 }
 0xbf5   : > { %v2558_v52 = vsel %vm2541_vm15, %v5687_v62, 0.0 }
 0xbf6   : > { %v2296_v60 = vrot.slane %v2295_v61, 4  ;;  %v2559_v1 = vadd.f32 %v2558_v52, %v2557_v58 }
 0xbf8   : > { %v2297_v0 = vadd.f32 %v2296_v60, %v2295_v61  ;;  %v2560_v4 = vrot.slane %v2559_v1, 4 }
 0xbfa   : > { %v2298_v59 = vrot.slane %v2297_v0, 2  ;;  %v2561_v35 = vadd.f32 %v2560_v4, %v2559_v1 }
 0xbfc   : > { %v2299_v5 = vadd.f32 %v2298_v59, %v2297_v0  ;;  %v2562_v16 = vrot.slane %v2561_v35, 2 }
 0xbfe   : > { %v2300_v50 = vrot.slane %v2299_v5, 1  ;;  %v2563_v12 = vadd.f32 %v2562_v16, %v2561_v35 }
 0xc00   : > { %v2301_v36 = vadd.f32 %v2300_v50, %v2299_v5  ;;  %v2564_v7 = vrot.slane %v2563_v12, 1 }
 0xc02   : > { %5688 = vrcp.f32 %v2301_v36  ;;  %v2565_v18 = vadd.f32 %v2564_v7, %v2563_v12 }
 0xc04   : > { %5690 = vrcp.f32 %v2565_v18 }
 0xc0c   : > { %v5689_v2 = vpop.eup %5688 }
 0xc0d   : > { %v2303_v3 = vmul.f32 %v5689_v2, %v5681_v26  ;;  %v2304_v55 = vmul.f32 %v5689_v2, %v5683_v53 }
 0xc0e   : > { %v5691_v19 = vpop.eup %5690 }
 0xc0f   : > { %v2305_v14 = vmul.f32 %v6325_v13, %v2303_v3  ;;  %v2306_v15 = vmul.f32 %v6332_v9, %v2304_v55  ;;  %v2567_v20 = vmul.f32 %v5691_v19, %v5685_v21  ;;  %v2568_v22 = vmul.f32 %v5691_v19, %v5687_v62 }
 0xc11   : > { %v2307_v6 = vsel %vm385_vm0, %v2305_v14, 0.0  ;;  %v2310_v17 = vsel %vm385_vm0, %v2306_v15, 0.0  ;;  %v5595_v41 = vpack.i.bf16 %v2568_v22, %v2567_v20 }
 0xc12   : > { %2308 = vadd.xlane.f32.xlu0 %v2307_v6 }
 0xc16   : > { %2311 = vadd.xlane.f32.xlu0 %v2310_v17 }
 0xc2c   : > { %5596 = vrot.lane.b32.xlu0 %v5595_v41, %s5831_s29 }
 0xc30   : > { %2902 = vperm.xlu0 %5573, %v6074_v44  }
 0xc34   : > { %2907 = vrot.lane.b32.xlu0 %v6263_v31, %s6754_s30 }
 0xc38   : > { %2909 = vrot.lane.b32.xlu0 %v6270_v49, %s6754_s30  ;;  %s6767_s30 = smov 112  }
 0xc9f   : > { %v2309_v63 = vpop.xlane.xlu0 %2308 }
 0xca0   : > { %5692 = vrsqrt.f32 %v2309_v63  ;;  %vm2313_vm1 = vcmp.gt.f32.partialorder %v2309_v63, 0.0 }
 0xca3   : > { %v2312_v23 = vpop.xlane.xlu0 %2311 }
 0xca4   : > { %5694 = vrsqrt.f32 %v2312_v23  ;;  %vm2314_vm2 = vcmp.gt.f32.partialorder %v2312_v23, 0.0 }
 0xca7   : > { %v5597_v40 = vpop.permute.xlu0 %5596 }
 0xca8   : > { %v5599_v34 = vunpack.i.h.bf16 %v5597_v40  ;;  %v5598_v57 = vunpack.i.l.bf16 %v5597_v40 }
 0xca9   : > { %v5142_v24 = vpop.f32.mrb[20].mxu1 }
 0xcaa   : > { %v5693_v25 = vpop.eup %5692  ;;  %v5435_v32 = vpack.c.bf16 %v5599_v34, %v5598_v57  ;;  %v2142_v44 = vmul.f32 2.0, %v5142_v24  ;;  %v2132_v30 = vpop.f32.mrb[21].mxu1 }
 0xcab   : > { %v2317_v33 = vsel %vm2313_vm1, %v5693_v25, 0.0  ;;  %v2141_v43 = vmul.f32 2.0, %v2132_v30 }
 0xcac   : > { %v2321_v42 = vmul.f32 %v2317_v33, %v2305_v14  ;;  %v2144_v51 = vsub.f32 %v2142_v44, %v6343_v48  ;;  %5436 = vmatprep.subr.bf16.mxu1 %v5435_v32  ;;  %v2319_v61 = vsub.f32 0.0, %v2317_v33 }
 0xcad   : > { %v2143_v26 = vsub.f32 %v2141_v43, %v6347_v37 }
 0xcae   : > { %v5695_v53 = vpop.eup %5694  ;;  %2146 = vst.msk [vmem:[#allocation2 + $0xb8] sm:$0xff] %vm385_vm0, %v2144_v51  ;;  %2323 = vxpose.xlu1.b32.start [1/2] (short) (narrow) %v2321_v42, 16 }
 0xcaf   : > { %v2318_v56 = vsel %vm2314_vm2, %v5695_v53, 0.0  ;;  %2145 = vst.msk [vmem:[#allocation2 + $0xb0] sm:$0xff] %vm385_vm0, %v2143_v26 }
 0xcb0   : > { %v2322_v11 = vmul.f32 %v2318_v56, %v2306_v15  ;;  %v2320_v62 = vsub.f32 0.0, %v2318_v56 }
 0xcb2   : > { %2324 = vxpose.xlu1.b32.end [2/2] (short) (narrow) %v2322_v11, 16 }
 0xcd0   : > { %2897 = vperm.xlu1 %5574, %v6076_v45   ;;  %v2903_v45 = vpop.permute.xlu0 %2902 }
 0xcd1   : > { %v2906_v50 = vmul.f32 %v2903_v45, %v6091_v54 }
 0xcd4   : > { %v2908_v52 = vpop.permute.xlu0 %2907 }
 0xcd8   : > { %v2910_v1 = vpop.permute.xlu0 %2909 }
 0xcd9   : > { %v2914_v4 = vadd.f32 %v2910_v1, %v2906_v50 }
 0xcdb   : > { %v2917_v16 = vsel %vm2915_vm3, %v2914_v4, -inf }
 0xd2e   : > { %v2339_v21 = vpop.trf.xlu1 }
 0xd2f   : > { %v2355_v60 = vmul.f32 %v2339_v21, %v2319_v61 }
 0xd31   : > { %5154 = vmatprep.mubr.msk.f32.mxu1 %vm385_vm0, %v2355_v60  ;;  %5161 = vmatprep.mubr.msk.f32.mxu0 %vm385_vm0, %v2355_v60 }
 0xd32   : > { %v2340_v0 = vpop.trf.xlu1 }
 0xd33   : > { %v2356_v58 = vmul.f32 %v2340_v0, %v2320_v62 }
 0xd35   : > { %5155 = vmatmul.mubr.msk.f32.vlgmr.msra.gmra.mrb[22].mxu1 %vm385_vm0, %v2356_v58 }
 0xd36   : > { %5438 = vmatpush3.bf16.msra.mxu1 %v5435_v32  ;;  %5168 = vmatprep.mubr.msk.f32.mxu1 %vm385_vm0, %v6286_v38 }
 0xd39   : > { %5169 = vmatmul.mubr.msk.f32.vlgmr.msra.gmra.mrb[24].mxu1 %vm385_vm0, %v6293_v39 }
 0xd4f   : > { %v2898_v59 = vpop.permute.xlu1 %2897 }
 0xd50   : > { %v2905_v5 = vmul.f32 %v2898_v59, %v6091_v54 }
 0xd52   : > { %v2913_v36 = vadd.f32 %v2908_v52, %v2905_v5 }
 0xd54   : > { %v2916_v35 = vsel %vm2915_vm3, %v2913_v36, -inf }
 0xd55   : > { %v2918_v2 = vmax.f32 %v2916_v35, %v2917_v16 }
 0xd57   : > { %v2919_v3 = vrot.slane %v2918_v2, 4 }
 0xd59   : > { %v2920_v55 = vmax.f32 %v2918_v2, %v2919_v3 }
 0xd5b   : > { %v2921_v12 = vrot.slane %v2920_v55, 2 }
 0xd5d   : > { %v2922_v7 = vmax.f32 %v2920_v55, %v2921_v12 }
 0xd5f   : > { %v2923_v41 = vrot.slane %v2922_v7, 1 }
 0xd61   : > { %v2924_v40 = vmax.f32 %v2922_v7, %v2923_v41 }
 0xd63   : > { %v2925_v24 = vsub.f32 %v2913_v36, %v2924_v40  ;;  %v2926_v32 = vsub.f32 %v2914_v4, %v2924_v40 }
 0xd65   : > { %v2927_v30 = vmul.f32 1.442695, %v2925_v24  ;;  %v2929_v42 = vmul.f32 1.442695, %v2926_v32 }
 0xd67   : > { %5696 = vpow2.f32 %v2927_v30 }
 0xd71   : > { %v5697_v53 = vpop.eup %5696 }
 0xd72   : > { %v2931_v62 = vsel %vm2915_vm3, %v5697_v53, 0.0 }
 0xe08   : > { %v5156_v14 = vpop.f32.mrb[22].mxu1 }
 0xe09   : > { %2439 = vst.msk [vmem:[#allocation2 + $0x48] sm:$0xff] %vm385_vm0, %v5156_v14  ;;  %v2429_v6 = vpop.f32.mrb[23].mxu1 }
 0xe0a   : > { %2438 = vst.msk [vmem:[#allocation2 + $0x40] sm:$0xff] %vm385_vm0, %v2429_v6  ;;  %v5431_v15 = vpack.c.bf16 %v5156_v14, %v2429_v6 }
 0xe0c   : > { %5432 = vmatprep.subr.bf16.mxu0 %v5431_v15  ;;  %v5170_v17 = vpop.f32.mrb[24].mxu1 }
 0xe0d   : > { %v2653_v18 = vsel %vm385_vm0, %v5170_v17, -inf  ;;  %5434 = vmatpush3.bf16.msra.mxu0 %v5431_v15  ;;  %v2643_v19 = vpop.f32.mrb[25].mxu1 }
 0xe0e   : > { %v2652_v20 = vsel %vm385_vm0, %v2643_v19, -inf  ;;  %5440 = vmatprep.subr.bf16.mxu0 %v6035_v27 }
 0xe0f   : > { %v2654_v22 = vmax.f32 %v2652_v20, %v2653_v18 }
 0xe10   : > { %5162 = vmatmul.mubr.msk.f32.vlgmr.msra.gmra.mrb[22].mxu0 %vm385_vm0, %v2356_v58 }
 0xe11   : > { %v2655_v63 = vrot.slane %v2654_v22, 4  ;;  %5442 = vmatpush3.bf16.msra.mxu0 %v6035_v27 }
 0xe13   : > { %v2656_v23 = vmax.f32 %v2654_v22, %v2655_v63 }
 0xe15   : > { %v2657_v34 = vrot.slane %v2656_v23, 2 }
 0xe17   : > { %v2658_v57 = vmax.f32 %v2656_v23, %v2657_v34 }
 0xe19   : > { %v2659_v25 = vrot.slane %v2658_v57, 1 }
 0xe1b   : > { %v2660_v44 = vmax.f32 %v2658_v57, %v2659_v25 }
 0xe1d   : > { %v2661_v33 = vsub.f32 %v2643_v19, %v2660_v44  ;;  %v2662_v43 = vsub.f32 %v5170_v17, %v2660_v44 }
 0xe1f   : > { %v2663_v51 = vmul.f32 1.442695, %v2661_v33  ;;  %v2665_v26 = vmul.f32 1.442695, %v2662_v43  ;;  %v6391_v43 = vld [vmem:[%s5954_s14 + $0x40] sm:$0xff] }
 0xe21   : > { %5698 = vpow2.f32 %v2663_v51 }
 0xe22   : > { %5700 = vpow2.f32 %v2665_v26 }
 0xe23   : > { %5702 = vpow2.f32 %v2929_v42 }
 0xe2b   : > { %v5699_v27 = vpop.eup %5698 }
 0xe2c   : > { %v5701_v56 = vpop.eup %5700  ;;  %v2667_v11 = vsel %vm385_vm0, %v5699_v27, 0.0 }
 0xe2d   : > { %v5703_v61 = vpop.eup %5702  ;;  %v2668_v21 = vsel %vm385_vm0, %v5701_v56, 0.0 }
 0xe2e   : > { %v2669_v60 = vadd.f32 %v2668_v21, %v2667_v11  ;;  %v2932_v0 = vsel %vm2915_vm3, %v5703_v61, 0.0 }
 0xe2f   : > { %v2933_v52 = vadd.f32 %v2932_v0, %v2931_v62 }
 0xe30   : > { %v2670_v58 = vrot.slane %v2669_v60, 4 }
 0xe31   : > { %v2934_v1 = vrot.slane %v2933_v52, 4 }
 0xe32   : > { %v2671_v45 = vadd.f32 %v2670_v58, %v2669_v60 }
 0xe33   : > { %v2935_v4 = vadd.f32 %v2934_v1, %v2933_v52 }
 0xe34   : > { %v2672_v59 = vrot.slane %v2671_v45, 2 }
 0xe35   : > { %v2936_v35 = vrot.slane %v2935_v4, 2 }
 0xe36   : > { %v2673_v5 = vadd.f32 %v2672_v59, %v2671_v45 }
 0xe37   : > { %v2937_v16 = vadd.f32 %v2936_v35, %v2935_v4 }
 0xe38   : > { %v2674_v50 = vrot.slane %v2673_v5, 1 }
 0xe39   : > { %v2938_v12 = vrot.slane %v2937_v16, 1 }
 0xe3a   : > { %v2675_v36 = vadd.f32 %v2674_v50, %v2673_v5 }
 0xe3b   : > { %v2939_v17 = vadd.f32 %v2938_v12, %v2937_v16 }
 0xe3c   : > { %5704 = vrcp.f32 %v2675_v36 }
 0xe3d   : > { %5706 = vrcp.f32 %v2939_v17 }
 0xe46   : > { %v5705_v2 = vpop.eup %5704 }
 0xe47   : > { %v2678_v3 = vmul.f32 %v5705_v2, %v5701_v56  ;;  %v2677_v55 = vmul.f32 %v5705_v2, %v5699_v27  ;;  %v5707_v18 = vpop.eup %5706 }
 0xe48   : > { %v2941_v19 = vmul.f32 %v5707_v18, %v5697_v53  ;;  %v2942_v20 = vmul.f32 %v5707_v18, %v5703_v61 }
 0xe49   : > { %v2680_v14 = vmul.f32 %v6332_v9, %v2678_v3  ;;  %v2679_v6 = vmul.f32 %v6325_v13, %v2677_v55 }
 0xe4a   : > { %v5600_v22 = vpack.i.bf16 %v2942_v20, %v2941_v19 }
 0xe4b   : > { %v2684_v15 = vsel %vm385_vm0, %v2680_v14, 0.0  ;;  %v2681_v7 = vsel %vm385_vm0, %v2679_v6, 0.0 }
 0xe4c   : > { %2685 = vadd.xlane.f32.xlu1 %v2684_v15  ;;  %2682 = vadd.xlane.f32.xlu0 %v2681_v7 }
 0xe62   : > { %5601 = vrot.lane.b32.xlu0 %v5600_v22, %s5830_s28 }
 0xe66   : > { %3271 = vperm.xlu0 %5573, %v6080_v47  }
 0xe6a   : > { %3276 = vperm.xlu0 %5573, %v6078_v46  }
 0xe6e   : > { %3281 = vrot.lane.b32.xlu0 %v6263_v31, %s6752_s27 }
 0xe72   : > { %3283 = vrot.lane.b32.xlu0 %v6270_v49, %s6752_s27  ;;  %v6387_v49 = vld [vmem:[%s5954_s14 + $0x48] sm:$0xff]  ;;  %s4634_s27 = sshll.u32 %s352_s21, 4 }
 0xed9   : > { %v2686_v41 = vpop.xlane.xlu1 %2685  ;;  %v2683_v63 = vpop.xlane.xlu0 %2682 }
 0xeda   : > { %5708 = vrsqrt.f32 %v2686_v41  ;;  %vm2687_vm4 = vcmp.gt.f32.partialorder %v2683_v63, 0.0  ;;  %vm2688_vm6 = vcmp.gt.f32.partialorder %v2686_v41, 0.0 }
 0xedb   : > { %5710 = vrsqrt.f32 %v2683_v63 }
 0xedd   : > { %v5602_v23 = vpop.permute.xlu0 %5601 }
 0xede   : > { %v5604_v40 = vunpack.i.h.bf16 %v5602_v23  ;;  %v5603_v34 = vunpack.i.l.bf16 %v5602_v23 }
 0xee0   : > { %v5447_v57 = vpack.c.bf16 %v5604_v40, %v5603_v34 }
 0xee2   : > { %5448 = vmatprep.subr.bf16.mxu0 %v5447_v57 }
 0xee3   : > { %v5163_v47 = vpop.f32.mrb[22].mxu0 }
 0xee4   : > { %v5709_v24 = vpop.eup %5708  ;;  %v2516_v46 = vmul.f32 2.0, %v5163_v47  ;;  %v2506_v25 = vpop.f32.mrb[23].mxu0 }
 0xee5   : > { %v5711_v32 = vpop.eup %5710  ;;  %v2515_v31 = vmul.f32 2.0, %v2506_v25  ;;  %v2692_v51 = vsel %vm2688_vm6, %v5709_v24, 0.0  ;;  %v3272_v60 = vpop.permute.xlu0 %3271 }
 0xee6   : > { %v2691_v44 = vsel %vm2687_vm4, %v5711_v32, 0.0  ;;  %v2518_v30 = vsub.f32 %v2516_v46, %v6387_v49  ;;  %v2696_v26 = vmul.f32 %v2692_v51, %v2680_v14  ;;  %v2694_v11 = vsub.f32 0.0, %v2692_v51 }
 0xee7   : > { %v2695_v33 = vmul.f32 %v2691_v44, %v2679_v6  ;;  %v2517_v42 = vsub.f32 %v2515_v31, %v6391_v43  ;;  %v2693_v53 = vsub.f32 0.0, %v2691_v44  ;;  %v3279_v52 = vmul.f32 %v3272_v60, %v6091_v54 }
 0xee8   : > { %2520 = vst.msk [vmem:[#allocation2 + $0xc8] sm:$0xff] %vm385_vm0, %v2518_v30 }
 0xee9   : > { %2519 = vst.msk [vmem:[#allocation2 + $0xc0] sm:$0xff] %vm385_vm0, %v2517_v42  ;;  %2697 = vxpose.xlu1.b32.start [1/2] (short) (narrow) %v2695_v33, 16  ;;  %v3277_v62 = vpop.permute.xlu0 %3276 }
 0xeea   : > { %v3280_v45 = vmul.f32 %v3277_v62, %v6091_v54 }
 0xeed   : > { %2698 = vxpose.xlu1.b32.end [2/2] (short) (narrow) %v2696_v26, 16  ;;  %v3282_v0 = vpop.permute.xlu0 %3281 }
 0xeee   : > { %v3287_v5 = vadd.f32 %v3282_v0, %v3279_v52 }
 0xef0   : > { %v3290_v50 = vsel %vm3289_vm7, %v3287_v5, -inf }
 0xef1   : > { %v3284_v58 = vpop.permute.xlu0 %3283 }
 0xef2   : > { %v3288_v59 = vadd.f32 %v3284_v58, %v3280_v45 }
 0xef4   : > { %v3291_v1 = vsel %vm3289_vm7, %v3288_v59, -inf }
 0xef5   : > { %v3292_v36 = vmax.f32 %v3290_v50, %v3291_v1 }
 0xef7   : > { %v3293_v4 = vrot.slane %v3292_v36, 4 }
 0xef9   : > { %v3294_v35 = vmax.f32 %v3292_v36, %v3293_v4 }
 0xefb   : > { %v3295_v16 = vrot.slane %v3294_v35, 2 }
 0xefd   : > { %v3296_v12 = vmax.f32 %v3294_v35, %v3295_v16 }
 0xeff   : > { %v3297_v17 = vrot.slane %v3296_v12, 1 }
 0xf01   : > { %v3298_v20 = vmax.f32 %v3296_v12, %v3297_v17 }
 0xf03   : > { %v3299_v63 = vsub.f32 %v3287_v5, %v3298_v20  ;;  %v3300_v40 = vsub.f32 %v3288_v59, %v3298_v20 }
 0xf05   : > { %v3303_v46 = vmul.f32 1.442695, %v3300_v40 }
 0xf69   : > { %v2713_v27 = vpop.trf.xlu1 }
 0xf6a   : > { %v2729_v56 = vmul.f32 %v2713_v27, %v2693_v53 }
 0xf6c   : > { %5175 = vmatprep.mubr.msk.f32.mxu0 %vm385_vm0, %v2729_v56  ;;  %5182 = vmatprep.mubr.msk.f32.mxu1 %vm385_vm0, %v2729_v56 }
 0xf6d   : > { %v2714_v61 = vpop.trf.xlu1 }
 0xf6e   : > { %v2730_v21 = vmul.f32 %v2714_v61, %v2694_v11 }
 0xf70   : > { %5176 = vmatmul.mubr.msk.f32.vlgmr.msra.gmra.mrb[24].mxu0 %vm385_vm0, %v2730_v21 }
 0xf71   : > { %5450 = vmatpush3.bf16.msra.mxu0 %v5447_v57  ;;  %5189 = vmatprep.mubr.msk.f32.mxu0 %vm385_vm0, %v6286_v38  ;;  %v3301_v57 = vmul.f32 1.442695, %v3299_v63 }
 0xf73   : > { %5712 = vpow2.f32 %v3301_v57 }
 0xf74   : > { %5190 = vmatmul.mubr.msk.f32.vlgmr.msra.gmra.mrb[26].mxu0 %vm385_vm0, %v6293_v39 }
 0xf7d   : > { %v5713_v31 = vpop.eup %5712 }
 0xf7e   : > { %v3305_v26 = vsel %vm3289_vm7, %v5713_v31, 0.0 }
0x1043   : > { %v5177_v2 = vpop.f32.mrb[24].mxu0 }
0x1044   : > { %2813 = vst.msk [vmem:[#allocation2 + $0x58] sm:$0xff] %vm385_vm0, %v5177_v2  ;;  %v2803_v3 = vpop.f32.mrb[25].mxu0 }
0x1045   : > { %2812 = vst.msk [vmem:[#allocation2 + $0x50] sm:$0xff] %vm385_vm0, %v2803_v3  ;;  %v5443_v55 = vpack.c.bf16 %v5177_v2, %v2803_v3 }
0x1047   : > { %5444 = vmatprep.subr.bf16.mxu1 %v5443_v55  ;;  %v5191_v54 = vpop.f32.mrb[26].mxu0 }
0x1048   : > { %v3027_v14 = vsel %vm385_vm0, %v5191_v54, -inf  ;;  %5446 = vmatpush3.bf16.msra.mxu1 %v5443_v55  ;;  %v3017_v6 = vpop.f32.mrb[27].mxu0 }
0x1049   : > { %v3026_v15 = vsel %vm385_vm0, %v3017_v6, -inf  ;;  %5452 = vmatprep.subr.bf16.mxu1 %v6040_v28 }
0x104a   : > { %v3028_v7 = vmax.f32 %v3026_v15, %v3027_v14 }
0x104b   : > { %5183 = vmatmul.mubr.msk.f32.vlgmr.msra.gmra.mrb[26].mxu1 %vm385_vm0, %v2730_v21 }
0x104c   : > { %v3029_v18 = vrot.slane %v3028_v7, 4  ;;  %5454 = vmatpush3.bf16.msra.mxu1 %v6040_v28 }
0x104e   : > { %v3030_v19 = vmax.f32 %v3028_v7, %v3029_v18 }
0x1050   : > { %v3031_v22 = vrot.slane %v3030_v19, 2 }
0x1052   : > { %v3032_v41 = vmax.f32 %v3030_v19, %v3031_v22 }
0x1054   : > { %v3033_v23 = vrot.slane %v3032_v41, 1 }
0x1056   : > { %v3034_v34 = vmax.f32 %v3032_v41, %v3033_v23 }
0x1058   : > { %v3035_v47 = vsub.f32 %v3017_v6, %v3034_v34  ;;  %v3036_v24 = vsub.f32 %v5191_v54, %v3034_v34  ;;  %v6424_v34 = vld [vmem:[%s5954_s14 + $0x58] sm:$0xff] }
0x105a   : > { %v3037_v25 = vmul.f32 1.442695, %v3035_v47  ;;  %v3039_v32 = vmul.f32 1.442695, %v3036_v24  ;;  %v6428_v24 = vld [vmem:[%s5954_s14 + $0x50] sm:$0xff] }
0x105c   : > { %5714 = vpow2.f32 %v3037_v25 }
0x105d   : > { %5716 = vpow2.f32 %v3039_v32 }
0x105e   : > { %5718 = vpow2.f32 %v3303_v46 }
0x1066   : > { %v5715_v28 = vpop.eup %5714 }
0x1067   : > { %v5717_v44 = vpop.eup %5716  ;;  %v3041_v30 = vsel %vm385_vm0, %v5715_v28, 0.0 }
0x1068   : > { %v5719_v33 = vpop.eup %5718  ;;  %v3042_v42 = vsel %vm385_vm0, %v5717_v44, 0.0 }
0x1069   : > { %v3043_v51 = vadd.f32 %v3042_v42, %v3041_v30  ;;  %v3306_v53 = vsel %vm3289_vm7, %v5719_v33, 0.0 }
0x106a   : > { %v3307_v11 = vadd.f32 %v3306_v53, %v3305_v26 }
0x106b   : > { %v3044_v27 = vrot.slane %v3043_v51, 4 }
0x106c   : > { %v3308_v60 = vrot.slane %v3307_v11, 4 }
0x106d   : > { %v3045_v56 = vadd.f32 %v3044_v27, %v3043_v51 }
0x106e   : > { %v3309_v58 = vadd.f32 %v3308_v60, %v3307_v11 }
0x106f   : > { %v3046_v61 = vrot.slane %v3045_v56, 2 }
0x1070   : > { %v3310_v45 = vrot.slane %v3309_v58, 2 }
0x1071   : > { %v3047_v21 = vadd.f32 %v3046_v61, %v3045_v56 }
0x1072   : > { %v3311_v52 = vadd.f32 %v3310_v45, %v3309_v58 }
0x1073   : > { %v3048_v62 = vrot.slane %v3047_v21, 1 }
0x1074   : > { %v3312_v50 = vrot.slane %v3311_v52, 1 }
0x1075   : > { %v3049_v0 = vadd.f32 %v3048_v62, %v3047_v21 }
0x1076   : > { %v3313_v2 = vadd.f32 %v3312_v50, %v3311_v52 }
0x1077   : > { %5720 = vrcp.f32 %v3049_v0 }
0x1078   : > { %5722 = vrcp.f32 %v3313_v2 }
0x1081   : > { %v5721_v59 = vpop.eup %5720 }
0x1082   : > { %v3052_v5 = vmul.f32 %v5721_v59, %v5717_v44  ;;  %v3051_v1 = vmul.f32 %v5721_v59, %v5715_v28  ;;  %v5723_v3 = vpop.eup %5722 }
0x1083   : > { %v3315_v55 = vmul.f32 %v5723_v3, %v5713_v31  ;;  %v3316_v12 = vmul.f32 %v5723_v3, %v5719_v33 }
0x1084   : > { %v3054_v36 = vmul.f32 %v6332_v9, %v3052_v5  ;;  %v3053_v4 = vmul.f32 %v6325_v13, %v3051_v1 }
0x1085   : > { %v5605_v54 = vpack.i.bf16 %v3316_v12, %v3315_v55 }
0x1086   : > { %v3058_v35 = vsel %vm385_vm0, %v3054_v36, 0.0  ;;  %v3055_v16 = vsel %vm385_vm0, %v3053_v4, 0.0 }
0x1087   : > { %3059 = vadd.xlane.f32.xlu1 %v3058_v35  ;;  %3056 = vadd.xlane.f32.xlu0 %v3055_v16 }
0x109d   : > { %5606 = vrot.lane.b32.xlu0 %v5605_v54, %s5828_s26 }
0x1114   : > { %v3060_v14 = vpop.xlane.xlu1 %3059  ;;  %v3057_v6 = vpop.xlane.xlu0 %3056 }
0x1115   : > { %5724 = vrsqrt.f32 %v3060_v14  ;;  %vm3061_vm10 = vcmp.gt.f32.partialorder %v3057_v6, 0.0  ;;  %vm3062_vm11 = vcmp.gt.f32.partialorder %v3060_v14, 0.0 }
0x1116   : > { %5726 = vrsqrt.f32 %v3057_v6 }
0x1118   : > { %v5607_v15 = vpop.permute.xlu0 %5606 }
0x1119   : > { %v5609_v7 = vunpack.i.h.bf16 %v5607_v15  ;;  %v5608_v17 = vunpack.i.l.bf16 %v5607_v15 }
0x111b   : > { %v5459_v18 = vpack.c.bf16 %v5609_v7, %v5608_v17 }
0x111d   : > { %5460 = vmatprep.subr.bf16.mxu1 %v5459_v18 }
0x111e   : > { %v5184_v19 = vpop.f32.mrb[26].mxu1 }
0x111f   : > { %v5725_v20 = vpop.eup %5724  ;;  %v2890_v22 = vmul.f32 2.0, %v5184_v19  ;;  %v2880_v41 = vpop.f32.mrb[27].mxu1 }
0x1120   : > { %v5727_v63 = vpop.eup %5726  ;;  %v2889_v23 = vmul.f32 2.0, %v2880_v41  ;;  %v3066_v25 = vsel %vm3062_vm11, %v5725_v20, 0.0 }
0x1121   : > { %v3065_v40 = vsel %vm3061_vm10, %v5727_v63, 0.0  ;;  %v2892_v57 = vsub.f32 %v2890_v22, %v6424_v34  ;;  %v3070_v32 = vmul.f32 %v3066_v25, %v3054_v36  ;;  %v3068_v30 = vsub.f32 0.0, %v3066_v25 }
0x1122   : > { %v3069_v47 = vmul.f32 %v3065_v40, %v3053_v4  ;;  %v2891_v46 = vsub.f32 %v2889_v23, %v6428_v24  ;;  %v3067_v31 = vsub.f32 0.0, %v3065_v40 }
0x1123   : > { %2894 = vst.msk [vmem:[#allocation2 + $0xd8] sm:$0xff] %vm385_vm0, %v2892_v57 }
0x1124   : > { %2893 = vst.msk [vmem:[#allocation2 + $0xd0] sm:$0xff] %vm385_vm0, %v2891_v46  ;;  %3071 = vxpose.xlu0.b32.start [1/2] (short) (narrow) %v3069_v47, 16  ;;  %v6454_v47 = vld [vmem:[%s5954_s14 + $0x68] sm:$0xff]  ;;  %v6458_v46 = vld [vmem:[%s5954_s14 + $0x60] sm:$0xff] }
0x1128   : > { %3072 = vxpose.xlu0.b32.end [2/2] (short) (narrow) %v3070_v32, 16 }
0x11a4   : > { %v3087_v28 = vpop.trf.xlu0 }
0x11a5   : > { %v3103_v44 = vmul.f32 %v3087_v28, %v3067_v31 }
0x11a7   : > { %5196 = vmatprep.mubr.msk.f32.mxu1 %vm385_vm0, %v3103_v44  ;;  %5203 = vmatprep.mubr.msk.f32.mxu0 %vm385_vm0, %v3103_v44  ;;  %v4718_v44 = vld [vmem:[%s6747_s6 + $0x10] sm:$0xff] }
0x11a8   : > { %v3088_v33 = vpop.trf.xlu0 }
0x11a9   : > { %v3104_v42 = vmul.f32 %v3088_v33, %v3068_v30  ;;  %v4719_v30 = vld [vmem:[%s6747_s6 + $0x18] sm:$0xff] }
0x11aa   : > { %v6469_v33 = vpack.c.bf16 %v4719_v30, %v4718_v44 }
0x11ab   : > { %5197 = vmatmul.mubr.msk.f32.vlgmr.msra.gmra.mrb[28].mxu1 %vm385_vm0, %v3104_v42 }
0x11ac   : > { %5462 = vmatpush3.bf16.msra.mxu1 %v5459_v18  ;;  %5210 = vmatprep.mubr.msk.f32.mxu1 %vm385_vm0, %v6286_v38 }
0x11af   : > { %5211 = vmatmul.mubr.msk.f32.vlgmr.msra.gmra.mrb[30].mxu1 %vm385_vm0, %v6293_v39 }
0x127e   : > { %v5198_v51 = vpop.f32.mrb[28].mxu1 }
0x127f   : > { %3187 = vst.msk [vmem:[#allocation2 + $0x68] sm:$0xff] %vm385_vm0, %v5198_v51  ;;  %v3177_v26 = vpop.f32.mrb[29].mxu1 }
0x1280   : > { %3186 = vst.msk [vmem:[#allocation2 + $0x60] sm:$0xff] %vm385_vm0, %v3177_v26  ;;  %v5455_v53 = vpack.c.bf16 %v5198_v51, %v3177_v26 }
0x1282   : > { %5456 = vmatprep.subr.bf16.mxu0 %v5455_v53  ;;  %v5212_v27 = vpop.f32.mrb[30].mxu1 }
0x1283   : > { %v3401_v56 = vsel %vm385_vm0, %v5212_v27, -inf  ;;  %5458 = vmatpush3.bf16.msra.mxu0 %v5455_v53  ;;  %v3391_v11 = vpop.f32.mrb[31].mxu1  ;;  %v3643_v53 = vld [vmem:[%s6747_s6] sm:$0xff] }
0x1284   : > { %v3400_v61 = vsel %vm385_vm0, %v3391_v11, -inf  ;;  %5464 = vmatprep.subr.bf16.mxu0 %v6045_v29 }
0x1285   : > { %v3402_v38 = vmax.f32 %v3400_v61, %v3401_v56 }
0x1286   : > { %5204 = vmatmul.mubr.msk.f32.vlgmr.msra.gmra.mrb[28].mxu0 %vm385_vm0, %v3104_v42 }
0x1287   : > { %v3403_v39 = vrot.slane %v3402_v38, 4  ;;  %5466 = vmatpush3.bf16.msra.mxu0 %v6045_v29 }
0x1288   : > { %5472 = vmatprep.subr.bf16.mxu0 %v6469_v33 }
0x1289   : > { %v3404_v21 = vmax.f32 %v3402_v38, %v3403_v39  ;;  %v4752_v39 = vld [vmem:[%s6747_s6 + $0x20] sm:$0xff] }
0x128b   : > { %v3405_v60 = vrot.slane %v3404_v21, 2 }
0x128d   : > { %v3406_v62 = vmax.f32 %v3404_v21, %v3405_v60  ;;  %v4753_v21 = vld [vmem:[%s6747_s6 + $0x28] sm:$0xff]  ;;  %v3645_v60 = vld [vmem:[#allocation2] sm:$0xff] }
0x128f   : > { %v3407_v0 = vrot.slane %v3406_v62, 1 }
0x1291   : > { %v3408_v58 = vmax.f32 %v3406_v62, %v3407_v0  ;;  %v5479_v62 = vpack.c.bf16 %v4753_v21, %v4752_v39  ;;  %v3646_v0 = vld [vmem:[#allocation2 + $0x8] sm:$0xff] }
0x1293   : > { %v3409_v45 = vsub.f32 %v3391_v11, %v3408_v58  ;;  %v3410_v52 = vsub.f32 %v5212_v27, %v3408_v58  ;;  %v3644_v27 = vld [vmem:[%s6747_s6 + $0x8] sm:$0xff]  ;;  %v3647_v58 = vld [vmem:[#allocation2 + $0x10] sm:$0xff] }
0x1294   : > { %v5475_v38 = vpack.c.bf16 %v3644_v27, %v3643_v53 }
0x1295   : > { %v3411_v59 = vmul.f32 1.442695, %v3409_v45  ;;  %v3413_v5 = vmul.f32 1.442695, %v3410_v52  ;;  %v3648_v45 = vld [vmem:[#allocation2 + $0x18] sm:$0xff]  ;;  %v3649_v52 = vld [vmem:[#allocation2 + $0x20] sm:$0xff] }
0x1297   : > { %5728 = vpow2.f32 %v3411_v59  ;;  %v3650_v59 = vld [vmem:[#allocation2 + $0x28] sm:$0xff] }
0x1298   : > { %5730 = vpow2.f32 %v3413_v5  ;;  %v3651_v5 = vld [vmem:[#allocation2 + $0x30] sm:$0xff] }
0x12a1   : > { %v5729_v1 = vpop.eup %5728 }
0x12a2   : > { %v5731_v50 = vpop.eup %5730  ;;  %v3415_v36 = vsel %vm385_vm0, %v5729_v1, 0.0 }
0x12a3   : > { %v3416_v4 = vsel %vm385_vm0, %v5731_v50, 0.0 }
0x12a4   : > { %v3417_v35 = vadd.f32 %v3416_v4, %v3415_v36  ;;  %v3654_v36 = vld [vmem:[#allocation2 + $0x48] sm:$0xff]  ;;  %v5754_v4 = vld [vmem:[%s5954_s14] sm:$0xff] }
0x12a6   : > { %v3418_v16 = vrot.slane %v3417_v35, 4 }
0x12a8   : > { %v3419_v29 = vadd.f32 %v3418_v16, %v3417_v35  ;;  %v5755_v35 = vld [vmem:[%s5954_s14 + $0x8] sm:$0xff]  ;;  %v5756_v16 = vld [vmem:[%s5954_s14 + $0x10] sm:$0xff] }
0x12aa   : > { %v3420_v2 = vrot.slane %v3419_v29, 2 }
0x12ac   : > { %v3421_v3 = vadd.f32 %v3420_v2, %v3419_v29  ;;  %v5757_v29 = vld [vmem:[%s5954_s14 + $0x18] sm:$0xff]  ;;  %v4008_v2 = vld [vmem:[#allocation2 + $0xb0] sm:$0xff] }
0x12ae   : > { %v3422_v55 = vrot.slane %v3421_v3, 1 }
0x12b0   : > { %v3423_v12 = vadd.f32 %v3422_v55, %v3421_v3  ;;  %v4009_v3 = vld [vmem:[#allocation2 + $0xb8] sm:$0xff]  ;;  %v4010_v55 = vld [vmem:[#allocation2 + $0xc0] sm:$0xff] }
0x12b2   : > { %5732 = vrcp.f32 %v3423_v12  ;;  %v4011_v12 = vld [vmem:[#allocation2 + $0xc8] sm:$0xff] }
0x12bc   : > { %v5733_v54 = vpop.eup %5732 }
0x12bd   : > { %v3425_v14 = vmul.f32 %v5733_v54, %v5729_v1  ;;  %v3426_v6 = vmul.f32 %v5733_v54, %v5731_v50  ;;  %v3652_v1 = vld [vmem:[#allocation2 + $0x38] sm:$0xff]  ;;  %v3653_v50 = vld [vmem:[#allocation2 + $0x40] sm:$0xff]  ;;  %v4012_v54 = vld [vmem:[#allocation2 + $0xd0] sm:$0xff] }
0x12bf   : > { %v3427_v15 = vmul.f32 %v6325_v13, %v3425_v14  ;;  %v3428_v17 = vmul.f32 %v6332_v9, %v3426_v6  ;;  %v4013_v14 = vld [vmem:[#allocation2 + $0xd8] sm:$0xff] }
0x12c1   : > { %v3429_v7 = vsel %vm385_vm0, %v3427_v15, 0.0  ;;  %v3432_v18 = vsel %vm385_vm0, %v3428_v17, 0.0 }
0x12c2   : > { %3430 = vadd.xlane.f32.xlu1 %v3429_v7 }
0x12c6   : > { %3433 = vadd.xlane.f32.xlu1 %v3432_v18 }
0x134f   : > { %v3431_v19 = vpop.xlane.xlu1 %3430 }
0x1350   : > { %5734 = vrsqrt.f32 %v3431_v19  ;;  %vm3435_vm12 = vcmp.gt.f32.partialorder %v3431_v19, 0.0  ;;  %v4269_v19 = vld [vmem:[%s6749_s8] sm:$0xff] }
0x1353   : > { %v3434_v20 = vpop.xlane.xlu1 %3433 }
0x1354   : > { %5736 = vrsqrt.f32 %v3434_v20  ;;  %vm3436_vm13 = vcmp.gt.f32.partialorder %v3434_v20, 0.0  ;;  %v4270_v20 = vld [vmem:[%s6749_s8 + $0x8] sm:$0xff] }
0x1359   : > { %v5205_v22 = vpop.f32.mrb[28].mxu0 }
0x135a   : > { %v5735_v41 = vpop.eup %5734  ;;  %v3264_v63 = vmul.f32 2.0, %v5205_v22  ;;  %v3254_v23 = vpop.f32.mrb[29].mxu0  ;;  %v5483_v22 = vpack.c.bf16 %v4270_v20, %v4269_v19 }
0x135b   : > { %v3439_v13 = vsel %vm3435_vm12, %v5735_v41, 0.0  ;;  %v3263_v40 = vmul.f32 2.0, %v3254_v23  ;;  %v3655_v41 = vld [vmem:[#allocation2 + $0x50] sm:$0xff]  ;;  %v3657_v23 = vld [vmem:[#allocation2 + $0x60] sm:$0xff] }
0x135c   : > { %v3443_v57 = vmul.f32 %v3439_v13, %v3427_v15  ;;  %v3266_v9 = vsub.f32 %v3264_v63, %v6454_v47  ;;  %v3441_v42 = vsub.f32 0.0, %v3439_v13  ;;  %v3656_v63 = vld [vmem:[#allocation2 + $0x58] sm:$0xff]  ;;  %v3658_v13 = vld [vmem:[#allocation2 + $0x68] sm:$0xff] }
0x135d   : > { %v3265_v25 = vsub.f32 %v3263_v40, %v6458_v46 }
0x135e   : > { %v5737_v32 = vpop.eup %5736  ;;  %3268 = vst.msk [vmem:[#allocation2 + $0xe8] sm:$0xff] %vm385_vm0, %v3266_v9  ;;  %3445 = vxpose.xlu1.b32.start [1/2] (short) (narrow) %v3443_v57, 16 }
0x135f   : > { %v3440_v31 = vsel %vm3436_vm13, %v5737_v32, 0.0  ;;  %3267 = vst.msk [vmem:[#allocation2 + $0xe0] sm:$0xff] %vm385_vm0, %v3265_v25 }
0x1360   : > { %v3444_v28 = vmul.f32 %v3440_v31, %v3428_v17  ;;  %v3442_v56 = vsub.f32 0.0, %v3440_v31 }
0x1362   : > { %3446 = vxpose.xlu1.b32.end [2/2] (short) (narrow) %v3444_v28, 16 }
0x1365   : > { %v4015_v15 = vld [vmem:[#allocation2 + $0xe8] sm:$0xff] }
0x1366   : > { %v4014_v6 = vld [vmem:[#allocation2 + $0xe0] sm:$0xff] }
0x13de   : > { %v3461_v51 = vpop.trf.xlu1 }
0x13df   : > { %v3477_v26 = vmul.f32 %v3461_v51, %v3441_v42 }
0x13e1   : > { %5217 = vmatprep.mubr.msk.f32.mxu0 %vm385_vm0, %v3477_v26  ;;  %5224 = vmatprep.mubr.msk.f32.mxu1 %vm385_vm0, %v3477_v26 }
0x13e2   : > { %v3462_v11 = vpop.trf.xlu1 }
0x13e3   : > { %v6480_v61 = vmul.f32 %v3462_v11, %v3442_v56 }
0x13e5   : > { %5218 = vmatmul.mubr.msk.f32.vlgmr.msra.gmra.mrb[30].mxu0 %vm385_vm0, %v6480_v61 }
0x13e6   : > { %5474 = vmatpush3.bf16.msra.mxu0 %v6469_v33  ;;  %5231 = vmatprep.mubr.msk.f32.mxu0 %vm385_vm0, %v3645_v60 }
0x13e7   : > { %5476 = vmatprep.subr.bf16.mxu0 %v5475_v38 }
0x13e9   : > { %5232 = vmatmul.mubr.msk.f32.vlgmr.msra.gmra.mrb[32].mxu0 %vm385_vm0, %v3646_v0 }
0x13ea   : > { %5234 = vmatprep.mubr.msk.f32.mxu0 %vm385_vm0, %v3647_v58  ;;  %5478 = vmatpush3.bf16.msra.mxu0 %v5475_v38 }
0x13eb   : > { %5480 = vmatprep.subr.bf16.mxu0 %v5479_v62 }
0x13ed   : > { %5235 = vmatmul.mubr.msk.f32.gmra.mrb[34].mxu0 %vm385_vm0, %v3648_v45 }
0x13ee   : > { %5237 = vmatprep.mubr.msk.f32.mxu0 %vm385_vm0, %v3649_v52 }
0x13f1   : > { %5238 = vmatmul.mubr.msk.f32.gmra.mrb[36].mxu0 %vm385_vm0, %v3650_v59 }
0x13f2   : > { %5240 = vmatprep.mubr.msk.f32.mxu0 %vm385_vm0, %v3651_v5 }
0x13f5   : > { %5241 = vmatmul.mubr.msk.f32.gmra.mrb[38].mxu0 %vm385_vm0, %v3652_v1 }
0x13f6   : > { %5243 = vmatprep.mubr.msk.f32.mxu0 %vm385_vm0, %v3653_v50 }
0x13f9   : > { %5244 = vmatmul.mubr.msk.f32.gmra.mrb[40].mxu0 %vm385_vm0, %v3654_v36 }
0x13fa   : > { %5259 = vmatprep.mubr.msk.f32.mxu0 %vm385_vm0, %v5754_v4 }
0x13fd   : > { %5260 = vmatmul.mubr.msk.f32.vlgmr.msra.gmra.mrb[32].mxu0 %vm385_vm0, %v5755_v35 }
0x13fe   : > { %5262 = vmatprep.mubr.msk.f32.mxu0 %vm385_vm0, %v5756_v16  ;;  %5482 = vmatpush3.bf16.msra.mxu0 %v5479_v62 }
0x1401   : > { %5263 = vmatmul.mubr.msk.f32.gmra.mrb[34].mxu0 %vm385_vm0, %v5757_v29 }
0x1402   : > { %5265 = vmatprep.mubr.msk.f32.mxu0 %vm385_vm0, %v6306_v10  ;;  %v6535_v10 = vld [vmem:[%s5954_s14 + $0x78] sm:$0xff] }
0x1405   : > { %5266 = vmatmul.mubr.msk.f32.gmra.mrb[36].mxu0 %vm385_vm0, %v6302_v8  ;;  %v6530_v8 = vld [vmem:[%s5954_s14 + $0x70] sm:$0xff]  ;;  %s6621_s14 = scalar_lea.vmem [#allocation4], %s4634_s27  ;;  %s6700_s27 = scalar_lea.sflag [#allocation5], %s352_s21 }
0x1406   : > { %5268 = vmatprep.mubr.msk.f32.mxu0 %vm385_vm0, %v6347_v37  ;;  %v4003_v37 = vld [vmem:[#allocation2 + $0x88] sm:$0xff]  ;;  %s4568_s12 = sshll.u32 %s6621_s14, 4  ;;  %s6692_s12 = int_to_ptr.vmem [resolvable:$true] %s4568_s12 }
0x1407   : > { %s5760_s9 = scalar_lea.vmem %s6692_s12, 256 }
0x1408   : > { %p5761_p11 = scmp.ne.s32.totalorder %s6692_s12, %s5760_s9 }
0x1409   : > { %5269 = vmatmul.mubr.msk.f32.gmra.mrb[38].mxu0 %vm385_vm0, %v6343_v48  ;;  %v4002_v48 = vld [vmem:[#allocation2 + $0x80] sm:$0xff] }
0x140a   : > { %5271 = vmatprep.mubr.msk.f32.mxu0 %vm385_vm0, %v6391_v43  ;;  %v4005_v43 = vld [vmem:[#allocation2 + $0x98] sm:$0xff]  ;;  %p5762_p12 = pnand %p5761_p11, %p5934_p5 }
0x140c   : > { %p5763_p13 = pneg %p5762_p12 }
0x140d   : > { %5272 = vmatmul.mubr.msk.f32.gmra.mrb[40].mxu0 %vm385_vm0, %v6387_v49  ;;  %v4004_v49 = vld [vmem:[#allocation2 + $0x90] sm:$0xff] }
0x140e   : > { %5274 = vmatprep.mubr.msk.f32.mxu0 %vm385_vm0, %v6428_v24  ;;  %v4007_v24 = vld [vmem:[#allocation2 + $0xa8] sm:$0xff] }
0x1411   : > { %5275 = vmatmul.mubr.msk.f32.gmra.mrb[42].mxu0 %vm385_vm0, %v6424_v34  ;;  %v4006_v34 = vld [vmem:[#allocation2 + $0xa0] sm:$0xff] }
0x1412   : > { %5277 = vmatprep.mubr.msk.f32.mxu0 %vm385_vm0, %v6458_v46 }
0x1415   : > { %5278 = vmatmul.mubr.msk.f32.gmra.mrb[44].mxu0 %vm385_vm0, %v6454_v47  ;;  %v6574_v47 = vld [vmem:[%s6748_s7] ss:$0 sm:$0xff] }
0x1416   : > { %5280 = vmatprep.mubr.msk.f32.mxu0 %vm385_vm0, %v6530_v8 }
0x1419   : > { %5281 = vmatmul.mubr.msk.f32.gmra.mrb[46].mxu0 %vm385_vm0, %v6535_v10 }
0x141a   : > { %5287 = vmatprep.mubr.msk.f32.mxu0 %vm385_vm0, %v4002_v48 }
0x141d   : > { %5288 = vmatmul.mubr.msk.f32.vlgmr.msra.gmra.mrb[32].mxu0 %vm385_vm0, %v4003_v37 }
0x141e   : > { %5290 = vmatprep.mubr.msk.f32.mxu0 %vm385_vm0, %v4004_v49 }
0x1421   : > { %5291 = vmatmul.mubr.msk.f32.gmra.mrb[34].mxu0 %vm385_vm0, %v4005_v43 }
0x1422   : > { %5293 = vmatprep.mubr.msk.f32.mxu0 %vm385_vm0, %v4006_v34 }
0x1425   : > { %5294 = vmatmul.mubr.msk.f32.gmra.mrb[36].mxu0 %vm385_vm0, %v4007_v24 }
0x1426   : > { %5296 = vmatprep.mubr.msk.f32.mxu0 %vm385_vm0, %v4008_v2 }
0x1429   : > { %5297 = vmatmul.mubr.msk.f32.gmra.mrb[38].mxu0 %vm385_vm0, %v4009_v3 }
0x142a   : > { %5299 = vmatprep.mubr.msk.f32.mxu0 %vm385_vm0, %v4010_v55 }
0x142d   : > { %5300 = vmatmul.mubr.msk.f32.gmra.mrb[40].mxu0 %vm385_vm0, %v4011_v12 }
0x142e   : > { %5302 = vmatprep.mubr.msk.f32.mxu0 %vm385_vm0, %v4012_v54 }
0x1431   : > { %5303 = vmatmul.mubr.msk.f32.gmra.mrb[42].mxu0 %vm385_vm0, %v4013_v14 }
0x1432   : > { %5305 = vmatprep.mubr.msk.f32.mxu0 %vm385_vm0, %v4014_v6 }
0x1435   : > { %5306 = vmatmul.mubr.msk.f32.gmra.mrb[44].mxu0 %vm385_vm0, %v4015_v15 }
0x14b8   : > { %v5219_v7 = vpop.f32.mrb[30].mxu0 }
0x14b9   : > { %3561 = vst.msk [vmem:[#allocation2 + $0x78] sm:$0xff] %vm385_vm0, %v5219_v7  ;;  %v3551_v17 = vpop.f32.mrb[31].mxu0 }
0x14ba   : > { %3560 = vst.msk [vmem:[#allocation2 + $0x70] sm:$0xff] %vm385_vm0, %v3551_v17  ;;  %v5467_v18 = vpack.c.bf16 %v5219_v7, %v3551_v17 }
0x14bc   : > { %5468 = vmatprep.subr.bf16.mxu1 %v5467_v18 }
0x14bd   : > { %5470 = vmatpush3.bf16.msra.mxu1 %v5467_v18 }
0x14be   : > { %5487 = vmatprep.subr.bf16.mxu1 %v6469_v33 }
0x14c0   : > { %5225 = vmatmul.mubr.msk.f32.vlgmr.msra.gmra.mrb[32].mxu1 %vm385_vm0, %v6480_v61  ;;  %v3660_v57 = vld [vmem:[#allocation2 + $0x78] sm:$0xff] }
0x14c1   : > { %5488 = vmatpush3.bf16.msra.mxu1 %v6469_v33  ;;  %5246 = vmatprep.mubr.msk.f32.mxu1 %vm385_vm0, %v3655_v41  ;;  %v3659_v40 = vld [vmem:[#allocation2 + $0x70] sm:$0xff] }
0x14c2   : > { %5484 = vmatprep.subr.bf16.mxu1 %v5483_v22 }
0x14c4   : > { %5247 = vmatmul.mubr.msk.f32.vlgmr.msra.gmra.mrb[34].mxu1 %vm385_vm0, %v3656_v63 }
0x14c5   : > { %5249 = vmatprep.mubr.msk.f32.mxu1 %vm385_vm0, %v3657_v23  ;;  %5486 = vmatpush3.bf16.msra.mxu1 %v5483_v22 }
0x14c8   : > { %5250 = vmatmul.mubr.msk.f32.gmra.mrb[36].mxu1 %vm385_vm0, %v3658_v13  ;;  %v6615_v13 = vstv %s4271_s19  ;;  %s6690_s19 = scalar_lea.hbm %s6751_s10, %s4792_s11 }
0x14c9   : > { %5252 = vmatprep.mubr.msk.f32.mxu1 %vm385_vm0, %v3659_v40 }
0x14cc   : > { %5253 = vmatmul.mubr.msk.f32.gmra.mrb[38].mxu1 %vm385_vm0, %v3660_v57 }
0x14f0   : > { %v5289_v9 = vpop.f32.mrb[32].mxu0 }
0x14f1   : > { %v4238_v46 = vadd.f32 %v5289_v9, %v6574_v47  ;;  %v4135_v25 = vpop.f32.mrb[33].mxu0 }
0x14f2   : > { %v4237_v32 = vadd.f32 %v6574_v47, %v4135_v25 }
0x14f3   : > { %v4254_v44 = vmax.f32 %v4238_v46, 0.0 }
0x14f4   : > { %v4253_v31 = vmax.f32 %v4237_v32, 0.0  ;;  %v5292_v28 = vpop.f32.mrb[34].mxu0 }
0x14f5   : > { %v4240_v30 = vadd.f32 %v5292_v28, %v6574_v47  ;;  %v4145_v33 = vpop.f32.mrb[35].mxu0 }
0x14f6   : > { %v4239_v42 = vadd.f32 %v6574_v47, %v4145_v33  ;;  %5315 = vmatprep.mubr.msk.f32.mxu1 %vm385_vm0, %v4253_v31 }
0x14f7   : > { %5316 = vmatmul.mubr.msk.f32.vlgmr.msra.gmra.mrb[40].mxu1 %vm385_vm0, %v4254_v44  ;;  %v4256_v53 = vmax.f32 %v4240_v30, 0.0 }
0x14f8   : > { %v4255_v51 = vmax.f32 %v4239_v42, 0.0  ;;  %v5295_v26 = vpop.f32.mrb[36].mxu0 }
0x14f9   : > { %v4242_v27 = vadd.f32 %v5295_v26, %v6574_v47  ;;  %v4155_v56 = vpop.f32.mrb[37].mxu0 }
0x14fa   : > { %v4241_v11 = vadd.f32 %v6574_v47, %v4155_v56  ;;  %5318 = vmatprep.mubr.msk.f32.mxu1 %vm385_vm0, %v4255_v51 }
0x14fb   : > { %5319 = vmatmul.mubr.msk.f32.gmra.mrb[42].mxu1 %vm385_vm0, %v4256_v53  ;;  %v4258_v39 = vmax.f32 %v4242_v27, 0.0 }
0x14fc   : > { %v4257_v61 = vmax.f32 %v4241_v11, 0.0  ;;  %v5298_v38 = vpop.f32.mrb[38].mxu0 }
0x14fd   : > { %v4244_v21 = vadd.f32 %v5298_v38, %v6574_v47  ;;  %v4165_v60 = vpop.f32.mrb[39].mxu0 }
0x14fe   : > { %v4243_v62 = vadd.f32 %v6574_v47, %v4165_v60  ;;  %5321 = vmatprep.mubr.msk.f32.mxu1 %vm385_vm0, %v4257_v61 }
0x14ff   : > { %5322 = vmatmul.mubr.msk.f32.gmra.mrb[44].mxu1 %vm385_vm0, %v4258_v39  ;;  %v4260_v45 = vmax.f32 %v4244_v21, 0.0 }
0x1500   : > { %v4259_v0 = vmax.f32 %v4243_v62, 0.0  ;;  %v5301_v58 = vpop.f32.mrb[40].mxu0 }
0x1501   : > { %v4246_v52 = vadd.f32 %v5301_v58, %v6574_v47  ;;  %v4175_v59 = vpop.f32.mrb[41].mxu0 }
0x1502   : > { %v4245_v5 = vadd.f32 %v6574_v47, %v4175_v59  ;;  %5324 = vmatprep.mubr.msk.f32.mxu1 %vm385_vm0, %v4259_v0 }
0x1503   : > { %5325 = vmatmul.mubr.msk.f32.gmra.mrb[46].mxu1 %vm385_vm0, %v4260_v45  ;;  %v4262_v36 = vmax.f32 %v4246_v52, 0.0 }
0x1504   : > { %v4261_v1 = vmax.f32 %v4245_v5, 0.0  ;;  %v5304_v50 = vpop.f32.mrb[42].mxu0 }
0x1505   : > { %v4185_v4 = vpop.f32.mrb[43].mxu0 }
0x1506   : > { %5327 = vmatprep.mubr.msk.f32.mxu1 %vm385_vm0, %v4261_v1 }
0x1507   : > { %5328 = vmatmul.mubr.msk.f32.gmra.mrb[48].mxu1 %vm385_vm0, %v4262_v36 }
0x1508   : > { %v5307_v35 = vpop.f32.mrb[44].mxu0 }
0x1509   : > { %v4195_v16 = vpop.f32.mrb[45].mxu0 }
0x1593   : > { %v5226_v29 = vpop.f32.mrb[32].mxu1 }
0x1594   : > { %v3638_v48 = vmul.f32 2.0, %v5226_v29  ;;  %v3628_v37 = vpop.f32.mrb[33].mxu1 }
0x1595   : > { %v3637_v49 = vmul.f32 2.0, %v3628_v37 }
0x1596   : > { %v3640_v43 = vsub.f32 %v3638_v48, %v6535_v10 }
0x1597   : > { %v3639_v34 = vsub.f32 %v3637_v49, %v6530_v8  ;;  %v5248_v24 = vpop.f32.mrb[34].mxu1 }
0x1598   : > { %3642 = vst.msk [vmem:[#allocation2 + $0xf8] sm:$0xff] %vm385_vm0, %v3640_v43  ;;  %v5489_v2 = vadd.f32 %v5304_v50, %v5248_v24  ;;  %v3828_v3 = vpop.f32.mrb[35].mxu1 }
0x1599   : > { %3641 = vst.msk [vmem:[#allocation2 + $0xf0] sm:$0xff] %vm385_vm0, %v3639_v34  ;;  %v5490_v55 = vadd.f32 %v4185_v4, %v3828_v3 }
0x159a   : > { %v4248_v12 = vadd.f32 %v5489_v2, %v6574_v47 }
0x159b   : > { %v4247_v54 = vadd.f32 %v5490_v55, %v6574_v47  ;;  %v5251_v14 = vpop.f32.mrb[36].mxu1 }
0x159c   : > { %v5491_v6 = vadd.f32 %v5307_v35, %v5251_v14  ;;  %v3838_v15 = vpop.f32.mrb[37].mxu1  ;;  %v4264_v10 = vmax.f32 %v4248_v12, 0.0 }
0x159d   : > { %v4263_v7 = vmax.f32 %v4247_v54, 0.0  ;;  %v5492_v17 = vadd.f32 %v4195_v16, %v3838_v15 }
0x159e   : > { %v4250_v8 = vadd.f32 %v5491_v6, %v6574_v47 }
0x159f   : > { %v4249_v18 = vadd.f32 %v5492_v17, %v6574_v47  ;;  %v6604_v19 = vpop.f32.mrb[38].mxu1  ;;  %5330 = vmatprep.mubr.msk.f32.mxu1 %vm385_vm0, %v4263_v7  ;;  %v4017_v63 = vld [vmem:[#allocation2 + $0xf8] sm:$0xff] }
0x15a0   : > { %v6607_v20 = vpop.f32.mrb[39].mxu1  ;;  %5331 = vmatmul.mubr.msk.f32.gmra.mrb[50].mxu1 %vm385_vm0, %v4264_v10  ;;  %v4016_v22 = vld [vmem:[#allocation2 + $0xf0] sm:$0xff]  ;;  %v4266_v23 = vmax.f32 %v4250_v8, 0.0 }
0x15a1   : > { %v4265_v41 = vmax.f32 %v4249_v18, 0.0  ;;  %5308 = vmatprep.mubr.msk.f32.mxu0 %vm385_vm0, %v4016_v22 }
0x15a2   : > { %5309 = vmatmul.mubr.msk.f32.gmra.mrb[46].mxu0 %vm385_vm0, %v4017_v63 }
0x15a3   : > { %5333 = vmatprep.mubr.msk.f32.mxu1 %vm385_vm0, %v4265_v41 }
0x15a4   : > { %5334 = vmatmul.mubr.msk.f32.gmra.mrb[52].mxu1 %vm385_vm0, %v4266_v23 }
0x15ca   : > { %v5317_v40 = vpop.f32.mrb[40].mxu1 }
0x15cb   : > { %v4393_v57 = vadd.f32 %v5317_v40, %v6615_v13  ;;  %v4387_v9 = vpop.f32.mrb[41].mxu1 }
0x15cc   : > { %v4388_v46 = vadd.f32 %v4387_v9, %v6615_v13 }
0x15cd   : > { %v4467_v25 = vmax.f32 %v4393_v57, 0.0 }
0x15ce   : > { %v4466_v32 = vmax.f32 %v4388_v46, 0.0  ;;  %v5320_v31 = vpop.f32.mrb[42].mxu1 }
0x15cf   : > { %4483 = vst.msk [vmem:[%s6621_s14 + $0x8] sm:$0xff] %vm385_vm0, %v4467_v25  ;;  %v4403_v28 = vadd.f32 %v5320_v31, %v6615_v13  ;;  %v4397_v44 = vpop.f32.mrb[43].mxu1 }
0x15d0   : > { %4482 = vst.msk [vmem:[%s6621_s14] sm:$0xff] %vm385_vm0, %v4466_v32  ;;  %v4398_v33 = vadd.f32 %v4397_v44, %v6615_v13 }
0x15d1   : > { %v4469_v30 = vmax.f32 %v4403_v28, 0.0 }
0x15d2   : > { %v5323_v42 = vpop.f32.mrb[44].mxu1  ;;  %v4468_v53 = vmax.f32 %v4398_v33, 0.0 }
0x15d3   : > { %4488 = vrot.lane.b32.xlu0 %v4469_v30, %s5828_s26  ;;  %v4407_v51 = vpop.f32.mrb[45].mxu1  ;;  %v4413_v27 = vadd.f32 %v5323_v42, %v6615_v13 }
0x15d4   : > { %v4408_v26 = vadd.f32 %v4407_v51, %v6615_v13 }
0x15d5   : > { %v4471_v38 = vmax.f32 %v4413_v27, 0.0 }
0x15d6   : > { %v4470_v56 = vmax.f32 %v4408_v26, 0.0  ;;  %v5326_v11 = vpop.f32.mrb[46].mxu1 }
0x15d7   : > { %4486 = vrot.lane.b32.xlu0 %v4468_v53, %s5828_s26  ;;  %v4417_v61 = vpop.f32.mrb[47].mxu1  ;;  %v4423_v39 = vadd.f32 %v5326_v11, %v6615_v13  ;;  %s6764_s26 = smov 64  }
0x15d8   : > { %4496 = vrot.lane.b32.xlu1 %v4470_v56, %s5830_s28  ;;  %v4418_v0 = vadd.f32 %v4417_v61, %v6615_v13 }
0x15d9   : > { %v4473_v62 = vmax.f32 %v4423_v39, 0.0 }
0x15da   : > { %v5329_v21 = vpop.f32.mrb[48].mxu1  ;;  %v4472_v58 = vmax.f32 %v4418_v0, 0.0 }
0x15db   : > { %4498 = vrot.lane.b32.xlu0 %v4471_v38, %s5830_s28  ;;  %v4427_v60 = vpop.f32.mrb[49].mxu1  ;;  %v4433_v45 = vadd.f32 %v5329_v21, %v6615_v13  ;;  %s6765_s28 = smov 80  }
0x15dc   : > { %v4428_v59 = vadd.f32 %v4427_v60, %v6615_v13 }
0x15dd   : > { %v4475_v52 = vmax.f32 %v4433_v45, 0.0 }
0x15de   : > { %v4474_v5 = vmax.f32 %v4428_v59, 0.0 }
0x15df   : > { %4508 = vrot.lane.b32.xlu0 %v4473_v62, %s5831_s29 }
0x15e3   : > { %4506 = vrot.lane.b32.xlu0 %v4472_v58, %s5831_s29  ;;  %s6766_s29 = smov 96  }
0x15e7   : > { %4518 = vrot.lane.b32.xlu0 %v4475_v52, %s6764_s26 }
0x15eb   : > { %4516 = vrot.lane.b32.xlu0 %v4474_v5, %s6764_s26  ;;  %s5835_s26 = smov [#allocation4]  }
0x1645   : > { %v4489_v1 = vpop.permute.xlu0 %4488 }
0x1646   : > { %4493 = vst.msk [vmem:[%s6621_s14 + $0x8] sm:$0xff] %vm1045_vm5, %v4489_v1 }
0x1649   : > { %v4487_v50 = vpop.permute.xlu0 %4486 }
0x164a   : > { %4492 = vst.msk [vmem:[%s6621_s14] sm:$0xff] %vm1045_vm5, %v4487_v50  ;;  %v4497_v36 = vpop.permute.xlu1 %4496 }
0x164b   : > { %4502 = vst.msk [vmem:[%s6621_s14] sm:$0xff] %vm1419_vm8, %v4497_v36 }
0x164d   : > { %v4499_v4 = vpop.permute.xlu0 %4498 }
0x164e   : > { %4503 = vst.msk [vmem:[%s6621_s14 + $0x8] sm:$0xff] %vm1419_vm8, %v4499_v4 }
0x1651   : > { %v4509_v35 = vpop.permute.xlu0 %4508 }
0x1652   : > { %4513 = vst.msk [vmem:[%s6621_s14 + $0x8] sm:$0xff] %vm1793_vm9, %v4509_v35 }
0x1655   : > { %v4507_v16 = vpop.permute.xlu0 %4506 }
0x1656   : > { %4512 = vst.msk [vmem:[%s6621_s14] sm:$0xff] %vm1793_vm9, %v4507_v16 }
0x1659   : > { %v4519_v29 = vpop.permute.xlu0 %4518 }
0x165a   : > { %4523 = vst.msk [vmem:[%s6621_s14 + $0x8] sm:$0xff] %vm2167_vm14, %v4519_v29 }
0x165d   : > { %v4517_v48 = vpop.permute.xlu0 %4516 }
0x165e   : > { %4522 = vst.msk [vmem:[%s6621_s14] sm:$0xff] %vm2167_vm14, %v4517_v48 }
0x1673   : > { %v5332_v37 = vpop.f32.mrb[50].mxu1 }
0x1674   : > { %v4443_v49 = vadd.f32 %v5332_v37, %v6615_v13  ;;  %v4437_v43 = vpop.f32.mrb[51].mxu1 }
0x1675   : > { %v5310_v34 = vpop.f32.mrb[46].mxu0  ;;  %v4438_v2 = vadd.f32 %v4437_v43, %v6615_v13 }
0x1676   : > { %v4477_v24 = vmax.f32 %v4443_v49, 0.0  ;;  %v5493_v3 = vadd.f32 %v5310_v34, %v6604_v19  ;;  %v4205_v55 = vpop.f32.mrb[47].mxu0 }
0x1677   : > { %v5494_v12 = vadd.f32 %v4205_v55, %v6607_v20  ;;  %v5335_v54 = vpop.f32.mrb[52].mxu1  ;;  %v4476_v17 = vmax.f32 %v4438_v2, 0.0 }
0x1678   : > { %v4252_v14 = vadd.f32 %v5493_v3, %v6574_v47  ;;  %4528 = vrot.lane.b32.xlu0 %v4477_v24, %s6765_s28  ;;  %v4447_v6 = vpop.f32.mrb[53].mxu1  ;;  %v4453_v10 = vadd.f32 %v5335_v54, %v6615_v13 }
0x1679   : > { %v4251_v15 = vadd.f32 %v5494_v12, %v6574_v47  ;;  %v4448_v7 = vadd.f32 %v4447_v6, %v6615_v13 }
0x167a   : > { %v4268_v19 = vmax.f32 %v4252_v14, 0.0  ;;  %v4479_v20 = vmax.f32 %v4453_v10, 0.0 }
0x167b   : > { %v4267_v8 = vmax.f32 %v4251_v15, 0.0  ;;  %v4478_v18 = vmax.f32 %v4448_v7, 0.0 }
0x167c   : > { %4526 = vrot.lane.b32.xlu0 %v4476_v17, %s6765_s28  ;;  %s5764_s28 = sshll.u32 %s5835_s26, 4  ;;  %s5765_s28 = int_to_ptr.vmem [resolvable:$false] %s5764_s28 }
0x167d   : > { %4536 = vrot.lane.b32.xlu1 %v4478_v18, %s6766_s29  ;;  %5336 = vmatprep.mubr.msk.f32.mxu1 %vm385_vm0, %v4267_v8  ;;  %p5767_p0 = scmp.lt.s32.totalorder %s6692_s12, %s5765_s28 }
0x167e   : > { %5337 = vmatmul.mubr.msk.f32.gmra.mrb[54].mxu1 %vm385_vm0, %v4268_v19 }
0x1680   : > { %4538 = vrot.lane.b32.xlu0 %v4479_v20, %s6766_s29  ;;  %s5766_s29 = scalar_lea.vmem %s5765_s28, 512 }
0x1681   : > { %p5768_p1 = scmp.lt.s32.totalorder %s5766_s29, %s5760_s9 }
0x1683   : > { %p5769_p2 = por %p5768_p1, %p5767_p0 }
0x1685   : > { %p5770_p3 = pnand %p5769_p2, %p5763_p13 }
0x16ea   : > { %v4529_v47 = vpop.permute.xlu0 %4528 }
0x16eb   : > { %4533 = vst.msk [vmem:[%s6621_s14 + $0x8] sm:$0xff] %vm2541_vm15, %v4529_v47 }
0x16ee   : > { %v4527_v22 = vpop.permute.xlu0 %4526 }
0x16ef   : > { %4532 = vst.msk [vmem:[%s6621_s14] sm:$0xff] %vm2541_vm15, %v4527_v22  ;;  %v4537_v41 = vpop.permute.xlu1 %4536 }
0x16f0   : > { %4542 = vst.msk [vmem:[%s6621_s14] sm:$0xff] %vm2915_vm3, %v4537_v41 }
0x16f2   : > { %v4539_v63 = vpop.permute.xlu0 %4538 }
0x16f3   : > { %4543 = vst.msk [vmem:[%s6621_s14 + $0x8] sm:$0xff] %vm2915_vm3, %v4539_v63 }
0x1751   : > { %v5338_v23 = vpop.f32.mrb[54].mxu1 }
0x1752   : > { %v4463_v40 = vadd.f32 %v5338_v23, %v6615_v13  ;;  %v4457_v57 = vpop.f32.mrb[55].mxu1 }
0x1753   : > { %v4458_v9 = vadd.f32 %v4457_v57, %v6615_v13 }
0x1754   : > { %v4481_v46 = vmax.f32 %v4463_v40, 0.0 }
0x1755   : > { %v4480_v25 = vmax.f32 %v4458_v9, 0.0 }
0x1756   : > { %4548 = vrot.lane.b32.xlu0 %v4481_v46, %s6767_s30 }
0x1757   : > { %4546 = vrot.lane.b32.xlu1 %v4480_v25, %s6767_s30 }
0x17c8   : > { %v4549_v13 = vpop.permute.xlu0 %4548 }
0x17c9   : > { %4553 = vst.msk [vmem:[%s6621_s14 + $0x8] sm:$0xff] %vm3289_vm7, %v4549_v13  ;;  %v4547_v32 = vpop.permute.xlu1 %4546 }
0x17ca   : > { %4552 = vst.msk [vmem:[%s6621_s14] sm:$0xff] %vm3289_vm7, %v4547_v32 }
0x17cb   : > { %5773 = shalt.err (!%p5770_p3)
}
0x17cc   : > { %s5774_s21 = scalar_lea.hbm %s6690_s19, 256  ;;  %s5778_s11 = scalar_lea.hbm %s6751_s10, 512 }
0x17cd   : > { %p5775_p4 = scmp.ne.s32.totalorder %s6690_s19, %s5774_s21  ;;  %p5779_p9 = scmp.lt.u32.totalorder %s6690_s19, %s6751_s10 }
0x17ce   : > { %p5780_p10 = scmp.lt.u32.totalorder %s5778_s11, %s5774_s21  ;;  %p5782_p12 = scmp.lt.u32.totalorder %s5774_s21, %s6690_s19 }
0x17cf   : > { %p5776_p7 = pnand %p5775_p4, %p5934_p5 }
0x17d0   : > { %p5781_p11 = por %p5780_p10, %p5779_p9 }
0x17d1   : > { %p5777_p8 = pneg %p5776_p7 }
0x17d2   : > { %p5783_p13 = por %p5782_p12, %p5781_p11 }
0x17d4   : > { %p5784_p0 = pnand %p5783_p13, %p5777_p8 }
0x17d6   : > { %5787 = shalt.err (!%p5784_p0)
}
0x17d7   : > { %s5836_s9 = smov 128   ;;  %s5837_s26 = smov 8  }
0x17d8   : > { %5521 = dma.vmem_to_hbm [thread:$0]  (%p5934_p5), %s6692_s12, 256, %s6690_s19, %s6700_s27, %s5836_s9, %s5836_s9, %s5837_s26  }
0x17d9 PF: > { %p5527_p1 = scmp.ge.s32.totalorder %s5822_s18, 2  ;;  %s4583_s28 = sand.u32 1, %s5810_s15  }
0x17da   : > { %s4584_s29 = scalar_lea.sflag [#allocation5], %s4583_s28 }
0x17db   : > { %p5524_p2 = pnand %p5527_p1, %p5938_p6 }
0x17dd   : > { %5805 = dma.done.wait (!%p5524_p2), %s4584_s29, 256  }
0x17de   : > { %5807 = vsyncadd (!%p5524_p2), %s4584_s29, 4294967040  ;;  %p21_p3 = scmp.ge.s32.totalorder %s5921_s20, 4   ;;  %s6768_s15 = smov %s5814_s16 }
0x17df   : > { %s6769_s16 = smov %s5818_s17  ;;  %s6770_s17 = smov %s5932_s23 }
0x17e0   : > { %s6771_s18 = smov %s5921_s20  ;;  %23 = sbr.rel (!%p21_p3) target bundleno = 5 (0x5), region = 98 }
0x17e7   :  { %4589 = vsyncpa [#allocation5], 1 }
0x17e8   :  { %4591 = vsyncpa [#allocation5 + $0x1], 1 }

</bundles_post_ra>
